<compile_context>
chip_gen: v5e
topology: v5e:2x2
jax: 0.10.0
libtpu: 0.0.40
codegen_flags: <defaults>
</compile_context>

<pallas_src>
import functools

import jax
import jax.numpy as jnp
from jax.experimental import pallas as pl
from jax.experimental.pallas import tpu as pltpu

LANE = 128
SUBLANE = 8


def _round_up(n, m):
    return ((n + m - 1) // m) * m


# -----------------------------------------------------------------------------
# Parameter construction (packed slabs).
# -----------------------------------------------------------------------------
def make_autoencoder_params(key, layer_dims=None, weight_dtype=jnp.bfloat16):
    """Deterministic init mimicking nn.Linear's uniform(+/- 1/sqrt(fan_in)).

    All layer weights are zero-padded to a uniform (d_pad, d_pad) tile and
    stacked into a single (L, d_pad, d_pad) slab (bf16); biases are stacked
    into a single (L, d_pad) f32 slab.  Zero padding keeps the valid region
    of every layer's output exact.
    """
    if layer_dims is None:
        layer_dims = [200, 200, 200, 100, 100, 100, 50]

    # Per-layer (d_in, d_out) in forward order, matching the PyTorch module.
    dims = []
    for i in range(len(layer_dims) - 1):                 # encoder
        dims.append((layer_dims[i], layer_dims[i + 1]))
    for i in range(len(layer_dims) - 2, 0, -1):          # decoder
        dims.append((layer_dims[i + 1], layer_dims[i]))
    dims.append((layer_dims[1], layer_dims[0]))

    # Sanity: layer chain must be consistent (each layer's d_in equals the
    # previous layer's d_out) -- guards against silent breakage if layer_dims
    # change.
    for l in range(len(dims) - 1):
        assert dims[l][1] == dims[l + 1][0], (l, dims[l], dims[l + 1])

    num_layers = len(dims)
    d_pad = max(_round_up(max(max(di, do) for di, do in dims), LANE), LANE)

    keys = jax.random.split(key, num_layers)
    w_slab = jnp.zeros((num_layers, d_pad, d_pad), jnp.float32)
    b_slab = jnp.zeros((num_layers, d_pad), jnp.float32)
    for l, ((di, do), k) in enumerate(zip(dims, keys)):
        kw, kb = jax.random.split(k)
        bound = 1.0 / float(di) ** 0.5
        w = jax.random.uniform(kw, (di, do), jnp.float32,
                               minval=-bound, maxval=bound)
        b = jax.random.uniform(kb, (do,), jnp.float32,
                               minval=-bound, maxval=bound)
        w_slab = w_slab.at[l, :di, :do].set(w)
        b_slab = b_slab.at[l, :do].set(b)

    return {
        "layer_dims": list(layer_dims),
        "dims": dims,                              # true (d_in, d_out) per layer
        "d_pad": d_pad,                            # uniform padded feature width
        "hidden_idx": len(layer_dims) - 2,         # last encoder layer
        "w_slab": w_slab.astype(weight_dtype),     # (L, d_pad, d_pad) bf16
        "b_slab": b_slab,                          # (L, d_pad)        f32
    }


# -----------------------------------------------------------------------------
# Fused kernel.
# -----------------------------------------------------------------------------
def _make_fused_kernel(num_layers, hidden_idx, hidden_pad, w_dtype, out_dtype):
    """Fused 12-layer MLP.  Fully unrolled at trace time; activations are held
    as values (register-resident at small batch tiles, compiler-spilled to
    VMEM at large ones)."""

    def kernel(x_ref, w_ref, b_ref, recon_ref, hidden_ref):
        h = x_ref[...].astype(jnp.float32)                     # (tb, d_pad)
        for l in range(num_layers):                            # static unroll
            # MXU: bf16 x bf16 -> f32 accumulate.
            y = jnp.dot(h.astype(w_dtype), w_ref[l],
                        preferred_element_type=jnp.float32)
            # Bias add + ReLU in f32 on the VPU.  Padded columns stay exactly 0.
            h = jnp.maximum(y + b_ref[pl.ds(l, 1), :], 0.0)
            if l == hidden_idx:
                hidden_ref[...] = h[:, :hidden_pad].astype(out_dtype)
        recon_ref[...] = h.astype(out_dtype)

    return kernel


# -----------------------------------------------------------------------------
# Wrapper.
# -----------------------------------------------------------------------------
def autoencoder_forward(params, x, *, batch_tile=128):
    """Forward pass. Returns (reconstruction, hidden_layer), where
    hidden_layer corresponds to `self.hidden_layer` in the PyTorch module."""
    dims = params["dims"]
    d_pad = params["d_pad"]
    hidden_idx = params["hidden_idx"]
    num_layers = len(dims)
    hidden_pad = _round_up(dims[hidden_idx][1], LANE)

    B, d_in = x.shape
    assert d_in == dims[0][0], (d_in, dims[0][0])
    out_dtype = x.dtype

    # Batch tiling: small batches run as a single tile (grid of 1); large
    # batches stream `batch_tile`-row tiles while the weight/bias slabs stay
    # VMEM-resident (constant index_map -> no re-DMA across grid steps).
    if B <= batch_tile:
        tb = _round_up(max(B, SUBLANE), SUBLANE)
    else:
        tb = batch_tile
    b_pad = _round_up(B, tb)
    grid = (b_pad // tb,)

    # NOTE: padded batch rows accumulate relu(bias) != 0 through the layers;
    # they are sliced off below and must never be read from the padded outputs.
    x_pad = jnp.zeros((b_pad, d_pad), jnp.float32).at[:B, :d_in].set(
        x.astype(jnp.float32))

    w_slab = params["w_slab"]
    b_slab = params["b_slab"]

    kernel = _make_fused_kernel(num_layers, hidden_idx, hidden_pad,
                                w_slab.dtype, out_dtype)

    flops = 2 * b_pad * num_layers * d_pad * d_pad
    bytes_accessed = (
        x_pad.size * 4
        + w_slab.size * jnp.dtype(w_slab.dtype).itemsize
        + b_slab.size * 4
        + b_pad * d_pad * jnp.dtype(out_dtype).itemsize
        + b_pad * hidden_pad * jnp.dtype(out_dtype).itemsize)

    recon_pad, hidden_pad_arr = pl.pallas_call(
        kernel,
        grid=grid,
        in_specs=[
            # batch tile of the (padded) input
            pl.BlockSpec((tb, d_pad), lambda i: (i, 0)),
            # full weight slab, resident across all batch tiles
            pl.BlockSpec((num_layers, d_pad, d_pad), lambda i: (0, 0, 0)),
            # full bias slab, resident across all batch tiles
            pl.BlockSpec((num_layers, d_pad), lambda i: (0, 0)),
        ],
        out_specs=(
            pl.BlockSpec((tb, d_pad), lambda i: (i, 0)),        # reconstruction
            pl.BlockSpec((tb, hidden_pad), lambda i: (i, 0)),   # hidden layer
        ),
        out_shape=(
            jax.ShapeDtypeStruct((b_pad, d_pad), out_dtype),
            jax.ShapeDtypeStruct((b_pad, hidden_pad), out_dtype),
        ),
        compiler_params=pltpu.CompilerParams(
            # Batch tiles are independent -> shard across v7x's 2 TensorCores.
            dimension_semantics=("parallel",),
        ),
        cost_estimate=pl.CostEstimate(
            flops=flops, transcendentals=0, bytes_accessed=bytes_accessed),
    )(x_pad, w_slab, b_slab)

    recon = recon_pad[:B, :dims[-1][1]]
    hidden = hidden_pad_arr[:B, :dims[hidden_idx][1]]
    return recon, hidden


# -----------------------------------------------------------------------------
# Pure-JAX references for correctness checking.
# -----------------------------------------------------------------------------
def _reference_forward(params, x, *, match_kernel_precision):
    """Pure-JAX reference.

    match_kernel_precision=True  -> bf16 weights and bf16 activation casts with
                                    f32 accumulation (same numerics as kernel).
    match_kernel_precision=False -> f32 activations throughout (only the bf16
                                    activation casts differ from the kernel).
    """
    dims = params["dims"]
    hidden_idx = params["hidden_idx"]
    w_dtype = params["w_slab"].dtype
    h = x.astype(jnp.float32)
    hidden = None
    for l, (di, do) in enumerate(dims):
        w = params["w_slab"][l, :di, :do]
        b = params["b_slab"][l, :do]
        if match_kernel_precision:
            y = jnp.dot(h.astype(w_dtype), w, preferred_element_type=jnp.float32)
        else:
            y = jnp.dot(h, w.astype(jnp.float32),
                        precision=jax.lax.Precision.HIGHEST)
        h = jnp.maximum(y + b[None, :], 0.0)
        if l == hidden_idx:
            hidden = h
    return h, hidden


if __name__ == "__main__":
    layer_dims = [200, 200, 200, 100, 100, 100, 50]
    batch = 8

    key = jax.random.PRNGKey(0)
    k_params, k_x = jax.random.split(key)

    params = make_autoencoder_params(k_params, layer_dims)
    x = jax.random.normal(k_x, (batch, layer_dims[0]), dtype=jnp.float32)

    fwd = jax.jit(functools.partial(autoencoder_forward, params))
    recon, hidden = fwd(x)
    recon = jax.block_until_ready(recon)
    hidden = jax.block_until_ready(hidden)

    assert recon.shape == (batch, layer_dims[0]), recon.shape
    assert hidden.shape == (batch, layer_dims[-1]), hidden.shape

    # Tight check against a reference with matched numerics (verifies the
    # packing, padding and layer wiring of the kernel).
    ref_recon, ref_hidden = _reference_forward(
        params, x, match_kernel_precision=True)
    assert jnp.allclose(recon, ref_recon, atol=5e-3, rtol=5e-3), \
        float(jnp.max(jnp.abs(recon - ref_recon)))
    assert jnp.allclose(hidden, ref_hidden, atol=5e-3, rtol=5e-3), \
        float(jnp.max(jnp.abs(hidden - ref_hidden)))

    # Loose sanity check vs an f32-activation reference (only bf16 activation
    # rounding differs; bound is intentionally generous).
    f32_recon, f32_hidden = _reference_forward(
        params, x, match_kernel_precision=False)
    assert jnp.allclose(recon, f32_recon, atol=1e-1, rtol=1e-1), \
        float(jnp.max(jnp.abs(recon - f32_recon)))
    assert jnp.allclose(hidden, f32_hidden, atol=1e-1, rtol=1e-1), \
        float(jnp.max(jnp.abs(hidden - f32_hidden)))

    print("KERNEL_OK")
</pallas_src>

<mosaic_0001>
module attributes {stable_mosaic.version = 11 : i64} {
  func.func @kernel(%arg0: i32, %arg1: memref<8x256xf32, #tpu.memory_space<vmem>>, %arg2: memref<12x256x256xbf16, #tpu.memory_space<vmem>>, %arg3: memref<12x256xf32, #tpu.memory_space<vmem>>, %arg4: memref<8x256xf32, #tpu.memory_space<vmem>>, %arg5: memref<8x128xf32, #tpu.memory_space<vmem>>) attributes {dimension_semantics = [#tpu.dimension_semantics<parallel>], iteration_bounds = array<i64: 1>, scalar_prefetch = 0 : i64, scratch_operands = 0 : i64, tpu.core_type = #tpu.core_type<tc>, window_params = [{transform_indices = @transform_0, window_bounds = array<i64: 8, 256>}, {pipeline_mode = #tpu.pipeline_mode<synchronous>, transform_indices = @transform_1, window_bounds = array<i64: 12, 256, 256>}, {pipeline_mode = #tpu.pipeline_mode<synchronous>, transform_indices = @transform_2, window_bounds = array<i64: 12, 256>}, {transform_indices = @transform_3, window_bounds = array<i64: 8, 256>}, {transform_indices = @transform_4, window_bounds = array<i64: 8, 128>}]} {
    %c0 = arith.constant 0 : index
    %c0_0 = arith.constant 0 : index
    %0 = vector.load %arg1[%c0, %c0_0] : memref<8x256xf32, #tpu.memory_space<vmem>>, vector<8x256xf32>
    %1 = arith.truncf %0 : vector<8x256xf32> to vector<8x256xbf16>
    %c0_1 = arith.constant 0 : index
    %c0_2 = arith.constant 0 : index
    %c0_3 = arith.constant 0 : index
    %2 = vector.load %arg2[%c0_1, %c0_2, %c0_3] : memref<12x256x256xbf16, #tpu.memory_space<vmem>>, vector<1x256x256xbf16>
    %3 = vector.shape_cast %2 : vector<1x256x256xbf16> to vector<256x256xbf16>
    %cst = arith.constant dense<0.000000e+00> : vector<8x256xf32>
    %4 = tpu.matmul %1, %3, %cst {dimension_numbers = #tpu.dot_dimension_numbers<[1], [0], [0], [1], [0, 0, 1, 1], [], []>} : vector<8x256xbf16>, vector<256x256xbf16>, vector<8x256xf32> -> vector<8x256xf32>
    %c0_4 = arith.constant 0 : index
    %c0_5 = arith.constant 0 : index
    %5 = vector.load %arg3[%c0_4, %c0_5] : memref<12x256xf32, #tpu.memory_space<vmem>>, vector<1x256xf32>
    %6 = vector.broadcast %5 : vector<1x256xf32> to vector<8x256xf32>
    %7 = arith.addf %4, %6 : vector<8x256xf32>
    %cst_6 = arith.constant 0.000000e+00 : f32
    %8 = vector.broadcast %cst_6 : f32 to vector<8x256xf32>
    %9 = arith.maximumf %7, %8 : vector<8x256xf32>
    %10 = arith.truncf %9 : vector<8x256xf32> to vector<8x256xbf16>
    %c1 = arith.constant 1 : index
    %c0_7 = arith.constant 0 : index
    %c0_8 = arith.constant 0 : index
    %11 = vector.load %arg2[%c1, %c0_7, %c0_8] : memref<12x256x256xbf16, #tpu.memory_space<vmem>>, vector<1x256x256xbf16>
    %12 = vector.shape_cast %11 : vector<1x256x256xbf16> to vector<256x256xbf16>
    %cst_9 = arith.constant dense<0.000000e+00> : vector<8x256xf32>
    %13 = tpu.matmul %10, %12, %cst_9 {dimension_numbers = #tpu.dot_dimension_numbers<[1], [0], [0], [1], [0, 0, 1, 1], [], []>} : vector<8x256xbf16>, vector<256x256xbf16>, vector<8x256xf32> -> vector<8x256xf32>
    %c1_10 = arith.constant 1 : index
    %c0_11 = arith.constant 0 : index
    %14 = vector.load %arg3[%c1_10, %c0_11] : memref<12x256xf32, #tpu.memory_space<vmem>>, vector<1x256xf32>
    %15 = vector.broadcast %14 : vector<1x256xf32> to vector<8x256xf32>
    %16 = arith.addf %13, %15 : vector<8x256xf32>
    %cst_12 = arith.constant 0.000000e+00 : f32
    %17 = vector.broadcast %cst_12 : f32 to vector<8x256xf32>
    %18 = arith.maximumf %16, %17 : vector<8x256xf32>
    %19 = arith.truncf %18 : vector<8x256xf32> to vector<8x256xbf16>
    %c2 = arith.constant 2 : index
    %c0_13 = arith.constant 0 : index
    %c0_14 = arith.constant 0 : index
    %20 = vector.load %arg2[%c2, %c0_13, %c0_14] : memref<12x256x256xbf16, #tpu.memory_space<vmem>>, vector<1x256x256xbf16>
    %21 = vector.shape_cast %20 : vector<1x256x256xbf16> to vector<256x256xbf16>
    %cst_15 = arith.constant dense<0.000000e+00> : vector<8x256xf32>
    %22 = tpu.matmul %19, %21, %cst_15 {dimension_numbers = #tpu.dot_dimension_numbers<[1], [0], [0], [1], [0, 0, 1, 1], [], []>} : vector<8x256xbf16>, vector<256x256xbf16>, vector<8x256xf32> -> vector<8x256xf32>
    %c2_16 = arith.constant 2 : index
    %c0_17 = arith.constant 0 : index
    %23 = vector.load %arg3[%c2_16, %c0_17] : memref<12x256xf32, #tpu.memory_space<vmem>>, vector<1x256xf32>
    %24 = vector.broadcast %23 : vector<1x256xf32> to vector<8x256xf32>
    %25 = arith.addf %22, %24 : vector<8x256xf32>
    %cst_18 = arith.constant 0.000000e+00 : f32
    %26 = vector.broadcast %cst_18 : f32 to vector<8x256xf32>
    %27 = arith.maximumf %25, %26 : vector<8x256xf32>
    %28 = arith.truncf %27 : vector<8x256xf32> to vector<8x256xbf16>
    %c3 = arith.constant 3 : index
    %c0_19 = arith.constant 0 : index
    %c0_20 = arith.constant 0 : index
    %29 = vector.load %arg2[%c3, %c0_19, %c0_20] : memref<12x256x256xbf16, #tpu.memory_space<vmem>>, vector<1x256x256xbf16>
    %30 = vector.shape_cast %29 : vector<1x256x256xbf16> to vector<256x256xbf16>
    %cst_21 = arith.constant dense<0.000000e+00> : vector<8x256xf32>
    %31 = tpu.matmul %28, %30, %cst_21 {dimension_numbers = #tpu.dot_dimension_numbers<[1], [0], [0], [1], [0, 0, 1, 1], [], []>} : vector<8x256xbf16>, vector<256x256xbf16>, vector<8x256xf32> -> vector<8x256xf32>
    %c3_22 = arith.constant 3 : index
    %c0_23 = arith.constant 0 : index
    %32 = vector.load %arg3[%c3_22, %c0_23] : memref<12x256xf32, #tpu.memory_space<vmem>>, vector<1x256xf32>
    %33 = vector.broadcast %32 : vector<1x256xf32> to vector<8x256xf32>
    %34 = arith.addf %31, %33 : vector<8x256xf32>
    %cst_24 = arith.constant 0.000000e+00 : f32
    %35 = vector.broadcast %cst_24 : f32 to vector<8x256xf32>
    %36 = arith.maximumf %34, %35 : vector<8x256xf32>
    %37 = arith.truncf %36 : vector<8x256xf32> to vector<8x256xbf16>
    %c4 = arith.constant 4 : index
    %c0_25 = arith.constant 0 : index
    %c0_26 = arith.constant 0 : index
    %38 = vector.load %arg2[%c4, %c0_25, %c0_26] : memref<12x256x256xbf16, #tpu.memory_space<vmem>>, vector<1x256x256xbf16>
    %39 = vector.shape_cast %38 : vector<1x256x256xbf16> to vector<256x256xbf16>
    %cst_27 = arith.constant dense<0.000000e+00> : vector<8x256xf32>
    %40 = tpu.matmul %37, %39, %cst_27 {dimension_numbers = #tpu.dot_dimension_numbers<[1], [0], [0], [1], [0, 0, 1, 1], [], []>} : vector<8x256xbf16>, vector<256x256xbf16>, vector<8x256xf32> -> vector<8x256xf32>
    %c4_28 = arith.constant 4 : index
    %c0_29 = arith.constant 0 : index
    %41 = vector.load %arg3[%c4_28, %c0_29] : memref<12x256xf32, #tpu.memory_space<vmem>>, vector<1x256xf32>
    %42 = vector.broadcast %41 : vector<1x256xf32> to vector<8x256xf32>
    %43 = arith.addf %40, %42 : vector<8x256xf32>
    %cst_30 = arith.constant 0.000000e+00 : f32
    %44 = vector.broadcast %cst_30 : f32 to vector<8x256xf32>
    %45 = arith.maximumf %43, %44 : vector<8x256xf32>
    %46 = arith.truncf %45 : vector<8x256xf32> to vector<8x256xbf16>
    %c5 = arith.constant 5 : index
    %c0_31 = arith.constant 0 : index
    %c0_32 = arith.constant 0 : index
    %47 = vector.load %arg2[%c5, %c0_31, %c0_32] : memref<12x256x256xbf16, #tpu.memory_space<vmem>>, vector<1x256x256xbf16>
    %48 = vector.shape_cast %47 : vector<1x256x256xbf16> to vector<256x256xbf16>
    %cst_33 = arith.constant dense<0.000000e+00> : vector<8x256xf32>
    %49 = tpu.matmul %46, %48, %cst_33 {dimension_numbers = #tpu.dot_dimension_numbers<[1], [0], [0], [1], [0, 0, 1, 1], [], []>} : vector<8x256xbf16>, vector<256x256xbf16>, vector<8x256xf32> -> vector<8x256xf32>
    %c5_34 = arith.constant 5 : index
    %c0_35 = arith.constant 0 : index
    %50 = vector.load %arg3[%c5_34, %c0_35] : memref<12x256xf32, #tpu.memory_space<vmem>>, vector<1x256xf32>
    %51 = vector.broadcast %50 : vector<1x256xf32> to vector<8x256xf32>
    %52 = arith.addf %49, %51 : vector<8x256xf32>
    %cst_36 = arith.constant 0.000000e+00 : f32
    %53 = vector.broadcast %cst_36 : f32 to vector<8x256xf32>
    %54 = arith.maximumf %52, %53 : vector<8x256xf32>
    %55 = vector.extract_strided_slice %54 {offsets = [0, 0], sizes = [8, 128], strides = [1, 1]} : vector<8x256xf32> to vector<8x128xf32>
    %c0_37 = arith.constant 0 : index
    %c0_38 = arith.constant 0 : index
    %56 = vector.load %arg5[%c0_37, %c0_38] : memref<8x128xf32, #tpu.memory_space<vmem>>, vector<8x128xf32>
    tpu.vector_store %arg5[%c0_37, %c0_38], %55 {strides = array<i32>} : memref<8x128xf32, #tpu.memory_space<vmem>>, vector<8x128xf32>,
    %57 = arith.truncf %54 : vector<8x256xf32> to vector<8x256xbf16>
    %c6 = arith.constant 6 : index
    %c0_39 = arith.constant 0 : index
    %c0_40 = arith.constant 0 : index
    %58 = vector.load %arg2[%c6, %c0_39, %c0_40] : memref<12x256x256xbf16, #tpu.memory_space<vmem>>, vector<1x256x256xbf16>
    %59 = vector.shape_cast %58 : vector<1x256x256xbf16> to vector<256x256xbf16>
    %cst_41 = arith.constant dense<0.000000e+00> : vector<8x256xf32>
    %60 = tpu.matmul %57, %59, %cst_41 {dimension_numbers = #tpu.dot_dimension_numbers<[1], [0], [0], [1], [0, 0, 1, 1], [], []>} : vector<8x256xbf16>, vector<256x256xbf16>, vector<8x256xf32> -> vector<8x256xf32>
    %c6_42 = arith.constant 6 : index
    %c0_43 = arith.constant 0 : index
    %61 = vector.load %arg3[%c6_42, %c0_43] : memref<12x256xf32, #tpu.memory_space<vmem>>, vector<1x256xf32>
    %62 = vector.broadcast %61 : vector<1x256xf32> to vector<8x256xf32>
    %63 = arith.addf %60, %62 : vector<8x256xf32>
    %cst_44 = arith.constant 0.000000e+00 : f32
    %64 = vector.broadcast %cst_44 : f32 to vector<8x256xf32>
    %65 = arith.maximumf %63, %64 : vector<8x256xf32>
    %66 = arith.truncf %65 : vector<8x256xf32> to vector<8x256xbf16>
    %c7 = arith.constant 7 : index
    %c0_45 = arith.constant 0 : index
    %c0_46 = arith.constant 0 : index
    %67 = vector.load %arg2[%c7, %c0_45, %c0_46] : memref<12x256x256xbf16, #tpu.memory_space<vmem>>, vector<1x256x256xbf16>
    %68 = vector.shape_cast %67 : vector<1x256x256xbf16> to vector<256x256xbf16>
    %cst_47 = arith.constant dense<0.000000e+00> : vector<8x256xf32>
    %69 = tpu.matmul %66, %68, %cst_47 {dimension_numbers = #tpu.dot_dimension_numbers<[1], [0], [0], [1], [0, 0, 1, 1], [], []>} : vector<8x256xbf16>, vector<256x256xbf16>, vector<8x256xf32> -> vector<8x256xf32>
    %c7_48 = arith.constant 7 : index
    %c0_49 = arith.constant 0 : index
    %70 = vector.load %arg3[%c7_48, %c0_49] : memref<12x256xf32, #tpu.memory_space<vmem>>, vector<1x256xf32>
    %71 = vector.broadcast %70 : vector<1x256xf32> to vector<8x256xf32>
    %72 = arith.addf %69, %71 : vector<8x256xf32>
    %cst_50 = arith.constant 0.000000e+00 : f32
    %73 = vector.broadcast %cst_50 : f32 to vector<8x256xf32>
    %74 = arith.maximumf %72, %73 : vector<8x256xf32>
    %75 = arith.truncf %74 : vector<8x256xf32> to vector<8x256xbf16>
    %c8 = arith.constant 8 : index
    %c0_51 = arith.constant 0 : index
    %c0_52 = arith.constant 0 : index
    %76 = vector.load %arg2[%c8, %c0_51, %c0_52] : memref<12x256x256xbf16, #tpu.memory_space<vmem>>, vector<1x256x256xbf16>
    %77 = vector.shape_cast %76 : vector<1x256x256xbf16> to vector<256x256xbf16>
    %cst_53 = arith.constant dense<0.000000e+00> : vector<8x256xf32>
    %78 = tpu.matmul %75, %77, %cst_53 {dimension_numbers = #tpu.dot_dimension_numbers<[1], [0], [0], [1], [0, 0, 1, 1], [], []>} : vector<8x256xbf16>, vector<256x256xbf16>, vector<8x256xf32> -> vector<8x256xf32>
    %c8_54 = arith.constant 8 : index
    %c0_55 = arith.constant 0 : index
    %79 = vector.load %arg3[%c8_54, %c0_55] : memref<12x256xf32, #tpu.memory_space<vmem>>, vector<1x256xf32>
    %80 = vector.broadcast %79 : vector<1x256xf32> to vector<8x256xf32>
    %81 = arith.addf %78, %80 : vector<8x256xf32>
    %cst_56 = arith.constant 0.000000e+00 : f32
    %82 = vector.broadcast %cst_56 : f32 to vector<8x256xf32>
    %83 = arith.maximumf %81, %82 : vector<8x256xf32>
    %84 = arith.truncf %83 : vector<8x256xf32> to vector<8x256xbf16>
    %c9 = arith.constant 9 : index
    %c0_57 = arith.constant 0 : index
    %c0_58 = arith.constant 0 : index
    %85 = vector.load %arg2[%c9, %c0_57, %c0_58] : memref<12x256x256xbf16, #tpu.memory_space<vmem>>, vector<1x256x256xbf16>
    %86 = vector.shape_cast %85 : vector<1x256x256xbf16> to vector<256x256xbf16>
    %cst_59 = arith.constant dense<0.000000e+00> : vector<8x256xf32>
    %87 = tpu.matmul %84, %86, %cst_59 {dimension_numbers = #tpu.dot_dimension_numbers<[1], [0], [0], [1], [0, 0, 1, 1], [], []>} : vector<8x256xbf16>, vector<256x256xbf16>, vector<8x256xf32> -> vector<8x256xf32>
    %c9_60 = arith.constant 9 : index
    %c0_61 = arith.constant 0 : index
    %88 = vector.load %arg3[%c9_60, %c0_61] : memref<12x256xf32, #tpu.memory_space<vmem>>, vector<1x256xf32>
    %89 = vector.broadcast %88 : vector<1x256xf32> to vector<8x256xf32>
    %90 = arith.addf %87, %89 : vector<8x256xf32>
    %cst_62 = arith.constant 0.000000e+00 : f32
    %91 = vector.broadcast %cst_62 : f32 to vector<8x256xf32>
    %92 = arith.maximumf %90, %91 : vector<8x256xf32>
    %93 = arith.truncf %92 : vector<8x256xf32> to vector<8x256xbf16>
    %c10 = arith.constant 10 : index
    %c0_63 = arith.constant 0 : index
    %c0_64 = arith.constant 0 : index
    %94 = vector.load %arg2[%c10, %c0_63, %c0_64] : memref<12x256x256xbf16, #tpu.memory_space<vmem>>, vector<1x256x256xbf16>
    %95 = vector.shape_cast %94 : vector<1x256x256xbf16> to vector<256x256xbf16>
    %cst_65 = arith.constant dense<0.000000e+00> : vector<8x256xf32>
    %96 = tpu.matmul %93, %95, %cst_65 {dimension_numbers = #tpu.dot_dimension_numbers<[1], [0], [0], [1], [0, 0, 1, 1], [], []>} : vector<8x256xbf16>, vector<256x256xbf16>, vector<8x256xf32> -> vector<8x256xf32>
    %c10_66 = arith.constant 10 : index
    %c0_67 = arith.constant 0 : index
    %97 = vector.load %arg3[%c10_66, %c0_67] : memref<12x256xf32, #tpu.memory_space<vmem>>, vector<1x256xf32>
    %98 = vector.broadcast %97 : vector<1x256xf32> to vector<8x256xf32>
    %99 = arith.addf %96, %98 : vector<8x256xf32>
    %cst_68 = arith.constant 0.000000e+00 : f32
    %100 = vector.broadcast %cst_68 : f32 to vector<8x256xf32>
    %101 = arith.maximumf %99, %100 : vector<8x256xf32>
    %102 = arith.truncf %101 : vector<8x256xf32> to vector<8x256xbf16>
    %c11 = arith.constant 11 : index
    %c0_69 = arith.constant 0 : index
    %c0_70 = arith.constant 0 : index
    %103 = vector.load %arg2[%c11, %c0_69, %c0_70] : memref<12x256x256xbf16, #tpu.memory_space<vmem>>, vector<1x256x256xbf16>
    %104 = vector.shape_cast %103 : vector<1x256x256xbf16> to vector<256x256xbf16>
    %cst_71 = arith.constant dense<0.000000e+00> : vector<8x256xf32>
    %105 = tpu.matmul %102, %104, %cst_71 {dimension_numbers = #tpu.dot_dimension_numbers<[1], [0], [0], [1], [0, 0, 1, 1], [], []>} : vector<8x256xbf16>, vector<256x256xbf16>, vector<8x256xf32> -> vector<8x256xf32>
    %c11_72 = arith.constant 11 : index
    %c0_73 = arith.constant 0 : index
    %106 = vector.load %arg3[%c11_72, %c0_73] : memref<12x256xf32, #tpu.memory_space<vmem>>, vector<1x256xf32>
    %107 = vector.broadcast %106 : vector<1x256xf32> to vector<8x256xf32>
    %108 = arith.addf %105, %107 : vector<8x256xf32>
    %cst_74 = arith.constant 0.000000e+00 : f32
    %109 = vector.broadcast %cst_74 : f32 to vector<8x256xf32>
    %110 = arith.maximumf %108, %109 : vector<8x256xf32>
    %c0_75 = arith.constant 0 : index
    %c0_76 = arith.constant 0 : index
    %111 = vector.load %arg4[%c0_75, %c0_76] : memref<8x256xf32, #tpu.memory_space<vmem>>, vector<8x256xf32>
    tpu.vector_store %arg4[%c0_75, %c0_76], %110 {strides = array<i32>} : memref<8x256xf32, #tpu.memory_space<vmem>>, vector<8x256xf32>,
    return
  }
  func.func @transform_0(%arg0: i32) -> (i32, i32) {
    %c0_i32 = arith.constant 0 : i32
    %c0_i32_0 = arith.constant 0 : i32
    return %arg0, %c0_i32 : i32, i32
  }
  func.func @transform_1(%arg0: i32) -> (i32, i32, i32) {
    %c0_i32 = arith.constant 0 : i32
    %c0_i32_0 = arith.constant 0 : i32
    %c0_i32_1 = arith.constant 0 : i32
    %c0_i32_2 = arith.constant 0 : i32
    return %c0_i32, %c0_i32_0, %c0_i32_1 : i32, i32, i32
  }
  func.func @transform_2(%arg0: i32) -> (i32, i32) {
    %c0_i32 = arith.constant 0 : i32
    %c0_i32_0 = arith.constant 0 : i32
    %c0_i32_1 = arith.constant 0 : i32
    return %c0_i32, %c0_i32_0 : i32, i32
  }
  func.func @transform_3(%arg0: i32) -> (i32, i32) {
    %c0_i32 = arith.constant 0 : i32
    %c0_i32_0 = arith.constant 0 : i32
    return %arg0, %c0_i32 : i32, i32
  }
  func.func @transform_4(%arg0: i32) -> (i32, i32) {
    %c0_i32 = arith.constant 0 : i32
    %c0_i32_0 = arith.constant 0 : i32
    return %arg0, %c0_i32 : i32, i32
  }
}

</mosaic_0001>

<bundles_post_ra>
// kernel: autoencoder_forward.1
= control target key start
LH: loop header
LB: loop body
LE: loop exit
PB: predicated region body
PF: predicated region fallthrough
CT: control target
= control target key end

     0   :  { %10 = vsyncpa [#allocation3], 0  ;;  %s5242_s0 = inlined_call_operand.vmem [shape: f32[8,256], index: 0, kind: input, shape index: {}]   ;;  %s5243_s1 = inlined_call_operand.hbm [shape: bf16[12,256,256], index: 1, kind: input, shape index: {}]   ;;  %s5244_s2 = inlined_call_operand.hbm [shape: f32[12,256], index: 2, kind: input, shape index: {}]   ;;  %s5245_s3 = inlined_call_operand.hbm [shape: f32[8,256], index: 3, kind: output, shape index: {0}]   ;;  %s5246_s4 = inlined_call_operand.hbm [shape: f32[8,128], index: 4, kind: output, shape index: {1}]  }
   0x1   :  { %11 = vsyncpa [#allocation6], 0 }
   0x2   :  { %12 = vsyncpa [#allocation4], 0 }
   0x3   :  { %13 = vsyncpa [#allocation9], 0  ;;  %s20_s17 = sshll.u32 %s5243_s1, 4  ;;  %s5191_s18 = smov [#allocation2]   ;;  %s21_s17 = int_to_ptr.hbm [resolvable:$true] %s20_s17 }
   0x4   :  { %s22_s19 = sshll.u32 %s5191_s18, 4  ;;  %s33_s22 = sshll.u32 %s5244_s2, 4  ;;  %s23_s19 = int_to_ptr.vmem [resolvable:$true] %s22_s19  ;;  %s34_s22 = int_to_ptr.hbm [resolvable:$true] %s33_s22 }
   0x5   :  { %s5192_s23 = smov 128   ;;  %s5193_s24 = smov 8  }
   0x6   :  { %28 = dma.hbm_to_vmem [thread:$0]  %s21_s17, 49152, %s23_s19, [#allocation3], %s5192_s23, %s5192_s23, %s5193_s24  }
   0x7   :  { %s5194_s25 = smov [#allocation5]   ;;  %s5195_s27 = smov 256  }
   0x8   :  { %s35_s26 = sshll.u32 %s5194_s25, 4  ;;  %s5196_s28 = smov 16   ;;  %s36_s26 = int_to_ptr.vmem [resolvable:$true] %s35_s26 }
   0x9   :  { %41 = dma.hbm_to_vmem [thread:$0]  %s34_s22, 512, %s36_s26, [#allocation6], %s5195_s27, %s5195_s27, %s5196_s28  }
   0xa   :  { %5183 = dma.done.wait [#allocation3], 49152  }
   0xb   :  { %5184 = vsyncadd [#allocation3], 4294918144 }
   0xc   :  { %5185 = dma.done.wait [#allocation6], 512  }
   0xd   :  { %5186 = vsyncadd [#allocation6], 4294966784  ;;  %v3217_v0 = vld [vmem:[#allocation2 + $0x70] sm:$0xf]  ;;  %v4710_v1 = vld [vmem:[#allocation2 + $0x74] sm:$0xf0] }
   0xe   :  { %v3281_v2 = vld [vmem:[#allocation2 + $0xf0] sm:$0xf]  ;;  %v3218_v3 = vor.u32 %v4710_v1, %v3217_v0  ;;  %v4726_v4 = vld [vmem:[#allocation2 + $0xf4] sm:$0xf0]  ;;  %v4709_v5 = vld [vmem:[#allocation2 + $0x74] sm:$0xf] }
   0xf   :  { %v3219_v6 = vld [vmem:[#allocation2 + $0x78] sm:$0xf0]  ;;  %v3282_v7 = vor.u32 %v4726_v4, %v3281_v2  ;;  %v4725_v9 = vld [vmem:[#allocation2 + $0xf4] sm:$0xf]  ;;  %v3209_v11 = vld [vmem:[#allocation2 + $0x60] sm:$0xf] }
  0x10   :  { %v3222_v8 = vor.u32 %v4709_v5, %v3219_v6  ;;  %v3283_v10 = vld [vmem:[#allocation2 + $0xf8] sm:$0xf0]  ;;  %252 = vmatpush.bf16.msra.mxu0 %v3218_v3  ;;  %v4708_v13 = vld [vmem:[#allocation2 + $0x64] sm:$0xf0]  ;;  %v3273_v14 = vld [vmem:[#allocation2 + $0xe0] sm:$0xf] }
  0x11   :  { %v3286_v12 = vor.u32 %v4725_v9, %v3283_v10  ;;  %v4724_v15 = vld [vmem:[#allocation2 + $0xe4] sm:$0xf0]  ;;  %265 = vmatpush.bf16.msra.mxu1 %v3282_v7  ;;  %v3210_v16 = vor.u32 %v4708_v13, %v3209_v11  ;;  %v4707_v18 = vld [vmem:[#allocation2 + $0x64] sm:$0xf]  ;;  %v3211_v19 = vld [vmem:[#allocation2 + $0x68] sm:$0xf0] }
  0x12   :  { %278 = vmatpush.bf16.msra.mxu2 %v3222_v8  ;;  %v3274_v17 = vor.u32 %v4724_v15, %v3273_v14  ;;  %v4723_v20 = vld [vmem:[#allocation2 + $0xe4] sm:$0xf]  ;;  %v3214_v21 = vor.u32 %v4707_v18, %v3211_v19  ;;  %v3275_v22 = vld [vmem:[#allocation2 + $0xe8] sm:$0xf0]  ;;  %v3201_v23 = vld [vmem:[#allocation2 + $0x50] sm:$0xf] }
  0x13   :  { %291 = vmatpush.bf16.msra.mxu3 %v3286_v12  ;;  %v4706_v24 = vld [vmem:[#allocation2 + $0x54] sm:$0xf0]  ;;  %v3278_v25 = vor.u32 %v4723_v20, %v3275_v22  ;;  %v3265_v26 = vld [vmem:[#allocation2 + $0xd0] sm:$0xf]  ;;  %v4705_v28 = vld [vmem:[#allocation2 + $0x54] sm:$0xf] }
  0x14   :  { %v4722_v27 = vld [vmem:[#allocation2 + $0xd4] sm:$0xf0]  ;;  %253 = vmatpush.bf16.msra.mxu0 %v3210_v16  ;;  %v3202_v29 = vor.u32 %v4706_v24, %v3201_v23  ;;  %v3203_v30 = vld [vmem:[#allocation2 + $0x58] sm:$0xf0]  ;;  %v4721_v31 = vld [vmem:[#allocation2 + $0xd4] sm:$0xf] }
  0x15   :  { %v3267_v32 = vld [vmem:[#allocation2 + $0xd8] sm:$0xf0]  ;;  %266 = vmatpush.bf16.msra.mxu1 %v3274_v17  ;;  %v3266_v33 = vor.u32 %v4722_v27, %v3265_v26  ;;  %v3206_v34 = vor.u32 %v4705_v28, %v3203_v30  ;;  %v3193_v35 = vld [vmem:[#allocation2 + $0x40] sm:$0xf]  ;;  %v4704_v36 = vld [vmem:[#allocation2 + $0x44] sm:$0xf0] }
  0x16   :  { %279 = vmatpush.bf16.msra.mxu2 %v3214_v21  ;;  %v3257_v37 = vld [vmem:[#allocation2 + $0xc0] sm:$0xf]  ;;  %v3270_v38 = vor.u32 %v4721_v31, %v3267_v32  ;;  %v4720_v39 = vld [vmem:[#allocation2 + $0xc4] sm:$0xf0]  ;;  %v4703_v40 = vld [vmem:[#allocation2 + $0x44] sm:$0xf]  ;;  %v3194_v44 = vor.u32 %v4704_v36, %v3193_v35 }
  0x17   :  { %292 = vmatpush.bf16.msra.mxu3 %v3278_v25  ;;  %v3195_v41 = vld [vmem:[#allocation2 + $0x48] sm:$0xf0]  ;;  %v4719_v42 = vld [vmem:[#allocation2 + $0xc4] sm:$0xf]  ;;  %v3258_v45 = vor.u32 %v4720_v39, %v3257_v37  ;;  %v3185_v47 = vld [vmem:[#allocation2 + $0x30] sm:$0xf] }
  0x18   :  { %v3259_v43 = vld [vmem:[#allocation2 + $0xc8] sm:$0xf0]  ;;  %254 = vmatpush.bf16.msra.mxu0 %v3202_v29  ;;  %v3198_v46 = vor.u32 %v4703_v40, %v3195_v41  ;;  %v4702_v48 = vld [vmem:[#allocation2 + $0x34] sm:$0xf0]  ;;  %v3249_v49 = vld [vmem:[#allocation2 + $0xb0] sm:$0xf] }
  0x19   :  { %267 = vmatpush.bf16.msra.mxu1 %v3266_v33  ;;  %v3262_v50 = vor.u32 %v4719_v42, %v3259_v43  ;;  %v4718_v51 = vld [vmem:[#allocation2 + $0xb4] sm:$0xf0]  ;;  %v4701_v52 = vld [vmem:[#allocation2 + $0x34] sm:$0xf]  ;;  %v3187_v53 = vld [vmem:[#allocation2 + $0x38] sm:$0xf0]  ;;  %v3186_v56 = vor.u32 %v4702_v48, %v3185_v47 }
  0x1a   :  { %280 = vmatpush.bf16.msra.mxu2 %v3206_v34  ;;  %v4717_v54 = vld [vmem:[#allocation2 + $0xb4] sm:$0xf]  ;;  %v3251_v55 = vld [vmem:[#allocation2 + $0xb8] sm:$0xf0]  ;;  %v3250_v57 = vor.u32 %v4718_v51, %v3249_v49  ;;  %v3190_v58 = vor.u32 %v4701_v52, %v3187_v53  ;;  %v3177_v59 = vld [vmem:[#allocation2 + $0x20] sm:$0xf] }
  0x1b   :  { %293 = vmatpush.bf16.msra.mxu3 %v3270_v38  ;;  %v4700_v60 = vld [vmem:[#allocation2 + $0x24] sm:$0xf0]  ;;  %v3241_v61 = vld [vmem:[#allocation2 + $0xa0] sm:$0xf]  ;;  %v3254_v62 = vor.u32 %v4717_v54, %v3251_v55  ;;  %v4699_v0 = vld [vmem:[#allocation2 + $0x24] sm:$0xf] }
  0x1c   :  { %255 = vmatpush.bf16.msra.mxu0 %v3194_v44  ;;  %v4716_v63 = vld [vmem:[#allocation2 + $0xa4] sm:$0xf0]  ;;  %v3179_v1 = vld [vmem:[#allocation2 + $0x28] sm:$0xf0]  ;;  %v4715_v2 = vld [vmem:[#allocation2 + $0xa4] sm:$0xf]  ;;  %v3178_v4 = vor.u32 %v4700_v60, %v3177_v59 }
  0x1d   :  { %268 = vmatpush.bf16.msra.mxu1 %v3258_v45  ;;  %v3243_v3 = vld [vmem:[#allocation2 + $0xa8] sm:$0xf0]  ;;  %v3242_v5 = vor.u32 %v4716_v63, %v3241_v61  ;;  %v3182_v6 = vor.u32 %v4699_v0, %v3179_v1  ;;  %v3169_v7 = vld [vmem:[#allocation2 + $0x10] sm:$0xf]  ;;  %v4698_v8 = vld [vmem:[#allocation2 + $0x14] sm:$0xf0] }
  0x1e   :  { %281 = vmatpush.bf16.msra.mxu2 %v3198_v46  ;;  %v3233_v9 = vld [vmem:[#allocation2 + $0x90] sm:$0xf]  ;;  %v3246_v10 = vor.u32 %v4715_v2, %v3243_v3  ;;  %v4714_v11 = vld [vmem:[#allocation2 + $0x94] sm:$0xf0]  ;;  %v4697_v12 = vld [vmem:[#allocation2 + $0x14] sm:$0xf]  ;;  %v3170_v16 = vor.u32 %v4698_v8, %v3169_v7 }
  0x1f   :  { %294 = vmatpush.bf16.msra.mxu3 %v3262_v50  ;;  %v3171_v13 = vld [vmem:[#allocation2 + $0x18] sm:$0xf0]  ;;  %v4713_v14 = vld [vmem:[#allocation2 + $0x94] sm:$0xf]  ;;  %v3161_v17 = vld [vmem:[#allocation2] sm:$0xf]  ;;  %v3234_v18 = vor.u32 %v4714_v11, %v3233_v9 }
  0x20   :  { %256 = vmatpush.bf16.msra.mxu0 %v3186_v56  ;;  %v3235_v15 = vld [vmem:[#allocation2 + $0x98] sm:$0xf0]  ;;  %v3174_v19 = vor.u32 %v4697_v12, %v3171_v13  ;;  %v4696_v20 = vld [vmem:[#allocation2 + $0x4] sm:$0xf0]  ;;  %v3225_v21 = vld [vmem:[#allocation2 + $0x80] sm:$0xf] }
  0x21   :  { %269 = vmatpush.bf16.msra.mxu1 %v3250_v57  ;;  %v4712_v22 = vld [vmem:[#allocation2 + $0x84] sm:$0xf0]  ;;  %v3238_v23 = vor.u32 %v4713_v14, %v3235_v15  ;;  %v4695_v24 = vld [vmem:[#allocation2 + $0x4] sm:$0xf]  ;;  %v3163_v25 = vld [vmem:[#allocation2 + $0x8] sm:$0xf0]  ;;  %v3162_v30 = vor.u32 %v4696_v20, %v3161_v17 }
  0x22   :  { %282 = vmatpush.bf16.msra.mxu2 %v3190_v58  ;;  %v4711_v26 = vld [vmem:[#allocation2 + $0x84] sm:$0xf]  ;;  %v3227_v27 = vld [vmem:[#allocation2 + $0x88] sm:$0xf0]  ;;  %v3345_v28 = vld [vmem:[#allocation2 + $0x170] sm:$0xf]  ;;  %v3226_v34 = vor.u32 %v4712_v22, %v3225_v21  ;;  %v3166_v35 = vor.u32 %v4695_v24, %v3163_v25 }
  0x23   :  { %295 = vmatpush.bf16.msra.mxu3 %v3254_v62  ;;  %v4742_v29 = vld [vmem:[#allocation2 + $0x174] sm:$0xf0]  ;;  %v50_v31 = vld [vmem:[%s5242_s0] sm:$0xff]  ;;  %v4741_v32 = vld [vmem:[#allocation2 + $0x174] sm:$0xf]  ;;  %v3230_v37 = vor.u32 %v4711_v26, %v3227_v27  ;;  %s3143_s8 = sshll.u32 %s5246_s4, 4  ;;  %s3144_s8 = int_to_ptr.hbm [resolvable:$true] %s3143_s8 }
  0x24   :  { %257 = vmatpush.bf16.msra.mxu0 %v3178_v4  ;;  %v3347_v33 = vld [vmem:[#allocation2 + $0x178] sm:$0xf0]  ;;  %v51_v36 = vld [vmem:[%s5242_s0 + $0x8] sm:$0xff]  ;;  %v3346_v38 = vor.u32 %v4742_v29, %v3345_v28  ;;  %v3337_v39 = vld [vmem:[#allocation2 + $0x160] sm:$0xf]  ;;  %v52_v42 = vpack.c.bf16 %v50_v31, %v50_v31  ;;  %s5197_s0 = smov [#allocation8]  }
  0x25   :  { %270 = vmatpush.bf16.msra.mxu1 %v3242_v5  ;;  %v3409_v40 = vld [vmem:[#allocation2 + $0x1f0] sm:$0xf]  ;;  %v4758_v41 = vld [vmem:[#allocation2 + $0x1f4] sm:$0xf0]  ;;  %v3350_v43 = vor.u32 %v4741_v32, %v3347_v33  ;;  %v4740_v44 = vld [vmem:[#allocation2 + $0x164] sm:$0xf0]  ;;  %v53_v47 = vpack.c.bf16 %v51_v36, %v51_v36 }
  0x26   :  { %283 = vmatpush.bf16.msra.mxu2 %v3182_v6  ;;  %v4757_v45 = vld [vmem:[#allocation2 + $0x1f4] sm:$0xf]  ;;  %v3411_v46 = vld [vmem:[#allocation2 + $0x1f8] sm:$0xf0]  ;;  %v4739_v48 = vld [vmem:[#allocation2 + $0x164] sm:$0xf]  ;;  %v3410_v50 = vor.u32 %v4758_v41, %v3409_v40  ;;  %v3338_v51 = vor.u32 %v4740_v44, %v3337_v39 }
  0x27   :  { %296 = vmatpush.bf16.msra.mxu3 %v3246_v10  ;;  %v3339_v49 = vld [vmem:[#allocation2 + $0x168] sm:$0xf0]  ;;  %v3414_v52 = vor.u32 %v4757_v45, %v3411_v46  ;;  %v3329_v53 = vld [vmem:[#allocation2 + $0x150] sm:$0xf]  ;;  %v3401_v54 = vld [vmem:[#allocation2 + $0x1e0] sm:$0xf] }
  0x28   :  { %258 = vmatpush.bf16.msra.mxu0 %v3170_v16  ;;  %v4756_v55 = vld [vmem:[#allocation2 + $0x1e4] sm:$0xf0]  ;;  %v3342_v56 = vor.u32 %v4739_v48, %v3339_v49  ;;  %v4738_v57 = vld [vmem:[#allocation2 + $0x154] sm:$0xf0]  ;;  %v4755_v58 = vld [vmem:[#allocation2 + $0x1e4] sm:$0xf] }
  0x29   :  { %271 = vmatpush.bf16.msra.mxu1 %v3234_v18  ;;  %v3403_v59 = vld [vmem:[#allocation2 + $0x1e8] sm:$0xf0]  ;;  %v4737_v60 = vld [vmem:[#allocation2 + $0x154] sm:$0xf]  ;;  %v3331_v61 = vld [vmem:[#allocation2 + $0x158] sm:$0xf0]  ;;  %v3402_v62 = vor.u32 %v4756_v55, %v3401_v54  ;;  %v3330_v63 = vor.u32 %v4738_v57, %v3329_v53 }
  0x2a   :  { %284 = vmatpush.bf16.msra.mxu2 %v3174_v19  ;;  %v3406_v0 = vor.u32 %v4755_v58, %v3403_v59  ;;  %v3321_v1 = vld [vmem:[#allocation2 + $0x140] sm:$0xf]  ;;  %v3393_v2 = vld [vmem:[#allocation2 + $0x1d0] sm:$0xf]  ;;  %v4754_v3 = vld [vmem:[#allocation2 + $0x1d4] sm:$0xf0]  ;;  %v3334_v4 = vor.u32 %v4737_v60, %v3331_v61 }
  0x2b   :  { %297 = vmatpush.bf16.msra.mxu3 %v3238_v23  ;;  %v4736_v5 = vld [vmem:[#allocation2 + $0x144] sm:$0xf0]  ;;  %v4753_v6 = vld [vmem:[#allocation2 + $0x1d4] sm:$0xf]  ;;  %v3395_v7 = vld [vmem:[#allocation2 + $0x1d8] sm:$0xf0]  ;;  %v3394_v10 = vor.u32 %v4754_v3, %v3393_v2 }
  0x2c   :  { %259 = vmatpush.bf16.msra.mxu0 %v3162_v30  ;;  %v4735_v8 = vld [vmem:[#allocation2 + $0x144] sm:$0xf]  ;;  %v3323_v9 = vld [vmem:[#allocation2 + $0x148] sm:$0xf0]  ;;  %v3322_v11 = vor.u32 %v4736_v5, %v3321_v1  ;;  %v3398_v12 = vor.u32 %v4753_v6, %v3395_v7  ;;  %v3313_v13 = vld [vmem:[#allocation2 + $0x130] sm:$0xf] }
  0x2d   :  { %272 = vmatpush.bf16.msra.mxu1 %v3226_v34  ;;  %v3385_v14 = vld [vmem:[#allocation2 + $0x1c0] sm:$0xf]  ;;  %v4752_v15 = vld [vmem:[#allocation2 + $0x1c4] sm:$0xf0]  ;;  %v3326_v16 = vor.u32 %v4735_v8, %v3323_v9  ;;  %v4734_v17 = vld [vmem:[#allocation2 + $0x134] sm:$0xf0] }
  0x2e   :  { %285 = vmatpush.bf16.msra.mxu2 %v3166_v35  ;;  %v4751_v18 = vld [vmem:[#allocation2 + $0x1c4] sm:$0xf]  ;;  %v3387_v19 = vld [vmem:[#allocation2 + $0x1c8] sm:$0xf0]  ;;  %v4733_v20 = vld [vmem:[#allocation2 + $0x134] sm:$0xf]  ;;  %v3386_v22 = vor.u32 %v4752_v15, %v3385_v14  ;;  %v3314_v23 = vor.u32 %v4734_v17, %v3313_v13 }
  0x2f   :  { %298 = vmatpush.bf16.msra.mxu3 %v3230_v37  ;;  %260 = vmatmul.bf16.vlgmr.msra.gmra.mxu0 %v52_v42  ;;  %v3315_v21 = vld [vmem:[#allocation2 + $0x138] sm:$0xf0]  ;;  %v3390_v24 = vor.u32 %v4751_v18, %v3387_v19  ;;  %v3305_v26 = vld [vmem:[#allocation2 + $0x120] sm:$0xf]  ;;  %v4732_v27 = vld [vmem:[#allocation2 + $0x124] sm:$0xf0] }
  0x30   :  { %508 = vmatpush.bf16.msrb.mxu0 %v3346_v38  ;;  %273 = vmatmul.bf16.vlgmr.msra.gmra.mxu1 %v53_v47  ;;  %v3318_v25 = vor.u32 %v4733_v20, %v3315_v21  ;;  %v4731_v28 = vld [vmem:[#allocation2 + $0x124] sm:$0xf]  ;;  %v3307_v29 = vld [vmem:[#allocation2 + $0x128] sm:$0xf0]  ;;  %v3306_v30 = vor.u32 %v4732_v27, %v3305_v26  ;;  %v3377_v32 = vld [vmem:[#allocation2 + $0x1b0] sm:$0xf] }
  0x31   :  { %286 = vmatmul.bf16.vlgmr.msra.gmra.mxu2 %v52_v42  ;;  %521 = vmatpush.bf16.msrb.mxu1 %v3410_v50  ;;  %v3310_v31 = vor.u32 %v4731_v28, %v3307_v29  ;;  %v4750_v33 = vld [vmem:[#allocation2 + $0x1b4] sm:$0xf0]  ;;  %v4749_v34 = vld [vmem:[#allocation2 + $0x1b4] sm:$0xf]  ;;  %v3379_v36 = vld [vmem:[#allocation2 + $0x1b8] sm:$0xf0] }
  0x32   :  { %534 = vmatpush.bf16.msrb.mxu2 %v3350_v43  ;;  %299 = vmatmul.bf16.vlgmr.msra.gmra.mxu3 %v53_v47  ;;  %v3378_v35 = vor.u32 %v4750_v33, %v3377_v32  ;;  %v3382_v37 = vor.u32 %v4749_v34, %v3379_v36  ;;  %v3297_v38 = vld [vmem:[#allocation2 + $0x110] sm:$0xf]  ;;  %v4730_v39 = vld [vmem:[#allocation2 + $0x114] sm:$0xf0]  ;;  %v4729_v40 = vld [vmem:[#allocation2 + $0x114] sm:$0xf] }
  0x33   :  { %547 = vmatpush.bf16.msrb.mxu3 %v3414_v52  ;;  %v3298_v41 = vor.u32 %v4730_v39, %v3297_v38  ;;  %v3299_v42 = vld [vmem:[#allocation2 + $0x118] sm:$0xf0]  ;;  %v3369_v44 = vld [vmem:[#allocation2 + $0x1a0] sm:$0xf]  ;;  %v4748_v45 = vld [vmem:[#allocation2 + $0x1a4] sm:$0xf0] }
  0x34   :  { %509 = vmatpush.bf16.msrb.mxu0 %v3338_v51  ;;  %v3302_v43 = vor.u32 %v4729_v40, %v3299_v42  ;;  %v4747_v46 = vld [vmem:[#allocation2 + $0x1a4] sm:$0xf]  ;;  %v3370_v47 = vor.u32 %v4748_v45, %v3369_v44  ;;  %v3371_v48 = vld [vmem:[#allocation2 + $0x1a8] sm:$0xf0]  ;;  %v3289_v50 = vld [vmem:[#allocation2 + $0x100] sm:$0xf] }
  0x35   :  { %522 = vmatpush.bf16.msrb.mxu1 %v3402_v62  ;;  %v3374_v49 = vor.u32 %v4747_v46, %v3371_v48  ;;  %v4728_v51 = vld [vmem:[#allocation2 + $0x104] sm:$0xf0]  ;;  %v4727_v52 = vld [vmem:[#allocation2 + $0x104] sm:$0xf]  ;;  %v3291_v54 = vld [vmem:[#allocation2 + $0x108] sm:$0xf0] }
  0x36   :  { %535 = vmatpush.bf16.msrb.mxu2 %v3342_v56  ;;  %v3290_v53 = vor.u32 %v4728_v51, %v3289_v50  ;;  %v3294_v55 = vor.u32 %v4727_v52, %v3291_v54  ;;  %v3361_v56 = vld [vmem:[#allocation2 + $0x190] sm:$0xf]  ;;  %v4746_v57 = vld [vmem:[#allocation2 + $0x194] sm:$0xf0]  ;;  %v4745_v59 = vld [vmem:[#allocation2 + $0x194] sm:$0xf] }
  0x37   :  { %548 = vmatpush.bf16.msrb.mxu3 %v3406_v0  ;;  %v3362_v58 = vor.u32 %v4746_v57, %v3361_v56  ;;  %v3363_v60 = vld [vmem:[#allocation2 + $0x198] sm:$0xf0]  ;;  %v3353_v62 = vld [vmem:[#allocation2 + $0x180] sm:$0xf]  ;;  %v4743_v0 = vld [vmem:[#allocation2 + $0x184] sm:$0xf] }
  0x38   :  { %510 = vmatpush.bf16.msrb.mxu0 %v3330_v63  ;;  %v3366_v61 = vor.u32 %v4745_v59, %v3363_v60  ;;  %v4744_v63 = vld [vmem:[#allocation2 + $0x184] sm:$0xf0]  ;;  %v3355_v2 = vld [vmem:[#allocation2 + $0x188] sm:$0xf0]  ;;  %v4774_v5 = vld [vmem:[#allocation2 + $0x274] sm:$0xf0] }
  0x39   :  { %523 = vmatpush.bf16.msrb.mxu1 %v3394_v10  ;;  %v3354_v1 = vor.u32 %v4744_v63, %v3353_v62  ;;  %v3358_v3 = vor.u32 %v4743_v0, %v3355_v2  ;;  %v4773_v6 = vld [vmem:[#allocation2 + $0x274] sm:$0xf]  ;;  %v3475_v8 = vld [vmem:[#allocation2 + $0x278] sm:$0xf0]  ;;  %v3465_v9 = vld [vmem:[#allocation2 + $0x260] sm:$0xf] }
  0x3a   :  { %536 = vmatpush.bf16.msrb.mxu2 %v3334_v4  ;;  %v3473_v4 = vld [vmem:[#allocation2 + $0x270] sm:$0xf]  ;;  %v4772_v10 = vld [vmem:[#allocation2 + $0x264] sm:$0xf0]  ;;  %v3467_v13 = vld [vmem:[#allocation2 + $0x268] sm:$0xf0] }
  0x3b   :  { %549 = vmatpush.bf16.msrb.mxu3 %v3398_v12  ;;  %v3474_v7 = vor.u32 %v4774_v5, %v3473_v4  ;;  %v4771_v12 = vld [vmem:[#allocation2 + $0x264] sm:$0xf]  ;;  %v3537_v14 = vld [vmem:[#allocation2 + $0x2f0] sm:$0xf]  ;;  %v3466_v15 = vor.u32 %v4772_v10, %v3465_v9  ;;  %v4789_v17 = vld [vmem:[#allocation2 + $0x2f4] sm:$0xf] }
  0x3c   :  { %511 = vmatpush.bf16.msrb.mxu0 %v3322_v11  ;;  %v3478_v11 = vor.u32 %v4773_v6, %v3475_v8  ;;  %v3539_v18 = vld [vmem:[#allocation2 + $0x2f8] sm:$0xf0]  ;;  %v3470_v19 = vor.u32 %v4771_v12, %v3467_v13  ;;  %v3529_v26 = vld [vmem:[#allocation2 + $0x2e0] sm:$0xf]  ;;  %v4788_v27 = vld [vmem:[#allocation2 + $0x2e4] sm:$0xf0] }
  0x3d   :  { %524 = vmatpush.bf16.msrb.mxu1 %v3386_v22  ;;  %v3542_v21 = vor.u32 %v4789_v17, %v3539_v18  ;;  %v3457_v22 = vld [vmem:[#allocation2 + $0x250] sm:$0xf]  ;;  %v3530_v28 = vor.u32 %v4788_v27, %v3529_v26  ;;  %v4787_v29 = vld [vmem:[#allocation2 + $0x2e4] sm:$0xf]  ;;  %v3449_v33 = vld [vmem:[#allocation2 + $0x240] sm:$0xf] }
  0x3e   :  { %537 = vmatpush.bf16.msrb.mxu2 %v3326_v16  ;;  %v4790_v16 = vld [vmem:[#allocation2 + $0x2f4] sm:$0xf0]  ;;  %v4768_v34 = vld [vmem:[#allocation2 + $0x244] sm:$0xf0]  ;;  %v3521_v36 = vld [vmem:[#allocation2 + $0x2d0] sm:$0xf] }
  0x3f   :  { %550 = vmatpush.bf16.msrb.mxu3 %v3390_v24  ;;  %v3538_v20 = vor.u32 %v4790_v16, %v3537_v14  ;;  %v4769_v24 = vld [vmem:[#allocation2 + $0x254] sm:$0xf]  ;;  %v4767_v39 = vld [vmem:[#allocation2 + $0x244] sm:$0xf]  ;;  %v3451_v40 = vld [vmem:[#allocation2 + $0x248] sm:$0xf0]  ;;  %v3450_v45 = vor.u32 %v4768_v34, %v3449_v33 }
  0x40   :  { %512 = vmatpush.bf16.msrb.mxu0 %v3314_v23  ;;  %v4770_v23 = vld [vmem:[#allocation2 + $0x254] sm:$0xf0]  ;;  %v4785_v38 = vld [vmem:[#allocation2 + $0x2d4] sm:$0xf]  ;;  %v3454_v46 = vor.u32 %v4767_v39, %v3451_v40  ;;  %v3443_v51 = vld [vmem:[#allocation2 + $0x238] sm:$0xf0] }
  0x41   :  { %525 = vmatpush.bf16.msrb.mxu1 %v3378_v35  ;;  %v86_v42 = vld [vmem:[#allocation5] ss:$8 sm:$0x3]  ;;  %v4766_v48 = vld [vmem:[#allocation2 + $0x234] sm:$0xf0]  ;;  %s3141_s5 = sshll.u32 %s5197_s0, 4  ;;  %s3142_s5 = int_to_ptr.vmem [resolvable:$true] %s3141_s5 }
  0x42   :  { %538 = vmatpush.bf16.msrb.mxu2 %v3318_v25  ;;  %v3459_v25 = vld [vmem:[#allocation2 + $0x258] sm:$0xf0]  ;;  %v4765_v50 = vld [vmem:[#allocation2 + $0x234] sm:$0xf]  ;;  %v4784_v8 = vld [vmem:[#allocation2 + $0x2c4] sm:$0xf0] }
  0x43   :  { %551 = vmatpush.bf16.msrb.mxu3 %v3382_v37  ;;  %v3462_v35 = vor.u32 %v4769_v24, %v3459_v25  ;;  %v4786_v37 = vld [vmem:[#allocation2 + $0x2d4] sm:$0xf0]  ;;  %v3446_v54 = vor.u32 %v4765_v50, %v3443_v51  ;;  %v4783_v9 = vld [vmem:[#allocation2 + $0x2c4] sm:$0xf]  ;;  %v3433_v13 = vld [vmem:[#allocation2 + $0x220] sm:$0xf] }
  0x44   :  { %513 = vmatpush.bf16.msrb.mxu0 %v3306_v30  ;;  %v3531_v30 = vld [vmem:[#allocation2 + $0x2e8] sm:$0xf0]  ;;  %v4764_v14 = vld [vmem:[#allocation2 + $0x224] sm:$0xf0]  ;;  %v3505_v18 = vld [vmem:[#allocation2 + $0x2b0] sm:$0xf] }
  0x45   :  { %526 = vmatpush.bf16.msrb.mxu1 %v3370_v47  ;;  %v3534_v32 = vor.u32 %v4787_v29, %v3531_v30  ;;  %v3441_v47 = vld [vmem:[#allocation2 + $0x230] sm:$0xf]  ;;  %v3434_v16 = vor.u32 %v4764_v14, %v3433_v13  ;;  %v3435_v17 = vld [vmem:[#allocation2 + $0x228] sm:$0xf0]  ;;  %v4762_v26 = vld [vmem:[#allocation2 + $0x214] sm:$0xf0] }
  0x46   :  { %539 = vmatpush.bf16.msrb.mxu2 %v3310_v31  ;;  %v3458_v31 = vor.u32 %v4770_v23, %v3457_v22  ;;  %v3442_v52 = vor.u32 %v4766_v48, %v3441_v47  ;;  %v4781_v22 = vld [vmem:[#allocation2 + $0x2b4] sm:$0xf]  ;;  %v3507_v23 = vld [vmem:[#allocation2 + $0x2b8] sm:$0xf0]  ;;  %v3425_v25 = vld [vmem:[#allocation2 + $0x210] sm:$0xf] }
  0x47   :  { %552 = vmatpush.bf16.msrb.mxu3 %v3374_v49  ;;  %v88_v49 = vperm.slane %v86_v42, 0  ;;  %v3510_v24 = vor.u32 %v4781_v22, %v3507_v23  ;;  %v4761_v27 = vld [vmem:[#allocation2 + $0x214] sm:$0xf]  ;;  %v3427_v29 = vld [vmem:[#allocation2 + $0x218] sm:$0xf0]  ;;  %s5198_s9 = smov [#allocation7]  }
  0x48   :  { %514 = vmatpush.bf16.msrb.mxu0 %v3298_v41  ;;  %v3523_v41 = vld [vmem:[#allocation2 + $0x2d8] sm:$0xf0]  ;;  %v3430_v30 = vor.u32 %v4761_v27, %v3427_v29  ;;  %v4779_v33 = vld [vmem:[#allocation2 + $0x2a4] sm:$0xf]  ;;  %v4776_v50 = vld [vmem:[#allocation2 + $0x284] sm:$0xf0] }
  0x49   :  { %527 = vmatpush.bf16.msrb.mxu1 %v3362_v58  ;;  %v3526_v44 = vor.u32 %v4785_v38, %v3523_v41  ;;  %v89_v58 = vperm.slane %v86_v42, 1  ;;  %v4760_v38 = vld [vmem:[#allocation2 + $0x204] sm:$0xf0]  ;;  %v4759_v39 = vld [vmem:[#allocation2 + $0x204] sm:$0xf]  ;;  %s3130_s10 = sshll.u32 %s5198_s9, 4  ;;  %s3131_s10 = int_to_ptr.vmem [resolvable:$true] %s3130_s10 }
  0x4a   :  { %540 = vmatpush.bf16.msrb.mxu2 %v3302_v43  ;;  %v3522_v43 = vor.u32 %v4786_v37, %v3521_v36  ;;  %v3417_v37 = vld [vmem:[#allocation2 + $0x200] sm:$0xf]  ;;  %v3419_v41 = vld [vmem:[#allocation2 + $0x208] sm:$0xf0]  ;;  %v3491_v47 = vld [vmem:[#allocation2 + $0x298] sm:$0xf0] }
  0x4b   :  { %553 = vmatpush.bf16.msrb.mxu3 %v3366_v61  ;;  %v3418_v40 = vor.u32 %v4760_v38, %v3417_v37  ;;  %v3422_v42 = vor.u32 %v4759_v39, %v3419_v41  ;;  %v4775_v51 = vld [vmem:[#allocation2 + $0x284] sm:$0xf]  ;;  %v3657_v13 = vld [vmem:[#allocation2 + $0x3e0] sm:$0xf]  ;;  %v4820_v14 = vld [vmem:[#allocation2 + $0x3e4] sm:$0xf0] }
  0x4c   :  { %515 = vmatpush.bf16.msrb.mxu0 %v3290_v53  ;;  %v4800_v22 = vld [vmem:[#allocation2 + $0x344] sm:$0xf0]  ;;  %v4799_v27 = vld [vmem:[#allocation2 + $0x344] sm:$0xf]  ;;  %v3651_v29 = vld [vmem:[#allocation2 + $0x3d8] sm:$0xf0] }
  0x4d   :  { %528 = vmatpush.bf16.msrb.mxu1 %v3354_v1  ;;  %v4798_v37 = vld [vmem:[#allocation2 + $0x334] sm:$0xf0]  ;;  %v4797_v38 = vld [vmem:[#allocation2 + $0x334] sm:$0xf]  ;;  %v3571_v39 = vld [vmem:[#allocation2 + $0x338] sm:$0xf0] }
  0x4e   :  { %541 = vmatpush.bf16.msrb.mxu2 %v3294_v55  ;;  %s3132_s12 = sshll.u32 %s5245_s3, 4  ;;  %s3133_s12 = int_to_ptr.hbm [resolvable:$true] %s3132_s12 }
  0x4f   :  { %554 = vmatpush.bf16.msrb.mxu3 %v3358_v3 }
  0x50   :  { %764 = vmatpush.bf16.msra.mxu0 %v3474_v7  ;;  %v3513_v7 = vld [vmem:[#allocation2 + $0x2c0] sm:$0xf] }
  0x51   :  { %777 = vmatpush.bf16.msra.mxu1 %v3538_v20  ;;  %v3514_v10 = vor.u32 %v4784_v8, %v3513_v7 }
  0x52   :  { %790 = vmatpush.bf16.msra.mxu2 %v3478_v11  ;;  %v3515_v11 = vld [vmem:[#allocation2 + $0x2c8] sm:$0xf0] }
  0x53   :  { %803 = vmatpush.bf16.msra.mxu3 %v3542_v21  ;;  %v3518_v12 = vor.u32 %v4783_v9, %v3515_v11  ;;  %v3585_v9 = vld [vmem:[#allocation2 + $0x350] sm:$0xf]  ;;  %v4801_v11 = vld [vmem:[#allocation2 + $0x354] sm:$0xf] }
  0x54   :  { %765 = vmatpush.bf16.msra.mxu0 %v3466_v15  ;;  %v4763_v15 = vld [vmem:[#allocation2 + $0x224] sm:$0xf] }
  0x55   :  { %778 = vmatpush.bf16.msra.mxu1 %v3530_v28  ;;  %v3438_v20 = vor.u32 %v4763_v15, %v3435_v17  ;;  %v3426_v28 = vor.u32 %v4762_v26, %v3425_v25  ;;  %v342_v15 = vld [vmem:[#allocation5 + $0x1] ss:$8 sm:$0x3]  ;;  %v4819_v17 = vld [vmem:[#allocation2 + $0x3e4] sm:$0xf] }
  0x56   :  { %791 = vmatpush.bf16.msra.mxu2 %v3470_v19  ;;  %v4782_v19 = vld [vmem:[#allocation2 + $0x2b4] sm:$0xf0]  ;;  %v4817_v26 = vld [vmem:[#allocation2 + $0x3d4] sm:$0xf] }
  0x57   :  { %804 = vmatpush.bf16.msra.mxu3 %v3534_v32  ;;  %v3506_v21 = vor.u32 %v4782_v19, %v3505_v18  ;;  %v4780_v32 = vld [vmem:[#allocation2 + $0x2a4] sm:$0xf0]  ;;  %v3659_v18 = vld [vmem:[#allocation2 + $0x3e8] sm:$0xf0]  ;;  %v4818_v25 = vld [vmem:[#allocation2 + $0x3d4] sm:$0xf0] }
  0x58   :  { %766 = vmatpush.bf16.msra.mxu0 %v3458_v31  ;;  %v3497_v31 = vld [vmem:[#allocation2 + $0x2a0] sm:$0xf] }
  0x59   :  { %779 = vmatpush.bf16.msra.mxu1 %v3522_v43  ;;  %v3498_v34 = vor.u32 %v4780_v32, %v3497_v31  ;;  %v3489_v43 = vld [vmem:[#allocation2 + $0x290] sm:$0xf]  ;;  %v3654_v31 = vor.u32 %v4817_v26, %v3651_v29  ;;  %v344_v32 = vperm.slane %v342_v15, 0  ;;  %v4791_v26 = vld [vmem:[#allocation2 + $0x304] sm:$0xf] }
  0x5a   :  { %792 = vmatpush.bf16.msra.mxu2 %v3462_v35  ;;  %v3499_v35 = vld [vmem:[#allocation2 + $0x2a8] sm:$0xf0] }
  0x5b   :  { %805 = vmatpush.bf16.msra.mxu3 %v3526_v44  ;;  %v3502_v36 = vor.u32 %v4779_v33, %v3499_v35  ;;  %v4778_v44 = vld [vmem:[#allocation2 + $0x294] sm:$0xf0] }
  0x5c   :  { %767 = vmatpush.bf16.msra.mxu0 %v3450_v45  ;;  %v3490_v45 = vor.u32 %v4778_v44, %v3489_v43  ;;  %v345_v43 = vperm.slane %v342_v15, 1 }
  0x5d   :  { %780 = vmatpush.bf16.msra.mxu1 %v3514_v10  ;;  %v4802_v10 = vld [vmem:[#allocation2 + $0x354] sm:$0xf0] }
  0x5e   :  { %793 = vmatpush.bf16.msra.mxu2 %v3454_v46  ;;  %v4777_v46 = vld [vmem:[#allocation2 + $0x294] sm:$0xf]  ;;  %v3586_v19 = vor.u32 %v4802_v10, %v3585_v9  ;;  %v3635_v10 = vld [vmem:[#allocation2 + $0x3b8] sm:$0xf0] }
  0x5f   :  { %806 = vmatpush.bf16.msra.mxu3 %v3518_v12  ;;  %v3494_v48 = vor.u32 %v4777_v46, %v3491_v47  ;;  %v3587_v12 = vld [vmem:[#allocation2 + $0x358] sm:$0xf0]  ;;  %v4813_v9 = vld [vmem:[#allocation2 + $0x3b4] sm:$0xf] }
  0x60   :  { %768 = vmatpush.bf16.msra.mxu0 %v3442_v52  ;;  %v3590_v23 = vor.u32 %v4801_v11, %v3587_v12  ;;  %v3638_v11 = vor.u32 %v4813_v9, %v3635_v10  ;;  %v3553_v12 = vld [vmem:[#allocation2 + $0x310] sm:$0xf] }
  0x61   :  { %781 = vmatpush.bf16.msra.mxu1 %v3506_v21  ;;  %v3577_v21 = vld [vmem:[#allocation2 + $0x340] sm:$0xf]  ;;  %v3777_v10 = vld [vmem:[#allocation2 + $0x4d0] sm:$0xf] }
  0x62   :  { %794 = vmatpush.bf16.msra.mxu2 %v3446_v54 }
  0x63   :  { %807 = vmatpush.bf16.msra.mxu3 %v3510_v24  ;;  %v3649_v24 = vld [vmem:[#allocation2 + $0x3d0] sm:$0xf] }
  0x64   :  { %769 = vmatpush.bf16.msra.mxu0 %v3434_v16  ;;  %v3658_v16 = vor.u32 %v4820_v14, %v3657_v13  ;;  %v4794_v13 = vld [vmem:[#allocation2 + $0x314] sm:$0xf0]  ;;  %v4793_v14 = vld [vmem:[#allocation2 + $0x314] sm:$0xf] }
  0x65   :  { %782 = vmatpush.bf16.msra.mxu1 %v3498_v34  ;;  %v3578_v34 = vor.u32 %v4800_v22, %v3577_v21  ;;  %v3554_v15 = vor.u32 %v4794_v13, %v3553_v12  ;;  %v4811_v21 = vld [vmem:[#allocation2 + $0x3a4] sm:$0xf]  ;;  %v3627_v22 = vld [vmem:[#allocation2 + $0x3a8] sm:$0xf0]  ;;  %v4849_v12 = vld [vmem:[#allocation2 + $0x4d4] sm:$0xf] }
  0x66   :  { %795 = vmatpush.bf16.msra.mxu2 %v3438_v20  ;;  %v3662_v20 = vor.u32 %v4819_v17, %v3659_v18  ;;  %v3625_v18 = vld [vmem:[#allocation2 + $0x3a0] sm:$0xf]  ;;  %v4831_v13 = vld [vmem:[#allocation2 + $0x444] sm:$0xf] }
  0x67   :  { %808 = vmatpush.bf16.msra.mxu3 %v3502_v36  ;;  %v3569_v36 = vld [vmem:[#allocation2 + $0x330] sm:$0xf] }
  0x68   :  { %770 = vmatpush.bf16.msra.mxu0 %v3426_v28  ;;  %v3579_v28 = vld [vmem:[#allocation2 + $0x348] sm:$0xf0]  ;;  %v3570_v41 = vor.u32 %v4798_v37, %v3569_v36  ;;  %v3609_v36 = vld [vmem:[#allocation2 + $0x380] sm:$0xf]  ;;  %v4808_v37 = vld [vmem:[#allocation2 + $0x384] sm:$0xf0] }
  0x69   :  { %783 = vmatpush.bf16.msra.mxu1 %v3490_v45  ;;  %v3582_v35 = vor.u32 %v4799_v27, %v3579_v28  ;;  %v3547_v28 = vld [vmem:[#allocation2 + $0x308] sm:$0xf0] }
  0x6a   :  { %796 = vmatpush.bf16.msra.mxu2 %v3430_v30  ;;  %v3650_v30 = vor.u32 %v4818_v25, %v3649_v24  ;;  %v3545_v24 = vld [vmem:[#allocation2 + $0x300] sm:$0xf]  ;;  %v4792_v25 = vld [vmem:[#allocation2 + $0x304] sm:$0xf0]  ;;  %v3550_v29 = vor.u32 %v4791_v26, %v3547_v28  ;;  %v3699_v26 = vld [vmem:[#allocation2 + $0x438] sm:$0xf0] }
  0x6b   :  { %809 = vmatpush.bf16.msra.mxu3 %v3494_v48  ;;  %v3546_v27 = vor.u32 %v4792_v25, %v3545_v24  ;;  %v4829_v25 = vld [vmem:[#allocation2 + $0x434] sm:$0xf] }
  0x6c   :  { %771 = vmatpush.bf16.msra.mxu0 %v3418_v40  ;;  %v3702_v28 = vor.u32 %v4829_v25, %v3699_v26  ;;  %v4839_v25 = vld [vmem:[#allocation2 + $0x484] sm:$0xf] }
  0x6e   :  { %797 = vmatpush.bf16.msra.mxu2 %v3422_v42  ;;  %v3574_v42 = vor.u32 %v4797_v38, %v3571_v39  ;;  %v4807_v38 = vld [vmem:[#allocation2 + $0x384] sm:$0xf]  ;;  %v3610_v39 = vor.u32 %v4808_v37, %v3609_v36 }
  0xac   :  { %v261_v53 = vpop.f32.mrf.mxu0 }
  0xad   :  { %v262_v55 = vadd.f32 %v261_v53, %v88_v49  ;;  %v274_v56 = vpop.f32.mrf.mxu1  ;;  %v3481_v49 = vld [vmem:[#allocation2 + $0x280] sm:$0xf]  ;;  %v3483_v53 = vld [vmem:[#allocation2 + $0x288] sm:$0xf0] }
  0xae   :  { %v3482_v52 = vor.u32 %v4776_v50, %v3481_v49  ;;  %v3486_v54 = vor.u32 %v4775_v51, %v3483_v53 }
  0xaf   :  { %v275_v57 = vadd.f32 %v274_v56, %v262_v55  ;;  %v3601_v55 = vld [vmem:[#allocation2 + $0x370] sm:$0xf]  ;;  %v4806_v56 = vld [vmem:[#allocation2 + $0x374] sm:$0xf0] }
  0xb0   :  { %784 = vmatpush.bf16.msra.mxu1 %v3482_v52  ;;  %810 = vmatpush.bf16.msra.mxu3 %v3486_v54 }
  0xb1   :  { %v304_v59 = vmax.f32 %v275_v57, 0.0  ;;  %v4805_v57 = vld [vmem:[#allocation2 + $0x374] sm:$0xf] }
  0xb3   :  { %v306_v60 = vpack.c.bf16 %v304_v59, %v304_v59  ;;  %v3603_v59 = vld [vmem:[#allocation2 + $0x378] sm:$0xf0] }
  0xb4   :  { %v287_v61 = vpop.f32.mrf.mxu2  ;;  %v263_v0 = vpop.f32.mrf.mxu0 }
  0xb5   :  { %v288_v62 = vadd.f32 %v287_v61, %v89_v58  ;;  %v300_v63 = vpop.f32.mrf.mxu3  ;;  %v276_v1 = vpop.f32.mrf.mxu1  ;;  %516 = vmatmul.bf16.vlgmr.msrb.gmra.mxu0 %v306_v60  ;;  %542 = vmatmul.bf16.vlgmr.msrb.gmra.mxu2 %v306_v60  ;;  %v3602_v58 = vor.u32 %v4806_v56, %v3601_v55  ;;  %v3593_v60 = vld [vmem:[#allocation2 + $0x360] sm:$0xf]  ;;  %v4804_v61 = vld [vmem:[#allocation2 + $0x364] sm:$0xf0]  ;;  %v3595_v0 = vld [vmem:[#allocation2 + $0x368] sm:$0xf0] }
  0xb6   :  { %v3665_v1 = vld [vmem:[#allocation2 + $0x3f0] sm:$0xf] }
  0xb7   :  { %v301_v2 = vadd.f32 %v300_v63, %v288_v62  ;;  %v3606_v62 = vor.u32 %v4805_v57, %v3603_v59  ;;  %v4803_v63 = vld [vmem:[#allocation2 + $0x364] sm:$0xf]  ;;  %1020 = vmatpush.bf16.msrb.mxu0 %v3602_v58  ;;  %v3641_v58 = vld [vmem:[#allocation2 + $0x3c0] sm:$0xf]  ;;  %v4816_v59 = vld [vmem:[#allocation2 + $0x3c4] sm:$0xf0] }
  0xb9   :  { %v305_v3 = vmax.f32 %v301_v2, 0.0  ;;  %v3594_v2 = vor.u32 %v4804_v61, %v3593_v60  ;;  %1046 = vmatpush.bf16.msrb.mxu2 %v3606_v62  ;;  %v4815_v60 = vld [vmem:[#allocation2 + $0x3c4] sm:$0xf]  ;;  %v3642_v61 = vor.u32 %v4816_v59, %v3641_v58  ;;  %v3643_v62 = vld [vmem:[#allocation2 + $0x3c8] sm:$0xf0] }
  0xbb   :  { %v307_v4 = vpack.c.bf16 %v305_v3, %v305_v3  ;;  %v4822_v3 = vld [vmem:[#allocation2 + $0x3f4] sm:$0xf0]  ;;  %1021 = vmatpush.bf16.msrb.mxu0 %v3594_v2  ;;  %v4795_v2 = vld [vmem:[#allocation2 + $0x324] sm:$0xf] }
  0xbc   :  { %v289_v5 = vpop.f32.mrf.mxu2  ;;  %v3666_v7 = vor.u32 %v4822_v3, %v3665_v1  ;;  %v4796_v1 = vld [vmem:[#allocation2 + $0x324] sm:$0xf0] }
  0xbd   :  { %v302_v6 = vpop.f32.mrf.mxu3  ;;  %529 = vmatmul.bf16.vlgmr.msrb.gmra.mxu1 %v307_v4  ;;  %555 = vmatmul.bf16.vlgmr.msrb.gmra.mxu3 %v307_v4  ;;  %v4821_v4 = vld [vmem:[#allocation2 + $0x3f4] sm:$0xf]  ;;  %v3667_v5 = vld [vmem:[#allocation2 + $0x3f8] sm:$0xf0] }
  0xbe   :  { %v3598_v6 = vor.u32 %v4803_v63, %v3595_v0  ;;  %v3670_v8 = vor.u32 %v4821_v4, %v3667_v5  ;;  %1033 = vmatpush.bf16.msrb.mxu1 %v3666_v7  ;;  %v3646_v63 = vor.u32 %v4815_v60, %v3643_v62  ;;  %v3561_v0 = vld [vmem:[#allocation2 + $0x320] sm:$0xf]  ;;  %v3563_v4 = vld [vmem:[#allocation2 + $0x328] sm:$0xf0]  ;;  %v3633_v5 = vld [vmem:[#allocation2 + $0x3b0] sm:$0xf] }
  0xbf   :  { %1022 = vmatpush.bf16.msrb.mxu0 %v3586_v19  ;;  %v3562_v3 = vor.u32 %v4796_v1, %v3561_v0  ;;  %v3566_v7 = vor.u32 %v4795_v2, %v3563_v4  ;;  %v4812_v19 = vld [vmem:[#allocation2 + $0x3a4] sm:$0xf0]  ;;  %v3713_v60 = vld [vmem:[#allocation2 + $0x450] sm:$0xf]  ;;  %v4833_v62 = vld [vmem:[#allocation2 + $0x454] sm:$0xf] }
  0xc0   :  { %1059 = vmatpush.bf16.msrb.mxu3 %v3670_v8  ;;  %1047 = vmatpush.bf16.msrb.mxu2 %v3598_v6  ;;  %v4814_v6 = vld [vmem:[#allocation2 + $0x3b4] sm:$0xf0]  ;;  %v3785_v0 = vld [vmem:[#allocation2 + $0x4e0] sm:$0xf]  ;;  %v4852_v1 = vld [vmem:[#allocation2 + $0x4e4] sm:$0xf0] }
  0xc1   :  { %v3634_v8 = vor.u32 %v4814_v6, %v3633_v5  ;;  %v3786_v2 = vor.u32 %v4852_v1, %v3785_v0  ;;  %v3787_v4 = vld [vmem:[#allocation2 + $0x4e8] sm:$0xf0]  ;;  %v4826_v0 = vld [vmem:[#allocation2 + $0x414] sm:$0xf0]  ;;  %v4825_v1 = vld [vmem:[#allocation2 + $0x414] sm:$0xf] }
  0xc2   :  { %1034 = vmatpush.bf16.msrb.mxu1 %v3658_v16  ;;  %v3555_v16 = vld [vmem:[#allocation2 + $0x318] sm:$0xf0] }
  0xc3   :  { %1023 = vmatpush.bf16.msrb.mxu0 %v3578_v34  ;;  %v3558_v17 = vor.u32 %v4793_v14, %v3555_v16  ;;  %v3619_v34 = vld [vmem:[#allocation2 + $0x398] sm:$0xf0]  ;;  %v3707_v14 = vld [vmem:[#allocation2 + $0x448] sm:$0xf0] }
  0xc4   :  { %1060 = vmatpush.bf16.msrb.mxu3 %v3662_v20  ;;  %1048 = vmatpush.bf16.msrb.mxu2 %v3590_v23  ;;  %v3626_v20 = vor.u32 %v4812_v19, %v3625_v18  ;;  %v3630_v23 = vor.u32 %v4811_v21, %v3627_v22  ;;  %v598_v16 = vld [vmem:[#allocation5 + $0x2] ss:$8 sm:$0x3]  ;;  %v3710_v21 = vor.u32 %v4831_v13, %v3707_v14  ;;  %v3697_v22 = vld [vmem:[#allocation2 + $0x430] sm:$0xf] }
  0xc5   :  { %v600_v24 = vperm.slane %v598_v16, 0  ;;  %v4823_v13 = vld [vmem:[#allocation2 + $0x404] sm:$0xf] }
  0xc6   :  { %1035 = vmatpush.bf16.msrb.mxu1 %v3650_v30  ;;  %v3617_v30 = vld [vmem:[#allocation2 + $0x390] sm:$0xf] }
  0xc7   :  { %1024 = vmatpush.bf16.msrb.mxu0 %v3570_v41 }
  0xc8   :  { %1061 = vmatpush.bf16.msrb.mxu3 %v3654_v31  ;;  %1049 = vmatpush.bf16.msrb.mxu2 %v3582_v35  ;;  %v4810_v31 = vld [vmem:[#allocation2 + $0x394] sm:$0xf0] }
  0xca   :  { %1036 = vmatpush.bf16.msrb.mxu1 %v3642_v61  ;;  %v4834_v61 = vld [vmem:[#allocation2 + $0x454] sm:$0xf0] }
  0xcb   :  { %1025 = vmatpush.bf16.msrb.mxu0 %v3562_v3  ;;  %v4851_v3 = vld [vmem:[#allocation2 + $0x4e4] sm:$0xf]  ;;  %v3714_v5 = vor.u32 %v4834_v61, %v3713_v60  ;;  %v4845_v60 = vld [vmem:[#allocation2 + $0x4b4] sm:$0xf]  ;;  %v3763_v61 = vld [vmem:[#allocation2 + $0x4b8] sm:$0xf0] }
  0xcc   :  { %1050 = vmatpush.bf16.msrb.mxu2 %v3574_v42  ;;  %1062 = vmatpush.bf16.msrb.mxu3 %v3646_v63  ;;  %v3729_v42 = vld [vmem:[#allocation2 + $0x470] sm:$0xf]  ;;  %v3715_v63 = vld [vmem:[#allocation2 + $0x458] sm:$0xf0]  ;;  %v3790_v6 = vor.u32 %v4851_v3, %v3787_v4 }
  0xcd   :  { %v3718_v9 = vor.u32 %v4833_v62, %v3715_v63  ;;  %v3766_v62 = vor.u32 %v4845_v60, %v3763_v61  ;;  %v3681_v63 = vld [vmem:[#allocation2 + $0x410] sm:$0xf]  ;;  %v3683_v3 = vld [vmem:[#allocation2 + $0x418] sm:$0xf0] }
  0xce   :  { %1037 = vmatpush.bf16.msrb.mxu1 %v3634_v8  ;;  %v4832_v8 = vld [vmem:[#allocation2 + $0x444] sm:$0xf0]  ;;  %v3686_v4 = vor.u32 %v4825_v1, %v3683_v3  ;;  %v3905_v61 = vld [vmem:[#allocation2 + $0x5d0] sm:$0xf]  ;;  %v3835_v1 = vld [vmem:[#allocation2 + $0x548] sm:$0xf0] }
  0xcf   :  { %1026 = vmatpush.bf16.msrb.mxu0 %v3554_v15  ;;  %v3779_v15 = vld [vmem:[#allocation2 + $0x4d8] sm:$0xf0]  ;;  %v854_v3 = vld [vmem:[#allocation5 + $0x3] ss:$8 sm:$0x3] }
  0xd0   :  { %1051 = vmatpush.bf16.msrb.mxu2 %v3566_v7  ;;  %1063 = vmatpush.bf16.msrb.mxu3 %v3638_v11  ;;  %v3705_v7 = vld [vmem:[#allocation2 + $0x440] sm:$0xf]  ;;  %v4850_v11 = vld [vmem:[#allocation2 + $0x4d4] sm:$0xf0]  ;;  %v3782_v18 = vor.u32 %v4849_v12, %v3779_v15  ;;  %v4824_v12 = vld [vmem:[#allocation2 + $0x404] sm:$0xf0] }
  0xd1   :  { %v3706_v19 = vor.u32 %v4832_v8, %v3705_v7  ;;  %v4843_v8 = vld [vmem:[#allocation2 + $0x4a4] sm:$0xf]  ;;  %v3675_v15 = vld [vmem:[#allocation2 + $0x408] sm:$0xf0] }
  0xd2   :  { %1038 = vmatpush.bf16.msrb.mxu1 %v3626_v20 }
  0xd3   :  { %1027 = vmatpush.bf16.msrb.mxu0 %v3546_v27 }
  0xd4   :  { %1052 = vmatpush.bf16.msrb.mxu2 %v3558_v17  ;;  %1064 = vmatpush.bf16.msrb.mxu3 %v3630_v23  ;;  %v3778_v17 = vor.u32 %v4850_v11, %v3777_v10  ;;  %v4830_v23 = vld [vmem:[#allocation2 + $0x434] sm:$0xf0]  ;;  %v3673_v11 = vld [vmem:[#allocation2 + $0x400] sm:$0xf] }
  0xd5   :  { %v3698_v27 = vor.u32 %v4830_v23, %v3697_v22  ;;  %v3674_v14 = vor.u32 %v4824_v12, %v3673_v11  ;;  %v3737_v23 = vld [vmem:[#allocation2 + $0x480] sm:$0xf]  ;;  %v856_v11 = vperm.slane %v854_v3, 0  ;;  %v4861_v12 = vld [vmem:[#allocation2 + $0x534] sm:$0xf] }
  0xd8   :  { %1053 = vmatpush.bf16.msrb.mxu2 %v3550_v29 }
 0x132   :  { %v517_v33 = vpop.f32.mrf.mxu0 }
 0x133   :  { %v518_v40 = vadd.f32 %v517_v33, %v344_v32  ;;  %v4809_v32 = vld [vmem:[#allocation2 + $0x394] sm:$0xf]  ;;  %v3618_v33 = vor.u32 %v4810_v31, %v3617_v30 }
 0x134   :  { %v3622_v35 = vor.u32 %v4809_v32, %v3619_v34 }
 0x135   :  { %1039 = vmatpush.bf16.msrb.mxu1 %v3618_v33  ;;  %v601_v33 = vperm.slane %v598_v16, 1  ;;  %v3678_v16 = vor.u32 %v4823_v13, %v3675_v15  ;;  %v3827_v13 = vld [vmem:[#allocation2 + $0x538] sm:$0xf0] }
 0x136   :  { %1065 = vmatpush.bf16.msrb.mxu3 %v3622_v35  ;;  %v3830_v15 = vor.u32 %v4861_v12, %v3827_v13  ;;  %v4871_v12 = vld [vmem:[#allocation2 + $0x584] sm:$0xf] }
 0x138   :  { %v543_v44 = vpop.f32.mrf.mxu2 }
 0x139   :  { %v544_v49 = vadd.f32 %v543_v44, %v345_v43  ;;  %1040 = vmatpush.bf16.msrb.mxu1 %v3610_v39  ;;  %v4838_v43 = vld [vmem:[#allocation2 + $0x474] sm:$0xf0]  ;;  %v4837_v44 = vld [vmem:[#allocation2 + $0x474] sm:$0xf] }
 0x13a   :  { %v530_v45 = vpop.f32.mrf.mxu1  ;;  %v519_v47 = vpop.f32.mrf.mxu0 }
 0x13b   :  { %v531_v46 = vadd.f32 %v530_v45, %v518_v40  ;;  %v3611_v40 = vld [vmem:[#allocation2 + $0x388] sm:$0xf0]  ;;  %v3730_v45 = vor.u32 %v4838_v43, %v3729_v42  ;;  %v3721_v47 = vld [vmem:[#allocation2 + $0x460] sm:$0xf] }
 0x13c   :  { %v3614_v41 = vor.u32 %v4807_v38, %v3611_v40 }
 0x13d   :  { %v560_v48 = vmax.f32 %v531_v46, 0.0  ;;  %v3731_v46 = vld [vmem:[#allocation2 + $0x478] sm:$0xf0] }
 0x13e   :  { %1066 = vmatpush.bf16.msrb.mxu3 %v3614_v41 }
 0x13f   :  { %v562_v50 = vpack.c.bf16 %v560_v48, %v560_v48  ;;  %v4836_v48 = vld [vmem:[#allocation2 + $0x464] sm:$0xf0] }
 0x140   :  { %v556_v51 = vpop.f32.mrf.mxu3  ;;  %v545_v53 = vpop.f32.mrf.mxu2 }
 0x141   :  { %v557_v52 = vadd.f32 %v556_v51, %v544_v49  ;;  %772 = vmatmul.bf16.vlgmr.msra.gmra.mxu0 %v562_v50  ;;  %798 = vmatmul.bf16.vlgmr.msra.gmra.mxu2 %v562_v50  ;;  %v3734_v49 = vor.u32 %v4837_v44, %v3731_v46  ;;  %v4835_v50 = vld [vmem:[#allocation2 + $0x464] sm:$0xf]  ;;  %v3723_v51 = vld [vmem:[#allocation2 + $0x468] sm:$0xf0]  ;;  %v3722_v53 = vor.u32 %v4836_v48, %v3721_v47  ;;  %v4848_v46 = vld [vmem:[#allocation2 + $0x4c4] sm:$0xf0] }
 0x142   :  { %v532_v54 = vpop.f32.mrf.mxu1  ;;  %1276 = vmatpush.bf16.msra.mxu0 %v3730_v45  ;;  %v3769_v45 = vld [vmem:[#allocation2 + $0x4c0] sm:$0xf]  ;;  %v4847_v47 = vld [vmem:[#allocation2 + $0x4c4] sm:$0xf] }
 0x143   :  { %v561_v55 = vmax.f32 %v557_v52, 0.0  ;;  %v3793_v52 = vld [vmem:[#allocation2 + $0x4f0] sm:$0xf]  ;;  %v4854_v54 = vld [vmem:[#allocation2 + $0x4f4] sm:$0xf0]  ;;  %1302 = vmatpush.bf16.msra.mxu2 %v3734_v49  ;;  %v3770_v48 = vor.u32 %v4848_v46, %v3769_v45 }
 0x144   :  { %v3794_v58 = vor.u32 %v4854_v54, %v3793_v52  ;;  %v3771_v49 = vld [vmem:[#allocation2 + $0x4c8] sm:$0xf0]  ;;  %v4828_v52 = vld [vmem:[#allocation2 + $0x424] sm:$0xf0] }
 0x145   :  { %v563_v56 = vpack.c.bf16 %v561_v55, %v561_v55  ;;  %v4853_v55 = vld [vmem:[#allocation2 + $0x4f4] sm:$0xf] }
 0x146   :  { %1277 = vmatpush.bf16.msra.mxu0 %v3722_v53  ;;  %v4827_v53 = vld [vmem:[#allocation2 + $0x424] sm:$0xf] }
 0x147   :  { %785 = vmatmul.bf16.vlgmr.msra.gmra.mxu1 %v563_v56  ;;  %811 = vmatmul.bf16.vlgmr.msra.gmra.mxu3 %v563_v56  ;;  %v3795_v56 = vld [vmem:[#allocation2 + $0x4f8] sm:$0xf0] }
 0x148   :  { %v558_v57 = vpop.f32.mrf.mxu3  ;;  %v3798_v59 = vor.u32 %v4853_v55, %v3795_v56  ;;  %1289 = vmatpush.bf16.msra.mxu1 %v3794_v58  ;;  %v3691_v55 = vld [vmem:[#allocation2 + $0x428] sm:$0xf0]  ;;  %v3761_v56 = vld [vmem:[#allocation2 + $0x4b0] sm:$0xf] }
 0x149   :  { %v3726_v57 = vor.u32 %v4835_v50, %v3723_v51  ;;  %v3774_v50 = vor.u32 %v4847_v47, %v3771_v49  ;;  %v3689_v51 = vld [vmem:[#allocation2 + $0x420] sm:$0xf]  ;;  %v3694_v58 = vor.u32 %v4827_v53, %v3691_v55  ;;  %v3841_v47 = vld [vmem:[#allocation2 + $0x550] sm:$0xf]  ;;  %v4865_v49 = vld [vmem:[#allocation2 + $0x554] sm:$0xf] }
 0x14a   :  { %1315 = vmatpush.bf16.msra.mxu3 %v3798_v59  ;;  %1278 = vmatpush.bf16.msra.mxu0 %v3714_v5  ;;  %v3690_v54 = vor.u32 %v4828_v52, %v3689_v51  ;;  %v3753_v5 = vld [vmem:[#allocation2 + $0x4a0] sm:$0xf]  ;;  %v4884_v52 = vld [vmem:[#allocation2 + $0x5e4] sm:$0xf0]  ;;  %v3915_v55 = vld [vmem:[#allocation2 + $0x5e8] sm:$0xf0] }
 0x14b   :  { %1303 = vmatpush.bf16.msra.mxu2 %v3726_v57  ;;  %v4846_v57 = vld [vmem:[#allocation2 + $0x4b4] sm:$0xf0]  ;;  %v3913_v51 = vld [vmem:[#allocation2 + $0x5e0] sm:$0xf] }
 0x14c   :  { %1290 = vmatpush.bf16.msra.mxu1 %v3786_v2  ;;  %v3762_v59 = vor.u32 %v4846_v57, %v3761_v56  ;;  %v3682_v2 = vor.u32 %v4826_v0, %v3681_v63  ;;  %v3914_v53 = vor.u32 %v4884_v52, %v3913_v51  ;;  %v4881_v63 = vld [vmem:[#allocation2 + $0x5d4] sm:$0xf]  ;;  %v4863_v0 = vld [vmem:[#allocation2 + $0x544] sm:$0xf]  ;;  %v4858_v51 = vld [vmem:[#allocation2 + $0x514] sm:$0xf0] }
 0x14d   :  { %v4857_v52 = vld [vmem:[#allocation2 + $0x514] sm:$0xf] }
 0x14e   :  { %1316 = vmatpush.bf16.msra.mxu3 %v3790_v6  ;;  %1279 = vmatpush.bf16.msra.mxu0 %v3706_v19  ;;  %v4844_v6 = vld [vmem:[#allocation2 + $0x4a4] sm:$0xf0]  ;;  %v4841_v19 = vld [vmem:[#allocation2 + $0x494] sm:$0xf] }
 0x14f   :  { %1304 = vmatpush.bf16.msra.mxu2 %v3718_v9  ;;  %v3754_v7 = vor.u32 %v4844_v6, %v3753_v5  ;;  %v3755_v9 = vld [vmem:[#allocation2 + $0x4a8] sm:$0xf0] }
 0x150   :  { %1291 = vmatpush.bf16.msra.mxu1 %v3778_v17  ;;  %v3758_v10 = vor.u32 %v4843_v8, %v3755_v9  ;;  %v3745_v17 = vld [vmem:[#allocation2 + $0x490] sm:$0xf]  ;;  %v3838_v8 = vor.u32 %v4863_v0, %v3835_v1  ;;  %v4855_v0 = vld [vmem:[#allocation2 + $0x504] sm:$0xf] }
 0x151   :  { %v3825_v9 = vld [vmem:[#allocation2 + $0x530] sm:$0xf] }
 0x152   :  { %1317 = vmatpush.bf16.msra.mxu3 %v3782_v18  ;;  %1280 = vmatpush.bf16.msra.mxu0 %v3698_v27  ;;  %v4842_v18 = vld [vmem:[#allocation2 + $0x494] sm:$0xf0]  ;;  %v3739_v27 = vld [vmem:[#allocation2 + $0x488] sm:$0xf0] }
 0x153   :  { %1305 = vmatpush.bf16.msra.mxu2 %v3710_v21  ;;  %v3747_v21 = vld [vmem:[#allocation2 + $0x498] sm:$0xf0] }
 0x154   :  { %1292 = vmatpush.bf16.msra.mxu1 %v3770_v48  ;;  %v3750_v22 = vor.u32 %v4841_v19, %v3747_v21  ;;  %v4866_v48 = vld [vmem:[#allocation2 + $0x554] sm:$0xf0] }
 0x155   :  { %v3842_v56 = vor.u32 %v4866_v48, %v3841_v47  ;;  %v4877_v47 = vld [vmem:[#allocation2 + $0x5b4] sm:$0xf]  ;;  %v3891_v48 = vld [vmem:[#allocation2 + $0x5b8] sm:$0xf0] }
 0x156   :  { %1318 = vmatpush.bf16.msra.mxu3 %v3774_v50  ;;  %1281 = vmatpush.bf16.msra.mxu0 %v3690_v54  ;;  %v3843_v50 = vld [vmem:[#allocation2 + $0x558] sm:$0xf0]  ;;  %v4883_v54 = vld [vmem:[#allocation2 + $0x5e4] sm:$0xf] }
 0x157   :  { %1306 = vmatpush.bf16.msra.mxu2 %v3702_v28  ;;  %v3742_v28 = vor.u32 %v4839_v25, %v3739_v27  ;;  %v3918_v57 = vor.u32 %v4883_v54, %v3915_v55  ;;  %v3846_v60 = vor.u32 %v4865_v49, %v3843_v50  ;;  %v3894_v49 = vor.u32 %v4877_v47, %v3891_v48  ;;  %v3809_v50 = vld [vmem:[#allocation2 + $0x510] sm:$0xf]  ;;  %v3811_v54 = vld [vmem:[#allocation2 + $0x518] sm:$0xf0] }
 0x158   :  { %1293 = vmatpush.bf16.msra.mxu1 %v3762_v59  ;;  %v4864_v59 = vld [vmem:[#allocation2 + $0x544] sm:$0xf0]  ;;  %v3814_v55 = vor.u32 %v4857_v52, %v3811_v54  ;;  %v4033_v48 = vld [vmem:[#allocation2 + $0x6d0] sm:$0xf]  ;;  %v3963_v52 = vld [vmem:[#allocation2 + $0x648] sm:$0xf0] }
 0x159   :  { %v1110_v54 = vld [vmem:[#allocation5 + $0x4] ss:$8 sm:$0x3] }
 0x15a   :  { %1319 = vmatpush.bf16.msra.mxu3 %v3766_v62  ;;  %1282 = vmatpush.bf16.msra.mxu0 %v3682_v2  ;;  %v4882_v62 = vld [vmem:[#allocation2 + $0x5d4] sm:$0xf0]  ;;  %v3907_v2 = vld [vmem:[#allocation2 + $0x5d8] sm:$0xf0] }
 0x15b   :  { %1307 = vmatpush.bf16.msra.mxu2 %v3694_v58  ;;  %v3833_v58 = vld [vmem:[#allocation2 + $0x540] sm:$0xf]  ;;  %v3910_v5 = vor.u32 %v4881_v63, %v3907_v2  ;;  %v4856_v63 = vld [vmem:[#allocation2 + $0x504] sm:$0xf0]  ;;  %v3803_v2 = vld [vmem:[#allocation2 + $0x508] sm:$0xf0] }
 0x15c   :  { %1294 = vmatpush.bf16.msra.mxu1 %v3754_v7  ;;  %v3834_v6 = vor.u32 %v4864_v59, %v3833_v58  ;;  %v4875_v59 = vld [vmem:[#allocation2 + $0x5a4] sm:$0xf] }
 0x15e   :  { %1320 = vmatpush.bf16.msra.mxu3 %v3758_v10  ;;  %1283 = vmatpush.bf16.msra.mxu0 %v3674_v14  ;;  %v4862_v10 = vld [vmem:[#allocation2 + $0x534] sm:$0xf0] }
 0x15f   :  { %1308 = vmatpush.bf16.msra.mxu2 %v3686_v4  ;;  %v3906_v4 = vor.u32 %v4882_v62, %v3905_v61  ;;  %v3826_v14 = vor.u32 %v4862_v10, %v3825_v9  ;;  %v3801_v62 = vld [vmem:[#allocation2 + $0x500] sm:$0xf] }
 0x160   :  { %v3802_v1 = vor.u32 %v4856_v63, %v3801_v62  ;;  %v3865_v10 = vld [vmem:[#allocation2 + $0x580] sm:$0xf]  ;;  %v1112_v62 = vperm.slane %v1110_v54, 0  ;;  %v4893_v63 = vld [vmem:[#allocation2 + $0x634] sm:$0xf] }
 0x162   :  { %1321 = vmatpush.bf16.msra.mxu3 %v3750_v22 }
 0x163   :  { %1309 = vmatpush.bf16.msra.mxu2 %v3678_v16 }
 0x166   :  { %1322 = vmatpush.bf16.msra.mxu3 %v3742_v28 }
 0x1be   :  { %v773_v20 = vpop.f32.mrf.mxu0 }
 0x1bf   :  { %v774_v29 = vadd.f32 %v773_v20, %v600_v24  ;;  %v3746_v20 = vor.u32 %v4842_v18, %v3745_v17  ;;  %v4840_v24 = vld [vmem:[#allocation2 + $0x484] sm:$0xf0] }
 0x1c0   :  { %v3738_v26 = vor.u32 %v4840_v24, %v3737_v23 }
 0x1c1   :  { %1295 = vmatpush.bf16.msra.mxu1 %v3746_v20  ;;  %v857_v20 = vperm.slane %v854_v3, 1  ;;  %v3806_v3 = vor.u32 %v4855_v0, %v3803_v2  ;;  %v3955_v0 = vld [vmem:[#allocation2 + $0x638] sm:$0xf0] }
 0x1c2   :  { %v3958_v2 = vor.u32 %v4893_v63, %v3955_v0  ;;  %v4903_v63 = vld [vmem:[#allocation2 + $0x684] sm:$0xf] }
 0x1c4   :  { %v786_v30 = vpop.f32.mrf.mxu1  ;;  %v799_v31 = vpop.f32.mrf.mxu2 }
 0x1c5   :  { %v787_v32 = vadd.f32 %v786_v30, %v774_v29  ;;  %v800_v37 = vadd.f32 %v799_v31, %v601_v33  ;;  %1296 = vmatpush.bf16.msra.mxu1 %v3738_v26  ;;  %v3857_v29 = vld [vmem:[#allocation2 + $0x570] sm:$0xf]  ;;  %v4870_v30 = vld [vmem:[#allocation2 + $0x574] sm:$0xf0]  ;;  %v4869_v31 = vld [vmem:[#allocation2 + $0x574] sm:$0xf] }
 0x1c6   :  { %v775_v34 = vpop.f32.mrf.mxu0  ;;  %v3859_v33 = vld [vmem:[#allocation2 + $0x578] sm:$0xf0] }
 0x1c7   :  { %v816_v35 = vmax.f32 %v787_v32, 0.0  ;;  %v3858_v32 = vor.u32 %v4870_v30, %v3857_v29  ;;  %v3849_v34 = vld [vmem:[#allocation2 + $0x560] sm:$0xf] }
 0x1c9   :  { %v818_v36 = vpack.c.bf16 %v816_v35, %v816_v35  ;;  %v4868_v35 = vld [vmem:[#allocation2 + $0x564] sm:$0xf0] }
 0x1ca   :  { %v812_v38 = vpop.f32.mrf.mxu3 }
 0x1cb   :  { %v813_v39 = vadd.f32 %v812_v38, %v800_v37  ;;  %1028 = vmatmul.bf16.vlgmr.msrb.gmra.mxu0 %v818_v36  ;;  %1054 = vmatmul.bf16.vlgmr.msrb.gmra.mxu2 %v818_v36  ;;  %v3862_v36 = vor.u32 %v4869_v31, %v3859_v33  ;;  %v4867_v37 = vld [vmem:[#allocation2 + $0x564] sm:$0xf]  ;;  %v3851_v38 = vld [vmem:[#allocation2 + $0x568] sm:$0xf0]  ;;  %v4880_v33 = vld [vmem:[#allocation2 + $0x5c4] sm:$0xf0] }
 0x1cc   :  { %v788_v40 = vpop.f32.mrf.mxu1  ;;  %v801_v41 = vpop.f32.mrf.mxu2  ;;  %1532 = vmatpush.bf16.msrb.mxu0 %v3858_v32  ;;  %v3897_v32 = vld [vmem:[#allocation2 + $0x5c0] sm:$0xf] }
 0x1cd   :  { %v817_v42 = vmax.f32 %v813_v39, 0.0  ;;  %v3921_v39 = vld [vmem:[#allocation2 + $0x5f0] sm:$0xf]  ;;  %v3850_v40 = vor.u32 %v4868_v35, %v3849_v34  ;;  %v4886_v41 = vld [vmem:[#allocation2 + $0x5f4] sm:$0xf0]  ;;  %1558 = vmatpush.bf16.msrb.mxu2 %v3862_v36  ;;  %v3898_v35 = vor.u32 %v4880_v33, %v3897_v32 }
 0x1ce   :  { %v3922_v45 = vor.u32 %v4886_v41, %v3921_v39  ;;  %v4879_v34 = vld [vmem:[#allocation2 + $0x5c4] sm:$0xf]  ;;  %v3899_v36 = vld [vmem:[#allocation2 + $0x5c8] sm:$0xf0]  ;;  %v4860_v39 = vld [vmem:[#allocation2 + $0x524] sm:$0xf0] }
 0x1cf   :  { %v819_v43 = vpack.c.bf16 %v817_v42, %v817_v42  ;;  %v4885_v42 = vld [vmem:[#allocation2 + $0x5f4] sm:$0xf] }
 0x1d0   :  { %1533 = vmatpush.bf16.msrb.mxu0 %v3850_v40  ;;  %v4859_v40 = vld [vmem:[#allocation2 + $0x524] sm:$0xf] }
 0x1d1   :  { %1041 = vmatmul.bf16.vlgmr.msrb.gmra.mxu1 %v819_v43  ;;  %1067 = vmatmul.bf16.vlgmr.msrb.gmra.mxu3 %v819_v43  ;;  %v3923_v43 = vld [vmem:[#allocation2 + $0x5f8] sm:$0xf0] }
 0x1d2   :  { %v814_v44 = vpop.f32.mrf.mxu3  ;;  %v3926_v46 = vor.u32 %v4885_v42, %v3923_v43  ;;  %1545 = vmatpush.bf16.msrb.mxu1 %v3922_v45  ;;  %v3819_v42 = vld [vmem:[#allocation2 + $0x528] sm:$0xf0]  ;;  %v3889_v43 = vld [vmem:[#allocation2 + $0x5b0] sm:$0xf] }
 0x1d3   :  { %v3854_v44 = vor.u32 %v4867_v37, %v3851_v38  ;;  %v3902_v37 = vor.u32 %v4879_v34, %v3899_v36  ;;  %v3817_v38 = vld [vmem:[#allocation2 + $0x520] sm:$0xf]  ;;  %v3822_v45 = vor.u32 %v4859_v40, %v3819_v42  ;;  %v3969_v34 = vld [vmem:[#allocation2 + $0x650] sm:$0xf]  ;;  %v4897_v36 = vld [vmem:[#allocation2 + $0x654] sm:$0xf] }
 0x1d4   :  { %1571 = vmatpush.bf16.msrb.mxu3 %v3926_v46  ;;  %1534 = vmatpush.bf16.msrb.mxu0 %v3842_v56  ;;  %v3818_v41 = vor.u32 %v4860_v39, %v3817_v38  ;;  %v3881_v56 = vld [vmem:[#allocation2 + $0x5a0] sm:$0xf]  ;;  %v4916_v39 = vld [vmem:[#allocation2 + $0x6e4] sm:$0xf0]  ;;  %v4043_v42 = vld [vmem:[#allocation2 + $0x6e8] sm:$0xf0] }
 0x1d5   :  { %1559 = vmatpush.bf16.msrb.mxu2 %v3854_v44  ;;  %v4878_v44 = vld [vmem:[#allocation2 + $0x5b4] sm:$0xf0]  ;;  %v4041_v38 = vld [vmem:[#allocation2 + $0x6e0] sm:$0xf] }
 0x1d6   :  { %1546 = vmatpush.bf16.msrb.mxu1 %v3914_v53  ;;  %v3890_v46 = vor.u32 %v4878_v44, %v3889_v43  ;;  %v3810_v53 = vor.u32 %v4858_v51, %v3809_v50  ;;  %v4042_v40 = vor.u32 %v4916_v39, %v4041_v38  ;;  %v4913_v50 = vld [vmem:[#allocation2 + $0x6d4] sm:$0xf]  ;;  %v4895_v51 = vld [vmem:[#allocation2 + $0x644] sm:$0xf]  ;;  %v4890_v38 = vld [vmem:[#allocation2 + $0x614] sm:$0xf0] }
 0x1d7   :  { %v4889_v39 = vld [vmem:[#allocation2 + $0x614] sm:$0xf] }
 0x1d8   :  { %1572 = vmatpush.bf16.msrb.mxu3 %v3918_v57  ;;  %1535 = vmatpush.bf16.msrb.mxu0 %v3834_v6  ;;  %v4876_v57 = vld [vmem:[#allocation2 + $0x5a4] sm:$0xf0]  ;;  %v4873_v6 = vld [vmem:[#allocation2 + $0x594] sm:$0xf] }
 0x1d9   :  { %1560 = vmatpush.bf16.msrb.mxu2 %v3846_v60  ;;  %v3882_v58 = vor.u32 %v4876_v57, %v3881_v56  ;;  %v3883_v60 = vld [vmem:[#allocation2 + $0x5a8] sm:$0xf0] }
 0x1da   :  { %1547 = vmatpush.bf16.msrb.mxu1 %v3906_v4  ;;  %v3886_v61 = vor.u32 %v4875_v59, %v3883_v60  ;;  %v3873_v4 = vld [vmem:[#allocation2 + $0x590] sm:$0xf]  ;;  %v3966_v59 = vor.u32 %v4895_v51, %v3963_v52  ;;  %v4887_v51 = vld [vmem:[#allocation2 + $0x604] sm:$0xf] }
 0x1db   :  { %v3953_v60 = vld [vmem:[#allocation2 + $0x630] sm:$0xf] }
 0x1dc   :  { %1573 = vmatpush.bf16.msrb.mxu3 %v3910_v5  ;;  %1536 = vmatpush.bf16.msrb.mxu0 %v3826_v14  ;;  %v4874_v5 = vld [vmem:[#allocation2 + $0x594] sm:$0xf0]  ;;  %v3867_v14 = vld [vmem:[#allocation2 + $0x588] sm:$0xf0] }
 0x1dd   :  { %1561 = vmatpush.bf16.msrb.mxu2 %v3838_v8  ;;  %v3875_v8 = vld [vmem:[#allocation2 + $0x598] sm:$0xf0] }
 0x1de   :  { %1548 = vmatpush.bf16.msrb.mxu1 %v3898_v35  ;;  %v3878_v9 = vor.u32 %v4873_v6, %v3875_v8  ;;  %v4898_v35 = vld [vmem:[#allocation2 + $0x654] sm:$0xf0] }
 0x1df   :  { %v3970_v43 = vor.u32 %v4898_v35, %v3969_v34  ;;  %v4909_v34 = vld [vmem:[#allocation2 + $0x6b4] sm:$0xf]  ;;  %v4019_v35 = vld [vmem:[#allocation2 + $0x6b8] sm:$0xf0] }
 0x1e0   :  { %1574 = vmatpush.bf16.msrb.mxu3 %v3902_v37  ;;  %1537 = vmatpush.bf16.msrb.mxu0 %v3818_v41  ;;  %v3971_v37 = vld [vmem:[#allocation2 + $0x658] sm:$0xf0]  ;;  %v4915_v41 = vld [vmem:[#allocation2 + $0x6e4] sm:$0xf] }
 0x1e1   :  { %1562 = vmatpush.bf16.msrb.mxu2 %v3830_v15  ;;  %v3870_v15 = vor.u32 %v4871_v12, %v3867_v14  ;;  %v4046_v44 = vor.u32 %v4915_v41, %v4043_v42  ;;  %v3974_v47 = vor.u32 %v4897_v36, %v3971_v37  ;;  %v4022_v36 = vor.u32 %v4909_v34, %v4019_v35  ;;  %v3937_v37 = vld [vmem:[#allocation2 + $0x610] sm:$0xf]  ;;  %v3939_v41 = vld [vmem:[#allocation2 + $0x618] sm:$0xf0] }
 0x1e2   :  { %1549 = vmatpush.bf16.msrb.mxu1 %v3890_v46  ;;  %v4896_v46 = vld [vmem:[#allocation2 + $0x644] sm:$0xf0]  ;;  %v3942_v42 = vor.u32 %v4889_v39, %v3939_v41  ;;  %v4161_v35 = vld [vmem:[#allocation2 + $0x7d0] sm:$0xf]  ;;  %v4091_v39 = vld [vmem:[#allocation2 + $0x748] sm:$0xf0] }
 0x1e3   :  { %v1366_v41 = vld [vmem:[#allocation5 + $0x5] ss:$8 sm:$0x3] }
 0x1e4   :  { %1575 = vmatpush.bf16.msrb.mxu3 %v3894_v49  ;;  %1538 = vmatpush.bf16.msrb.mxu0 %v3810_v53  ;;  %v4914_v49 = vld [vmem:[#allocation2 + $0x6d4] sm:$0xf0]  ;;  %v4035_v53 = vld [vmem:[#allocation2 + $0x6d8] sm:$0xf0] }
 0x1e5   :  { %1563 = vmatpush.bf16.msrb.mxu2 %v3822_v45  ;;  %v3961_v45 = vld [vmem:[#allocation2 + $0x640] sm:$0xf]  ;;  %v4038_v56 = vor.u32 %v4913_v50, %v4035_v53  ;;  %v4888_v50 = vld [vmem:[#allocation2 + $0x604] sm:$0xf0]  ;;  %v3931_v53 = vld [vmem:[#allocation2 + $0x608] sm:$0xf0] }
 0x1e6   :  { %1550 = vmatpush.bf16.msrb.mxu1 %v3882_v58  ;;  %v3962_v57 = vor.u32 %v4896_v46, %v3961_v45  ;;  %v4907_v46 = vld [vmem:[#allocation2 + $0x6a4] sm:$0xf] }
 0x1e8   :  { %1576 = vmatpush.bf16.msrb.mxu3 %v3886_v61  ;;  %1539 = vmatpush.bf16.msrb.mxu0 %v3802_v1  ;;  %v4894_v61 = vld [vmem:[#allocation2 + $0x634] sm:$0xf0] }
 0x1e9   :  { %1564 = vmatpush.bf16.msrb.mxu2 %v3814_v55  ;;  %v4034_v55 = vor.u32 %v4914_v49, %v4033_v48  ;;  %v3954_v1 = vor.u32 %v4894_v61, %v3953_v60  ;;  %v3929_v49 = vld [vmem:[#allocation2 + $0x600] sm:$0xf] }
 0x1ea   :  { %v3930_v52 = vor.u32 %v4888_v50, %v3929_v49  ;;  %v3993_v61 = vld [vmem:[#allocation2 + $0x680] sm:$0xf]  ;;  %v1368_v49 = vperm.slane %v1366_v41, 0  ;;  %v4925_v50 = vld [vmem:[#allocation2 + $0x734] sm:$0xf] }
 0x1ec   :  { %1577 = vmatpush.bf16.msrb.mxu3 %v3878_v9 }
 0x1ed   :  { %1565 = vmatpush.bf16.msrb.mxu2 %v3806_v3 }
 0x1f0   :  { %1578 = vmatpush.bf16.msrb.mxu3 %v3870_v15 }
 0x248   :  { %v1029_v7 = vpop.f32.mrf.mxu0 }
 0x249   :  { %v1030_v16 = vadd.f32 %v1029_v7, %v856_v11  ;;  %v3874_v7 = vor.u32 %v4874_v5, %v3873_v4  ;;  %v4872_v11 = vld [vmem:[#allocation2 + $0x584] sm:$0xf0] }
 0x24a   :  { %v3866_v13 = vor.u32 %v4872_v11, %v3865_v10 }
 0x24b   :  { %1551 = vmatpush.bf16.msrb.mxu1 %v3874_v7  ;;  %v1113_v7 = vperm.slane %v1110_v54, 1  ;;  %v3934_v54 = vor.u32 %v4887_v51, %v3931_v53  ;;  %v4083_v51 = vld [vmem:[#allocation2 + $0x738] sm:$0xf0] }
 0x24c   :  { %v4086_v53 = vor.u32 %v4925_v50, %v4083_v51  ;;  %v4935_v50 = vld [vmem:[#allocation2 + $0x784] sm:$0xf] }
 0x24e   :  { %v1042_v17 = vpop.f32.mrf.mxu1  ;;  %v1055_v18 = vpop.f32.mrf.mxu2 }
 0x24f   :  { %v1043_v19 = vadd.f32 %v1042_v17, %v1030_v16  ;;  %v1056_v24 = vadd.f32 %v1055_v18, %v857_v20  ;;  %1552 = vmatpush.bf16.msrb.mxu1 %v3866_v13  ;;  %v3985_v16 = vld [vmem:[#allocation2 + $0x670] sm:$0xf]  ;;  %v4902_v17 = vld [vmem:[#allocation2 + $0x674] sm:$0xf0]  ;;  %v4901_v18 = vld [vmem:[#allocation2 + $0x674] sm:$0xf] }
 0x250   :  { %v1031_v21 = vpop.f32.mrf.mxu0  ;;  %v3987_v20 = vld [vmem:[#allocation2 + $0x678] sm:$0xf0] }
 0x251   :  { %v1072_v22 = vmax.f32 %v1043_v19, 0.0  ;;  %v3986_v19 = vor.u32 %v4902_v17, %v3985_v16  ;;  %v3977_v21 = vld [vmem:[#allocation2 + $0x660] sm:$0xf] }
 0x253   :  { %v1074_v23 = vpack.c.bf16 %v1072_v22, %v1072_v22  ;;  %v4900_v22 = vld [vmem:[#allocation2 + $0x664] sm:$0xf0] }
 0x254   :  { %v1068_v25 = vpop.f32.mrf.mxu3 }
 0x255   :  { %v1069_v26 = vadd.f32 %v1068_v25, %v1056_v24  ;;  %1284 = vmatmul.bf16.vlgmr.msra.gmra.mxu0 %v1074_v23  ;;  %1310 = vmatmul.bf16.vlgmr.msra.gmra.mxu2 %v1074_v23  ;;  %v3990_v23 = vor.u32 %v4901_v18, %v3987_v20  ;;  %v4899_v24 = vld [vmem:[#allocation2 + $0x664] sm:$0xf]  ;;  %v3979_v25 = vld [vmem:[#allocation2 + $0x668] sm:$0xf0]  ;;  %v4912_v20 = vld [vmem:[#allocation2 + $0x6c4] sm:$0xf0] }
 0x256   :  { %v1044_v27 = vpop.f32.mrf.mxu1  ;;  %v1057_v28 = vpop.f32.mrf.mxu2  ;;  %1789 = vmatpush.bf16.msra.mxu0 %v3986_v19  ;;  %v4025_v19 = vld [vmem:[#allocation2 + $0x6c0] sm:$0xf] }
 0x257   :  { %v1073_v29 = vmax.f32 %v1069_v26, 0.0  ;;  %v4049_v26 = vld [vmem:[#allocation2 + $0x6f0] sm:$0xf]  ;;  %v3978_v27 = vor.u32 %v4900_v22, %v3977_v21  ;;  %v4918_v28 = vld [vmem:[#allocation2 + $0x6f4] sm:$0xf0]  ;;  %1815 = vmatpush.bf16.msra.mxu2 %v3990_v23  ;;  %v4026_v22 = vor.u32 %v4912_v20, %v4025_v19 }
 0x258   :  { %v4050_v32 = vor.u32 %v4918_v28, %v4049_v26  ;;  %v4911_v21 = vld [vmem:[#allocation2 + $0x6c4] sm:$0xf]  ;;  %v4027_v23 = vld [vmem:[#allocation2 + $0x6c8] sm:$0xf0]  ;;  %v4892_v26 = vld [vmem:[#allocation2 + $0x624] sm:$0xf0] }
 0x259   :  { %v1075_v30 = vpack.c.bf16 %v1073_v29, %v1073_v29  ;;  %v4917_v29 = vld [vmem:[#allocation2 + $0x6f4] sm:$0xf] }
 0x25a   :  { %1790 = vmatpush.bf16.msra.mxu0 %v3978_v27  ;;  %v4891_v27 = vld [vmem:[#allocation2 + $0x624] sm:$0xf] }
 0x25b   :  { %1297 = vmatmul.bf16.vlgmr.msra.gmra.mxu1 %v1075_v30  ;;  %1323 = vmatmul.bf16.vlgmr.msra.gmra.mxu3 %v1075_v30  ;;  %v4051_v30 = vld [vmem:[#allocation2 + $0x6f8] sm:$0xf0] }
 0x25c   :  { %v1070_v31 = vpop.f32.mrf.mxu3  ;;  %v4054_v33 = vor.u32 %v4917_v29, %v4051_v30  ;;  %1802 = vmatpush.bf16.msra.mxu1 %v4050_v32  ;;  %v3947_v29 = vld [vmem:[#allocation2 + $0x628] sm:$0xf0]  ;;  %v4017_v30 = vld [vmem:[#allocation2 + $0x6b0] sm:$0xf] }
 0x25d   :  { %v3982_v31 = vor.u32 %v4899_v24, %v3979_v25  ;;  %v4030_v24 = vor.u32 %v4911_v21, %v4027_v23  ;;  %v3945_v25 = vld [vmem:[#allocation2 + $0x620] sm:$0xf]  ;;  %v3950_v32 = vor.u32 %v4891_v27, %v3947_v29  ;;  %v4097_v21 = vld [vmem:[#allocation2 + $0x750] sm:$0xf]  ;;  %v4929_v23 = vld [vmem:[#allocation2 + $0x754] sm:$0xf] }
 0x25e   :  { %1828 = vmatpush.bf16.msra.mxu3 %v4054_v33  ;;  %1791 = vmatpush.bf16.msra.mxu0 %v3970_v43  ;;  %v3946_v28 = vor.u32 %v4892_v26, %v3945_v25  ;;  %v4009_v43 = vld [vmem:[#allocation2 + $0x6a0] sm:$0xf]  ;;  %v4948_v26 = vld [vmem:[#allocation2 + $0x7e4] sm:$0xf0]  ;;  %v4171_v29 = vld [vmem:[#allocation2 + $0x7e8] sm:$0xf0] }
 0x25f   :  { %1816 = vmatpush.bf16.msra.mxu2 %v3982_v31  ;;  %v4910_v31 = vld [vmem:[#allocation2 + $0x6b4] sm:$0xf0]  ;;  %v4169_v25 = vld [vmem:[#allocation2 + $0x7e0] sm:$0xf] }
 0x260   :  { %1803 = vmatpush.bf16.msra.mxu1 %v4042_v40  ;;  %v4018_v33 = vor.u32 %v4910_v31, %v4017_v30  ;;  %v3938_v40 = vor.u32 %v4890_v38, %v3937_v37  ;;  %v4170_v27 = vor.u32 %v4948_v26, %v4169_v25  ;;  %v4945_v37 = vld [vmem:[#allocation2 + $0x7d4] sm:$0xf]  ;;  %v4927_v38 = vld [vmem:[#allocation2 + $0x744] sm:$0xf]  ;;  %v4922_v25 = vld [vmem:[#allocation2 + $0x714] sm:$0xf0] }
 0x261   :  { %v4921_v26 = vld [vmem:[#allocation2 + $0x714] sm:$0xf] }
 0x262   :  { %1829 = vmatpush.bf16.msra.mxu3 %v4046_v44  ;;  %1792 = vmatpush.bf16.msra.mxu0 %v3962_v57  ;;  %v4908_v44 = vld [vmem:[#allocation2 + $0x6a4] sm:$0xf0]  ;;  %v4905_v57 = vld [vmem:[#allocation2 + $0x694] sm:$0xf] }
 0x263   :  { %1817 = vmatpush.bf16.msra.mxu2 %v3974_v47  ;;  %v4010_v45 = vor.u32 %v4908_v44, %v4009_v43  ;;  %v4011_v47 = vld [vmem:[#allocation2 + $0x6a8] sm:$0xf0] }
 0x264   :  { %1804 = vmatpush.bf16.msra.mxu1 %v4034_v55  ;;  %v4014_v48 = vor.u32 %v4907_v46, %v4011_v47  ;;  %v4001_v55 = vld [vmem:[#allocation2 + $0x690] sm:$0xf]  ;;  %v4094_v46 = vor.u32 %v4927_v38, %v4091_v39  ;;  %v4919_v38 = vld [vmem:[#allocation2 + $0x704] sm:$0xf] }
 0x265   :  { %v4081_v47 = vld [vmem:[#allocation2 + $0x730] sm:$0xf] }
 0x266   :  { %1830 = vmatpush.bf16.msra.mxu3 %v4038_v56  ;;  %1793 = vmatpush.bf16.msra.mxu0 %v3954_v1  ;;  %v4906_v56 = vld [vmem:[#allocation2 + $0x694] sm:$0xf0]  ;;  %v3995_v1 = vld [vmem:[#allocation2 + $0x688] sm:$0xf0] }
 0x267   :  { %1818 = vmatpush.bf16.msra.mxu2 %v3966_v59  ;;  %v4003_v59 = vld [vmem:[#allocation2 + $0x698] sm:$0xf0] }
 0x268   :  { %1805 = vmatpush.bf16.msra.mxu1 %v4026_v22  ;;  %v4006_v60 = vor.u32 %v4905_v57, %v4003_v59  ;;  %v4930_v22 = vld [vmem:[#allocation2 + $0x754] sm:$0xf0] }
 0x269   :  { %v4098_v30 = vor.u32 %v4930_v22, %v4097_v21  ;;  %v4941_v21 = vld [vmem:[#allocation2 + $0x7b4] sm:$0xf]  ;;  %v4147_v22 = vld [vmem:[#allocation2 + $0x7b8] sm:$0xf0] }
 0x26a   :  { %1831 = vmatpush.bf16.msra.mxu3 %v4030_v24  ;;  %1794 = vmatpush.bf16.msra.mxu0 %v3946_v28  ;;  %v4099_v24 = vld [vmem:[#allocation2 + $0x758] sm:$0xf0]  ;;  %v4947_v28 = vld [vmem:[#allocation2 + $0x7e4] sm:$0xf] }
 0x26b   :  { %1819 = vmatpush.bf16.msra.mxu2 %v3958_v2  ;;  %v3998_v2 = vor.u32 %v4903_v63, %v3995_v1  ;;  %v4174_v31 = vor.u32 %v4947_v28, %v4171_v29  ;;  %v4102_v34 = vor.u32 %v4929_v23, %v4099_v24  ;;  %v4150_v23 = vor.u32 %v4941_v21, %v4147_v22  ;;  %v4065_v24 = vld [vmem:[#allocation2 + $0x710] sm:$0xf]  ;;  %v4067_v28 = vld [vmem:[#allocation2 + $0x718] sm:$0xf0] }
 0x26c   :  { %1806 = vmatpush.bf16.msra.mxu1 %v4018_v33  ;;  %v4928_v33 = vld [vmem:[#allocation2 + $0x744] sm:$0xf0]  ;;  %v4070_v29 = vor.u32 %v4921_v26, %v4067_v28  ;;  %v4289_v22 = vld [vmem:[#allocation2 + $0x8d0] sm:$0xf]  ;;  %v4219_v26 = vld [vmem:[#allocation2 + $0x848] sm:$0xf0] }
 0x26d   :  { %v1623_v28 = vld [vmem:[#allocation5 + $0x6] ss:$8 sm:$0x3] }
 0x26e   :  { %1832 = vmatpush.bf16.msra.mxu3 %v4022_v36  ;;  %1795 = vmatpush.bf16.msra.mxu0 %v3938_v40  ;;  %v4946_v36 = vld [vmem:[#allocation2 + $0x7d4] sm:$0xf0]  ;;  %v4163_v40 = vld [vmem:[#allocation2 + $0x7d8] sm:$0xf0] }
 0x26f   :  { %1820 = vmatpush.bf16.msra.mxu2 %v3950_v32  ;;  %v4089_v32 = vld [vmem:[#allocation2 + $0x740] sm:$0xf]  ;;  %v4166_v43 = vor.u32 %v4945_v37, %v4163_v40  ;;  %v4920_v37 = vld [vmem:[#allocation2 + $0x704] sm:$0xf0]  ;;  %v4059_v40 = vld [vmem:[#allocation2 + $0x708] sm:$0xf0] }
 0x270   :  { %1807 = vmatpush.bf16.msra.mxu1 %v4010_v45  ;;  %v4090_v44 = vor.u32 %v4928_v33, %v4089_v32  ;;  %v4939_v33 = vld [vmem:[#allocation2 + $0x7a4] sm:$0xf] }
 0x272   :  { %1833 = vmatpush.bf16.msra.mxu3 %v4014_v48  ;;  %1796 = vmatpush.bf16.msra.mxu0 %v3930_v52  ;;  %v4926_v48 = vld [vmem:[#allocation2 + $0x734] sm:$0xf0] }
 0x273   :  { %1821 = vmatpush.bf16.msra.mxu2 %v3942_v42  ;;  %v4162_v42 = vor.u32 %v4946_v36, %v4161_v35  ;;  %v4082_v52 = vor.u32 %v4926_v48, %v4081_v47  ;;  %v4057_v36 = vld [vmem:[#allocation2 + $0x700] sm:$0xf] }
 0x274   :  { %v4058_v39 = vor.u32 %v4920_v37, %v4057_v36  ;;  %v4121_v48 = vld [vmem:[#allocation2 + $0x780] sm:$0xf]  ;;  %v1625_v36 = vperm.slane %v1623_v28, 0  ;;  %v4957_v37 = vld [vmem:[#allocation2 + $0x834] sm:$0xf] }
 0x276   :  { %1834 = vmatpush.bf16.msra.mxu3 %v4006_v60 }
 0x277   :  { %1822 = vmatpush.bf16.msra.mxu2 %v3934_v54 }
 0x27a   :  { %1835 = vmatpush.bf16.msra.mxu3 %v3998_v2 }
 0x2d2   :  { %v1285_v58 = vpop.f32.mrf.mxu0 }
 0x2d3   :  { %v1286_v3 = vadd.f32 %v1285_v58, %v1112_v62  ;;  %v4002_v58 = vor.u32 %v4906_v56, %v4001_v55  ;;  %v4904_v62 = vld [vmem:[#allocation2 + $0x684] sm:$0xf0] }
 0x2d4   :  { %v3994_v0 = vor.u32 %v4904_v62, %v3993_v61 }
 0x2d5   :  { %1808 = vmatpush.bf16.msra.mxu1 %v4002_v58  ;;  %v1369_v58 = vperm.slane %v1366_v41, 1  ;;  %v4062_v41 = vor.u32 %v4919_v38, %v4059_v40  ;;  %v4211_v38 = vld [vmem:[#allocation2 + $0x838] sm:$0xf0] }
 0x2d6   :  { %v4214_v40 = vor.u32 %v4957_v37, %v4211_v38  ;;  %v4967_v37 = vld [vmem:[#allocation2 + $0x884] sm:$0xf] }
 0x2d8   :  { %v1298_v4 = vpop.f32.mrf.mxu1  ;;  %v1311_v5 = vpop.f32.mrf.mxu2 }
 0x2d9   :  { %v1299_v6 = vadd.f32 %v1298_v4, %v1286_v3  ;;  %v1312_v11 = vadd.f32 %v1311_v5, %v1113_v7  ;;  %1809 = vmatpush.bf16.msra.mxu1 %v3994_v0  ;;  %v4113_v3 = vld [vmem:[#allocation2 + $0x770] sm:$0xf]  ;;  %v4934_v4 = vld [vmem:[#allocation2 + $0x774] sm:$0xf0]  ;;  %v4933_v5 = vld [vmem:[#allocation2 + $0x774] sm:$0xf] }
 0x2da   :  { %v1287_v8 = vpop.f32.mrf.mxu0  ;;  %v4115_v7 = vld [vmem:[#allocation2 + $0x778] sm:$0xf0] }
 0x2db   :  { %v1328_v9 = vmax.f32 %v1299_v6, 0.0  ;;  %v4114_v6 = vor.u32 %v4934_v4, %v4113_v3  ;;  %v4105_v8 = vld [vmem:[#allocation2 + $0x760] sm:$0xf] }
 0x2dd   :  { %v1330_v10 = vpack.c.bf16 %v1328_v9, %v1328_v9  ;;  %v4932_v9 = vld [vmem:[#allocation2 + $0x764] sm:$0xf0] }
 0x2de   :  { %v1324_v12 = vpop.f32.mrf.mxu3 }
 0x2df   :  { %v1325_v13 = vadd.f32 %v1324_v12, %v1312_v11  ;;  %1540 = vmatmul.bf16.vlgmr.msrb.gmra.mxu0 %v1330_v10  ;;  %1566 = vmatmul.bf16.vlgmr.msrb.gmra.mxu2 %v1330_v10  ;;  %v4118_v10 = vor.u32 %v4933_v5, %v4115_v7  ;;  %v4931_v11 = vld [vmem:[#allocation2 + $0x764] sm:$0xf]  ;;  %v4107_v12 = vld [vmem:[#allocation2 + $0x768] sm:$0xf0]  ;;  %v4944_v7 = vld [vmem:[#allocation2 + $0x7c4] sm:$0xf0] }
 0x2e0   :  { %v1300_v14 = vpop.f32.mrf.mxu1  ;;  %v1313_v15 = vpop.f32.mrf.mxu2  ;;  %2045 = vmatpush.bf16.msrb.mxu0 %v4114_v6  ;;  %v4153_v6 = vld [vmem:[#allocation2 + $0x7c0] sm:$0xf] }
 0x2e1   :  { %v1329_v16 = vmax.f32 %v1325_v13, 0.0  ;;  %v4177_v13 = vld [vmem:[#allocation2 + $0x7f0] sm:$0xf]  ;;  %v4106_v14 = vor.u32 %v4932_v9, %v4105_v8  ;;  %v4950_v15 = vld [vmem:[#allocation2 + $0x7f4] sm:$0xf0]  ;;  %2071 = vmatpush.bf16.msrb.mxu2 %v4118_v10  ;;  %v4154_v9 = vor.u32 %v4944_v7, %v4153_v6 }
 0x2e2   :  { %v4178_v19 = vor.u32 %v4950_v15, %v4177_v13  ;;  %v4943_v8 = vld [vmem:[#allocation2 + $0x7c4] sm:$0xf]  ;;  %v4155_v10 = vld [vmem:[#allocation2 + $0x7c8] sm:$0xf0]  ;;  %v4924_v13 = vld [vmem:[#allocation2 + $0x724] sm:$0xf0] }
 0x2e3   :  { %v1331_v17 = vpack.c.bf16 %v1329_v16, %v1329_v16  ;;  %v4949_v16 = vld [vmem:[#allocation2 + $0x7f4] sm:$0xf] }
 0x2e4   :  { %2046 = vmatpush.bf16.msrb.mxu0 %v4106_v14  ;;  %v4923_v14 = vld [vmem:[#allocation2 + $0x724] sm:$0xf] }
 0x2e5   :  { %1553 = vmatmul.bf16.vlgmr.msrb.gmra.mxu1 %v1331_v17  ;;  %1579 = vmatmul.bf16.vlgmr.msrb.gmra.mxu3 %v1331_v17  ;;  %v4179_v17 = vld [vmem:[#allocation2 + $0x7f8] sm:$0xf0] }
 0x2e6   :  { %v1326_v18 = vpop.f32.mrf.mxu3  ;;  %v4182_v20 = vor.u32 %v4949_v16, %v4179_v17  ;;  %2058 = vmatpush.bf16.msrb.mxu1 %v4178_v19  ;;  %v4075_v16 = vld [vmem:[#allocation2 + $0x728] sm:$0xf0]  ;;  %v4145_v17 = vld [vmem:[#allocation2 + $0x7b0] sm:$0xf] }
 0x2e7   :  { %v4110_v18 = vor.u32 %v4931_v11, %v4107_v12  ;;  %v4158_v11 = vor.u32 %v4943_v8, %v4155_v10  ;;  %v4073_v12 = vld [vmem:[#allocation2 + $0x720] sm:$0xf]  ;;  %v4078_v19 = vor.u32 %v4923_v14, %v4075_v16  ;;  %v4225_v8 = vld [vmem:[#allocation2 + $0x850] sm:$0xf]  ;;  %v4961_v10 = vld [vmem:[#allocation2 + $0x854] sm:$0xf] }
 0x2e8   :  { %2084 = vmatpush.bf16.msrb.mxu3 %v4182_v20  ;;  %2047 = vmatpush.bf16.msrb.mxu0 %v4098_v30  ;;  %v4074_v15 = vor.u32 %v4924_v13, %v4073_v12  ;;  %v4137_v30 = vld [vmem:[#allocation2 + $0x7a0] sm:$0xf]  ;;  %v4980_v13 = vld [vmem:[#allocation2 + $0x8e4] sm:$0xf0]  ;;  %v4299_v16 = vld [vmem:[#allocation2 + $0x8e8] sm:$0xf0] }
 0x2e9   :  { %2072 = vmatpush.bf16.msrb.mxu2 %v4110_v18  ;;  %v4942_v18 = vld [vmem:[#allocation2 + $0x7b4] sm:$0xf0]  ;;  %v4297_v12 = vld [vmem:[#allocation2 + $0x8e0] sm:$0xf] }
 0x2ea   :  { %2059 = vmatpush.bf16.msrb.mxu1 %v4170_v27  ;;  %v4146_v20 = vor.u32 %v4942_v18, %v4145_v17  ;;  %v4066_v27 = vor.u32 %v4922_v25, %v4065_v24  ;;  %v4298_v14 = vor.u32 %v4980_v13, %v4297_v12  ;;  %v4977_v24 = vld [vmem:[#allocation2 + $0x8d4] sm:$0xf]  ;;  %v4959_v25 = vld [vmem:[#allocation2 + $0x844] sm:$0xf]  ;;  %v4954_v12 = vld [vmem:[#allocation2 + $0x814] sm:$0xf0] }
 0x2eb   :  { %v4953_v13 = vld [vmem:[#allocation2 + $0x814] sm:$0xf] }
 0x2ec   :  { %2085 = vmatpush.bf16.msrb.mxu3 %v4174_v31  ;;  %2048 = vmatpush.bf16.msrb.mxu0 %v4090_v44  ;;  %v4940_v31 = vld [vmem:[#allocation2 + $0x7a4] sm:$0xf0]  ;;  %v4937_v44 = vld [vmem:[#allocation2 + $0x794] sm:$0xf] }
 0x2ed   :  { %2073 = vmatpush.bf16.msrb.mxu2 %v4102_v34  ;;  %v4138_v32 = vor.u32 %v4940_v31, %v4137_v30  ;;  %v4139_v34 = vld [vmem:[#allocation2 + $0x7a8] sm:$0xf0] }
 0x2ee   :  { %2060 = vmatpush.bf16.msrb.mxu1 %v4162_v42  ;;  %v4142_v35 = vor.u32 %v4939_v33, %v4139_v34  ;;  %v4129_v42 = vld [vmem:[#allocation2 + $0x790] sm:$0xf]  ;;  %v4222_v33 = vor.u32 %v4959_v25, %v4219_v26  ;;  %v4951_v25 = vld [vmem:[#allocation2 + $0x804] sm:$0xf] }
 0x2ef   :  { %v4209_v34 = vld [vmem:[#allocation2 + $0x830] sm:$0xf] }
 0x2f0   :  { %2086 = vmatpush.bf16.msrb.mxu3 %v4166_v43  ;;  %2049 = vmatpush.bf16.msrb.mxu0 %v4082_v52  ;;  %v4938_v43 = vld [vmem:[#allocation2 + $0x794] sm:$0xf0]  ;;  %v4123_v52 = vld [vmem:[#allocation2 + $0x788] sm:$0xf0] }
 0x2f1   :  { %2074 = vmatpush.bf16.msrb.mxu2 %v4094_v46  ;;  %v4131_v46 = vld [vmem:[#allocation2 + $0x798] sm:$0xf0] }
 0x2f2   :  { %2061 = vmatpush.bf16.msrb.mxu1 %v4154_v9  ;;  %v4134_v47 = vor.u32 %v4937_v44, %v4131_v46  ;;  %v4962_v9 = vld [vmem:[#allocation2 + $0x854] sm:$0xf0] }
 0x2f3   :  { %v4226_v17 = vor.u32 %v4962_v9, %v4225_v8  ;;  %v4973_v8 = vld [vmem:[#allocation2 + $0x8b4] sm:$0xf]  ;;  %v4275_v9 = vld [vmem:[#allocation2 + $0x8b8] sm:$0xf0] }
 0x2f4   :  { %2087 = vmatpush.bf16.msrb.mxu3 %v4158_v11  ;;  %2050 = vmatpush.bf16.msrb.mxu0 %v4074_v15  ;;  %v4227_v11 = vld [vmem:[#allocation2 + $0x858] sm:$0xf0]  ;;  %v4979_v15 = vld [vmem:[#allocation2 + $0x8e4] sm:$0xf] }
 0x2f5   :  { %2075 = vmatpush.bf16.msrb.mxu2 %v4086_v53  ;;  %v4126_v53 = vor.u32 %v4935_v50, %v4123_v52  ;;  %v4302_v18 = vor.u32 %v4979_v15, %v4299_v16  ;;  %v4230_v21 = vor.u32 %v4961_v10, %v4227_v11  ;;  %v4278_v10 = vor.u32 %v4973_v8, %v4275_v9  ;;  %v4193_v11 = vld [vmem:[#allocation2 + $0x810] sm:$0xf]  ;;  %v4195_v15 = vld [vmem:[#allocation2 + $0x818] sm:$0xf0] }
 0x2f6   :  { %2062 = vmatpush.bf16.msrb.mxu1 %v4146_v20  ;;  %v4960_v20 = vld [vmem:[#allocation2 + $0x844] sm:$0xf0]  ;;  %v4198_v16 = vor.u32 %v4953_v13, %v4195_v15  ;;  %v4417_v9 = vld [vmem:[#allocation2 + $0x9d0] sm:$0xf]  ;;  %v4347_v13 = vld [vmem:[#allocation2 + $0x948] sm:$0xf0] }
 0x2f7   :  { %v1879_v15 = vld [vmem:[#allocation5 + $0x7] ss:$8 sm:$0x3] }
 0x2f8   :  { %2088 = vmatpush.bf16.msrb.mxu3 %v4150_v23  ;;  %2051 = vmatpush.bf16.msrb.mxu0 %v4066_v27  ;;  %v4978_v23 = vld [vmem:[#allocation2 + $0x8d4] sm:$0xf0]  ;;  %v4291_v27 = vld [vmem:[#allocation2 + $0x8d8] sm:$0xf0] }
 0x2f9   :  { %2076 = vmatpush.bf16.msrb.mxu2 %v4078_v19  ;;  %v4217_v19 = vld [vmem:[#allocation2 + $0x840] sm:$0xf]  ;;  %v4294_v30 = vor.u32 %v4977_v24, %v4291_v27  ;;  %v4952_v24 = vld [vmem:[#allocation2 + $0x804] sm:$0xf0]  ;;  %v4187_v27 = vld [vmem:[#allocation2 + $0x808] sm:$0xf0] }
 0x2fa   :  { %2063 = vmatpush.bf16.msrb.mxu1 %v4138_v32  ;;  %v4218_v31 = vor.u32 %v4960_v20, %v4217_v19  ;;  %v4971_v20 = vld [vmem:[#allocation2 + $0x8a4] sm:$0xf] }
 0x2fc   :  { %2089 = vmatpush.bf16.msrb.mxu3 %v4142_v35  ;;  %2052 = vmatpush.bf16.msrb.mxu0 %v4058_v39  ;;  %v4958_v35 = vld [vmem:[#allocation2 + $0x834] sm:$0xf0] }
 0x2fd   :  { %2077 = vmatpush.bf16.msrb.mxu2 %v4070_v29  ;;  %v4290_v29 = vor.u32 %v4978_v23, %v4289_v22  ;;  %v4210_v39 = vor.u32 %v4958_v35, %v4209_v34  ;;  %v4185_v23 = vld [vmem:[#allocation2 + $0x800] sm:$0xf] }
 0x2fe   :  { %v4186_v26 = vor.u32 %v4952_v24, %v4185_v23  ;;  %v4249_v35 = vld [vmem:[#allocation2 + $0x880] sm:$0xf]  ;;  %v1881_v23 = vperm.slane %v1879_v15, 0  ;;  %v4989_v24 = vld [vmem:[#allocation2 + $0x934] sm:$0xf] }
 0x300   :  { %2090 = vmatpush.bf16.msrb.mxu3 %v4134_v47 }
 0x301   :  { %2078 = vmatpush.bf16.msrb.mxu2 %v4062_v41 }
 0x304   :  { %2091 = vmatpush.bf16.msrb.mxu3 %v4126_v53 }
 0x35c   :  { %v1541_v45 = vpop.f32.mrf.mxu0 }
 0x35d   :  { %v1542_v54 = vadd.f32 %v1541_v45, %v1368_v49  ;;  %v4130_v45 = vor.u32 %v4938_v43, %v4129_v42  ;;  %v4936_v49 = vld [vmem:[#allocation2 + $0x784] sm:$0xf0] }
 0x35e   :  { %v4122_v51 = vor.u32 %v4936_v49, %v4121_v48 }
 0x35f   :  { %2064 = vmatpush.bf16.msrb.mxu1 %v4130_v45  ;;  %v1626_v45 = vperm.slane %v1623_v28, 1  ;;  %v4190_v28 = vor.u32 %v4951_v25, %v4187_v27  ;;  %v4339_v25 = vld [vmem:[#allocation2 + $0x938] sm:$0xf0] }
 0x360   :  { %v4342_v27 = vor.u32 %v4989_v24, %v4339_v25  ;;  %v4999_v24 = vld [vmem:[#allocation2 + $0x984] sm:$0xf] }
 0x362   :  { %v1554_v55 = vpop.f32.mrf.mxu1  ;;  %v1567_v56 = vpop.f32.mrf.mxu2 }
 0x363   :  { %v1555_v57 = vadd.f32 %v1554_v55, %v1542_v54  ;;  %v1568_v62 = vadd.f32 %v1567_v56, %v1369_v58  ;;  %2065 = vmatpush.bf16.msrb.mxu1 %v4122_v51  ;;  %v4241_v54 = vld [vmem:[#allocation2 + $0x870] sm:$0xf]  ;;  %v4966_v55 = vld [vmem:[#allocation2 + $0x874] sm:$0xf0]  ;;  %v4965_v56 = vld [vmem:[#allocation2 + $0x874] sm:$0xf] }
 0x364   :  { %v1543_v59 = vpop.f32.mrf.mxu0  ;;  %v4243_v58 = vld [vmem:[#allocation2 + $0x878] sm:$0xf0] }
 0x365   :  { %v1584_v60 = vmax.f32 %v1555_v57, 0.0  ;;  %v4242_v57 = vor.u32 %v4966_v55, %v4241_v54  ;;  %v4233_v59 = vld [vmem:[#allocation2 + $0x860] sm:$0xf] }
 0x367   :  { %1586 = vst [vmem:[#allocation8] sm:$0xff] %v1584_v60  ;;  %v1587_v61 = vpack.c.bf16 %v1584_v60, %v1584_v60  ;;  %v4964_v60 = vld [vmem:[#allocation2 + $0x864] sm:$0xf0] }
 0x368   :  { %v1580_v63 = vpop.f32.mrf.mxu3  ;;  %3146 = dma.vmem_to_hbm [thread:$0]  %s3142_s5, 128, %s3144_s8, [#allocation9]  }
 0x369   :  { %v1581_v0 = vadd.f32 %v1580_v63, %v1568_v62  ;;  %1797 = vmatmul.bf16.vlgmr.msra.gmra.mxu0 %v1587_v61  ;;  %1823 = vmatmul.bf16.vlgmr.msra.gmra.mxu2 %v1587_v61  ;;  %v4246_v61 = vor.u32 %v4965_v56, %v4243_v58  ;;  %v4963_v62 = vld [vmem:[#allocation2 + $0x864] sm:$0xf]  ;;  %v4235_v63 = vld [vmem:[#allocation2 + $0x868] sm:$0xf0]  ;;  %v4976_v58 = vld [vmem:[#allocation2 + $0x8c4] sm:$0xf0] }
 0x36a   :  { %v1556_v1 = vpop.f32.mrf.mxu1  ;;  %v1569_v2 = vpop.f32.mrf.mxu2  ;;  %2301 = vmatpush.bf16.msra.mxu0 %v4242_v57  ;;  %v4281_v57 = vld [vmem:[#allocation2 + $0x8c0] sm:$0xf] }
 0x36b   :  { %v1585_v3 = vmax.f32 %v1581_v0, 0.0  ;;  %v4305_v0 = vld [vmem:[#allocation2 + $0x8f0] sm:$0xf]  ;;  %v4234_v1 = vor.u32 %v4964_v60, %v4233_v59  ;;  %v4982_v2 = vld [vmem:[#allocation2 + $0x8f4] sm:$0xf0]  ;;  %2327 = vmatpush.bf16.msra.mxu2 %v4246_v61  ;;  %v4282_v60 = vor.u32 %v4976_v58, %v4281_v57 }
 0x36c   :  { %v4306_v6 = vor.u32 %v4982_v2, %v4305_v0  ;;  %v4975_v59 = vld [vmem:[#allocation2 + $0x8c4] sm:$0xf]  ;;  %v4283_v61 = vld [vmem:[#allocation2 + $0x8c8] sm:$0xf0]  ;;  %v4956_v0 = vld [vmem:[#allocation2 + $0x824] sm:$0xf0] }
 0x36d   :  { %v1588_v4 = vpack.c.bf16 %v1585_v3, %v1585_v3  ;;  %v4981_v3 = vld [vmem:[#allocation2 + $0x8f4] sm:$0xf] }
 0x36e   :  { %2302 = vmatpush.bf16.msra.mxu0 %v4234_v1  ;;  %v4955_v1 = vld [vmem:[#allocation2 + $0x824] sm:$0xf] }
 0x36f   :  { %1810 = vmatmul.bf16.vlgmr.msra.gmra.mxu1 %v1588_v4  ;;  %1836 = vmatmul.bf16.vlgmr.msra.gmra.mxu3 %v1588_v4  ;;  %v4307_v4 = vld [vmem:[#allocation2 + $0x8f8] sm:$0xf0] }
 0x370   :  { %v1582_v5 = vpop.f32.mrf.mxu3  ;;  %v4310_v7 = vor.u32 %v4981_v3, %v4307_v4  ;;  %2314 = vmatpush.bf16.msra.mxu1 %v4306_v6  ;;  %v4203_v3 = vld [vmem:[#allocation2 + $0x828] sm:$0xf0]  ;;  %v4273_v4 = vld [vmem:[#allocation2 + $0x8b0] sm:$0xf] }
 0x371   :  { %v4238_v5 = vor.u32 %v4963_v62, %v4235_v63  ;;  %v4286_v62 = vor.u32 %v4975_v59, %v4283_v61  ;;  %v4201_v63 = vld [vmem:[#allocation2 + $0x820] sm:$0xf]  ;;  %v4206_v6 = vor.u32 %v4955_v1, %v4203_v3  ;;  %v4353_v59 = vld [vmem:[#allocation2 + $0x950] sm:$0xf]  ;;  %v4993_v61 = vld [vmem:[#allocation2 + $0x954] sm:$0xf] }
 0x372   :  { %2340 = vmatpush.bf16.msra.mxu3 %v4310_v7  ;;  %2303 = vmatpush.bf16.msra.mxu0 %v4226_v17  ;;  %v4202_v2 = vor.u32 %v4956_v0, %v4201_v63  ;;  %v4265_v17 = vld [vmem:[#allocation2 + $0x8a0] sm:$0xf]  ;;  %v5012_v0 = vld [vmem:[#allocation2 + $0x9e4] sm:$0xf0]  ;;  %v4427_v3 = vld [vmem:[#allocation2 + $0x9e8] sm:$0xf0] }
 0x373   :  { %2328 = vmatpush.bf16.msra.mxu2 %v4238_v5  ;;  %v4974_v5 = vld [vmem:[#allocation2 + $0x8b4] sm:$0xf0]  ;;  %v4425_v63 = vld [vmem:[#allocation2 + $0x9e0] sm:$0xf] }
 0x374   :  { %2315 = vmatpush.bf16.msra.mxu1 %v4298_v14  ;;  %v4274_v7 = vor.u32 %v4974_v5, %v4273_v4  ;;  %v4194_v14 = vor.u32 %v4954_v12, %v4193_v11  ;;  %v4426_v1 = vor.u32 %v5012_v0, %v4425_v63  ;;  %v5009_v11 = vld [vmem:[#allocation2 + $0x9d4] sm:$0xf]  ;;  %v4991_v12 = vld [vmem:[#allocation2 + $0x944] sm:$0xf]  ;;  %v4986_v63 = vld [vmem:[#allocation2 + $0x914] sm:$0xf0] }
 0x375   :  { %v4985_v0 = vld [vmem:[#allocation2 + $0x914] sm:$0xf] }
 0x376   :  { %2341 = vmatpush.bf16.msra.mxu3 %v4302_v18  ;;  %2304 = vmatpush.bf16.msra.mxu0 %v4218_v31  ;;  %v4972_v18 = vld [vmem:[#allocation2 + $0x8a4] sm:$0xf0]  ;;  %v4969_v31 = vld [vmem:[#allocation2 + $0x894] sm:$0xf] }
 0x377   :  { %2329 = vmatpush.bf16.msra.mxu2 %v4230_v21  ;;  %v4266_v19 = vor.u32 %v4972_v18, %v4265_v17  ;;  %v4267_v21 = vld [vmem:[#allocation2 + $0x8a8] sm:$0xf0] }
 0x378   :  { %2316 = vmatpush.bf16.msra.mxu1 %v4290_v29  ;;  %v4270_v22 = vor.u32 %v4971_v20, %v4267_v21  ;;  %v4257_v29 = vld [vmem:[#allocation2 + $0x890] sm:$0xf]  ;;  %v4350_v20 = vor.u32 %v4991_v12, %v4347_v13  ;;  %v4983_v12 = vld [vmem:[#allocation2 + $0x904] sm:$0xf] }
 0x379   :  { %v4337_v21 = vld [vmem:[#allocation2 + $0x930] sm:$0xf] }
 0x37a   :  { %2342 = vmatpush.bf16.msra.mxu3 %v4294_v30  ;;  %2305 = vmatpush.bf16.msra.mxu0 %v4210_v39  ;;  %v4970_v30 = vld [vmem:[#allocation2 + $0x894] sm:$0xf0]  ;;  %v4251_v39 = vld [vmem:[#allocation2 + $0x888] sm:$0xf0] }
 0x37b   :  { %2330 = vmatpush.bf16.msra.mxu2 %v4222_v33  ;;  %v4259_v33 = vld [vmem:[#allocation2 + $0x898] sm:$0xf0] }
 0x37c   :  { %2317 = vmatpush.bf16.msra.mxu1 %v4282_v60  ;;  %v4262_v34 = vor.u32 %v4969_v31, %v4259_v33  ;;  %v4994_v60 = vld [vmem:[#allocation2 + $0x954] sm:$0xf0] }
 0x37d   :  { %v4354_v4 = vor.u32 %v4994_v60, %v4353_v59  ;;  %v5005_v59 = vld [vmem:[#allocation2 + $0x9b4] sm:$0xf]  ;;  %v4403_v60 = vld [vmem:[#allocation2 + $0x9b8] sm:$0xf0] }
 0x37e   :  { %2343 = vmatpush.bf16.msra.mxu3 %v4286_v62  ;;  %2306 = vmatpush.bf16.msra.mxu0 %v4202_v2  ;;  %v4355_v62 = vld [vmem:[#allocation2 + $0x958] sm:$0xf0]  ;;  %v5011_v2 = vld [vmem:[#allocation2 + $0x9e4] sm:$0xf] }
 0x37f   :  { %2331 = vmatpush.bf16.msra.mxu2 %v4214_v40  ;;  %v4254_v40 = vor.u32 %v4967_v37, %v4251_v39  ;;  %v4430_v5 = vor.u32 %v5011_v2, %v4427_v3  ;;  %v4358_v8 = vor.u32 %v4993_v61, %v4355_v62  ;;  %v4406_v61 = vor.u32 %v5005_v59, %v4403_v60  ;;  %v4321_v62 = vld [vmem:[#allocation2 + $0x910] sm:$0xf]  ;;  %v4323_v2 = vld [vmem:[#allocation2 + $0x918] sm:$0xf0] }
 0x380   :  { %2318 = vmatpush.bf16.msra.mxu1 %v4274_v7  ;;  %v4992_v7 = vld [vmem:[#allocation2 + $0x944] sm:$0xf0]  ;;  %v4326_v3 = vor.u32 %v4985_v0, %v4323_v2  ;;  %v4545_v60 = vld [vmem:[#allocation2 + $0xad0] sm:$0xf]  ;;  %v4475_v0 = vld [vmem:[#allocation2 + $0xa48] sm:$0xf0] }
 0x381   :  { %v2135_v2 = vld [vmem:[#allocation5 + $0x10] ss:$8 sm:$0x3] }
 0x382   :  { %2344 = vmatpush.bf16.msra.mxu3 %v4278_v10  ;;  %2307 = vmatpush.bf16.msra.mxu0 %v4194_v14  ;;  %v5010_v10 = vld [vmem:[#allocation2 + $0x9d4] sm:$0xf0]  ;;  %v4419_v14 = vld [vmem:[#allocation2 + $0x9d8] sm:$0xf0] }
 0x383   :  { %2332 = vmatpush.bf16.msra.mxu2 %v4206_v6  ;;  %v4345_v6 = vld [vmem:[#allocation2 + $0x940] sm:$0xf]  ;;  %v4422_v17 = vor.u32 %v5009_v11, %v4419_v14  ;;  %v4984_v11 = vld [vmem:[#allocation2 + $0x904] sm:$0xf0]  ;;  %v4315_v14 = vld [vmem:[#allocation2 + $0x908] sm:$0xf0] }
 0x384   :  { %2319 = vmatpush.bf16.msra.mxu1 %v4266_v19  ;;  %v4346_v18 = vor.u32 %v4992_v7, %v4345_v6  ;;  %v5003_v7 = vld [vmem:[#allocation2 + $0x9a4] sm:$0xf] }
 0x386   :  { %2345 = vmatpush.bf16.msra.mxu3 %v4270_v22  ;;  %2308 = vmatpush.bf16.msra.mxu0 %v4186_v26  ;;  %v4990_v22 = vld [vmem:[#allocation2 + $0x934] sm:$0xf0] }
 0x387   :  { %2333 = vmatpush.bf16.msra.mxu2 %v4198_v16  ;;  %v4418_v16 = vor.u32 %v5010_v10, %v4417_v9  ;;  %v4338_v26 = vor.u32 %v4990_v22, %v4337_v21  ;;  %v4313_v10 = vld [vmem:[#allocation2 + $0x900] sm:$0xf] }
 0x388   :  { %v4314_v13 = vor.u32 %v4984_v11, %v4313_v10  ;;  %v4377_v22 = vld [vmem:[#allocation2 + $0x980] sm:$0xf]  ;;  %v2137_v10 = vperm.slane %v2135_v2, 0  ;;  %v5021_v11 = vld [vmem:[#allocation2 + $0xa34] sm:$0xf] }
 0x38a   :  { %2346 = vmatpush.bf16.msra.mxu3 %v4262_v34 }
 0x38b   :  { %2334 = vmatpush.bf16.msra.mxu2 %v4190_v28 }
 0x38e   :  { %2347 = vmatpush.bf16.msra.mxu3 %v4254_v40 }
 0x3e6   :  { %v1798_v32 = vpop.f32.mrf.mxu0 }
 0x3e7   :  { %v1799_v41 = vadd.f32 %v1798_v32, %v1625_v36  ;;  %v4258_v32 = vor.u32 %v4970_v30, %v4257_v29  ;;  %v4968_v36 = vld [vmem:[#allocation2 + $0x884] sm:$0xf0] }
 0x3e8   :  { %v4250_v38 = vor.u32 %v4968_v36, %v4249_v35 }
 0x3e9   :  { %2320 = vmatpush.bf16.msra.mxu1 %v4258_v32  ;;  %v1882_v32 = vperm.slane %v1879_v15, 1  ;;  %v4318_v15 = vor.u32 %v4983_v12, %v4315_v14  ;;  %v4467_v12 = vld [vmem:[#allocation2 + $0xa38] sm:$0xf0] }
 0x3ea   :  { %v4470_v14 = vor.u32 %v5021_v11, %v4467_v12  ;;  %v5031_v11 = vld [vmem:[#allocation2 + $0xa84] sm:$0xf] }
 0x3ec   :  { %v1811_v42 = vpop.f32.mrf.mxu1  ;;  %v1824_v43 = vpop.f32.mrf.mxu2 }
 0x3ed   :  { %v1812_v44 = vadd.f32 %v1811_v42, %v1799_v41  ;;  %v1825_v49 = vadd.f32 %v1824_v43, %v1626_v45  ;;  %2321 = vmatpush.bf16.msra.mxu1 %v4250_v38  ;;  %v4369_v41 = vld [vmem:[#allocation2 + $0x970] sm:$0xf]  ;;  %v4998_v42 = vld [vmem:[#allocation2 + $0x974] sm:$0xf0]  ;;  %v4997_v43 = vld [vmem:[#allocation2 + $0x974] sm:$0xf] }
 0x3ee   :  { %v1800_v46 = vpop.f32.mrf.mxu0  ;;  %v4371_v45 = vld [vmem:[#allocation2 + $0x978] sm:$0xf0] }
 0x3ef   :  { %v1841_v47 = vmax.f32 %v1812_v44, 0.0  ;;  %v4370_v44 = vor.u32 %v4998_v42, %v4369_v41  ;;  %v4361_v46 = vld [vmem:[#allocation2 + $0x960] sm:$0xf] }
 0x3f1   :  { %v1843_v48 = vpack.c.bf16 %v1841_v47, %v1841_v47  ;;  %v4996_v47 = vld [vmem:[#allocation2 + $0x964] sm:$0xf0] }
 0x3f2   :  { %v1837_v50 = vpop.f32.mrf.mxu3 }
 0x3f3   :  { %v1838_v51 = vadd.f32 %v1837_v50, %v1825_v49  ;;  %2053 = vmatmul.bf16.vlgmr.msrb.gmra.mxu0 %v1843_v48  ;;  %2079 = vmatmul.bf16.vlgmr.msrb.gmra.mxu2 %v1843_v48  ;;  %v4374_v48 = vor.u32 %v4997_v43, %v4371_v45  ;;  %v4995_v49 = vld [vmem:[#allocation2 + $0x964] sm:$0xf]  ;;  %v4363_v50 = vld [vmem:[#allocation2 + $0x968] sm:$0xf0]  ;;  %v5008_v45 = vld [vmem:[#allocation2 + $0x9c4] sm:$0xf0] }
 0x3f4   :  { %v1813_v52 = vpop.f32.mrf.mxu1  ;;  %v1826_v53 = vpop.f32.mrf.mxu2  ;;  %2557 = vmatpush.bf16.msrb.mxu0 %v4370_v44  ;;  %v4409_v44 = vld [vmem:[#allocation2 + $0x9c0] sm:$0xf] }
 0x3f5   :  { %v1842_v54 = vmax.f32 %v1838_v51, 0.0  ;;  %v4433_v51 = vld [vmem:[#allocation2 + $0x9f0] sm:$0xf]  ;;  %v4362_v52 = vor.u32 %v4996_v47, %v4361_v46  ;;  %v5014_v53 = vld [vmem:[#allocation2 + $0x9f4] sm:$0xf0]  ;;  %2583 = vmatpush.bf16.msrb.mxu2 %v4374_v48  ;;  %v4410_v47 = vor.u32 %v5008_v45, %v4409_v44 }
 0x3f6   :  { %v4434_v57 = vor.u32 %v5014_v53, %v4433_v51  ;;  %v5007_v46 = vld [vmem:[#allocation2 + $0x9c4] sm:$0xf]  ;;  %v4411_v48 = vld [vmem:[#allocation2 + $0x9c8] sm:$0xf0]  ;;  %v4988_v51 = vld [vmem:[#allocation2 + $0x924] sm:$0xf0] }
 0x3f7   :  { %v1844_v55 = vpack.c.bf16 %v1842_v54, %v1842_v54  ;;  %v5013_v54 = vld [vmem:[#allocation2 + $0x9f4] sm:$0xf] }
 0x3f8   :  { %2558 = vmatpush.bf16.msrb.mxu0 %v4362_v52  ;;  %v4987_v52 = vld [vmem:[#allocation2 + $0x924] sm:$0xf] }
 0x3f9   :  { %2066 = vmatmul.bf16.vlgmr.msrb.gmra.mxu1 %v1844_v55  ;;  %2092 = vmatmul.bf16.vlgmr.msrb.gmra.mxu3 %v1844_v55  ;;  %v4435_v55 = vld [vmem:[#allocation2 + $0x9f8] sm:$0xf0] }
 0x3fa   :  { %v1839_v56 = vpop.f32.mrf.mxu3  ;;  %v4438_v58 = vor.u32 %v5013_v54, %v4435_v55  ;;  %2570 = vmatpush.bf16.msrb.mxu1 %v4434_v57  ;;  %v4331_v54 = vld [vmem:[#allocation2 + $0x928] sm:$0xf0]  ;;  %v4401_v55 = vld [vmem:[#allocation2 + $0x9b0] sm:$0xf] }
 0x3fb   :  { %v4366_v56 = vor.u32 %v4995_v49, %v4363_v50  ;;  %v4414_v49 = vor.u32 %v5007_v46, %v4411_v48  ;;  %v4329_v50 = vld [vmem:[#allocation2 + $0x920] sm:$0xf]  ;;  %v4334_v57 = vor.u32 %v4987_v52, %v4331_v54  ;;  %v4481_v46 = vld [vmem:[#allocation2 + $0xa50] sm:$0xf]  ;;  %v5025_v48 = vld [vmem:[#allocation2 + $0xa54] sm:$0xf] }
 0x3fc   :  { %2596 = vmatpush.bf16.msrb.mxu3 %v4438_v58  ;;  %2559 = vmatpush.bf16.msrb.mxu0 %v4354_v4  ;;  %v4330_v53 = vor.u32 %v4988_v51, %v4329_v50  ;;  %v4393_v4 = vld [vmem:[#allocation2 + $0x9a0] sm:$0xf]  ;;  %v5044_v51 = vld [vmem:[#allocation2 + $0xae4] sm:$0xf0]  ;;  %v4555_v54 = vld [vmem:[#allocation2 + $0xae8] sm:$0xf0] }
 0x3fd   :  { %2584 = vmatpush.bf16.msrb.mxu2 %v4366_v56  ;;  %v5006_v56 = vld [vmem:[#allocation2 + $0x9b4] sm:$0xf0]  ;;  %v4553_v50 = vld [vmem:[#allocation2 + $0xae0] sm:$0xf] }
 0x3fe   :  { %2571 = vmatpush.bf16.msrb.mxu1 %v4426_v1  ;;  %v4402_v58 = vor.u32 %v5006_v56, %v4401_v55  ;;  %v4322_v1 = vor.u32 %v4986_v63, %v4321_v62  ;;  %v4554_v52 = vor.u32 %v5044_v51, %v4553_v50  ;;  %v5041_v62 = vld [vmem:[#allocation2 + $0xad4] sm:$0xf]  ;;  %v5023_v63 = vld [vmem:[#allocation2 + $0xa44] sm:$0xf]  ;;  %v5018_v50 = vld [vmem:[#allocation2 + $0xa14] sm:$0xf0] }
 0x3ff   :  { %v5017_v51 = vld [vmem:[#allocation2 + $0xa14] sm:$0xf] }
 0x400   :  { %2597 = vmatpush.bf16.msrb.mxu3 %v4430_v5  ;;  %2560 = vmatpush.bf16.msrb.mxu0 %v4346_v18  ;;  %v5004_v5 = vld [vmem:[#allocation2 + $0x9a4] sm:$0xf0]  ;;  %v5001_v18 = vld [vmem:[#allocation2 + $0x994] sm:$0xf] }
 0x401   :  { %2585 = vmatpush.bf16.msrb.mxu2 %v4358_v8  ;;  %v4394_v6 = vor.u32 %v5004_v5, %v4393_v4  ;;  %v4395_v8 = vld [vmem:[#allocation2 + $0x9a8] sm:$0xf0] }
 0x402   :  { %2572 = vmatpush.bf16.msrb.mxu1 %v4418_v16  ;;  %v4398_v9 = vor.u32 %v5003_v7, %v4395_v8  ;;  %v4385_v16 = vld [vmem:[#allocation2 + $0x990] sm:$0xf]  ;;  %v4478_v7 = vor.u32 %v5023_v63, %v4475_v0  ;;  %v5015_v63 = vld [vmem:[#allocation2 + $0xa04] sm:$0xf] }
 0x403   :  { %v4465_v8 = vld [vmem:[#allocation2 + $0xa30] sm:$0xf] }
 0x404   :  { %2598 = vmatpush.bf16.msrb.mxu3 %v4422_v17  ;;  %2561 = vmatpush.bf16.msrb.mxu0 %v4338_v26  ;;  %v5002_v17 = vld [vmem:[#allocation2 + $0x994] sm:$0xf0]  ;;  %v4379_v26 = vld [vmem:[#allocation2 + $0x988] sm:$0xf0] }
 0x405   :  { %2586 = vmatpush.bf16.msrb.mxu2 %v4350_v20  ;;  %v4387_v20 = vld [vmem:[#allocation2 + $0x998] sm:$0xf0] }
 0x406   :  { %2573 = vmatpush.bf16.msrb.mxu1 %v4410_v47  ;;  %v4390_v21 = vor.u32 %v5001_v18, %v4387_v20  ;;  %v5026_v47 = vld [vmem:[#allocation2 + $0xa54] sm:$0xf0] }
 0x407   :  { %v4482_v55 = vor.u32 %v5026_v47, %v4481_v46  ;;  %v5037_v46 = vld [vmem:[#allocation2 + $0xab4] sm:$0xf]  ;;  %v4531_v47 = vld [vmem:[#allocation2 + $0xab8] sm:$0xf0] }
 0x408   :  { %2599 = vmatpush.bf16.msrb.mxu3 %v4414_v49  ;;  %2562 = vmatpush.bf16.msrb.mxu0 %v4330_v53  ;;  %v4483_v49 = vld [vmem:[#allocation2 + $0xa58] sm:$0xf0]  ;;  %v5043_v53 = vld [vmem:[#allocation2 + $0xae4] sm:$0xf] }
 0x409   :  { %2587 = vmatpush.bf16.msrb.mxu2 %v4342_v27  ;;  %v4382_v27 = vor.u32 %v4999_v24, %v4379_v26  ;;  %v4558_v56 = vor.u32 %v5043_v53, %v4555_v54  ;;  %v4486_v59 = vor.u32 %v5025_v48, %v4483_v49  ;;  %v4534_v48 = vor.u32 %v5037_v46, %v4531_v47  ;;  %v4449_v49 = vld [vmem:[#allocation2 + $0xa10] sm:$0xf]  ;;  %v4451_v53 = vld [vmem:[#allocation2 + $0xa18] sm:$0xf0] }
 0x40a   :  { %2574 = vmatpush.bf16.msrb.mxu1 %v4402_v58  ;;  %v5024_v58 = vld [vmem:[#allocation2 + $0xa44] sm:$0xf0]  ;;  %v4454_v54 = vor.u32 %v5017_v51, %v4451_v53  ;;  %v4673_v47 = vld [vmem:[#allocation2 + $0xbd0] sm:$0xf]  ;;  %v4603_v51 = vld [vmem:[#allocation2 + $0xb48] sm:$0xf0] }
 0x40b   :  { %v2391_v53 = vld [vmem:[#allocation5 + $0x11] ss:$8 sm:$0x3] }
 0x40c   :  { %2600 = vmatpush.bf16.msrb.mxu3 %v4406_v61  ;;  %2563 = vmatpush.bf16.msrb.mxu0 %v4322_v1  ;;  %v5042_v61 = vld [vmem:[#allocation2 + $0xad4] sm:$0xf0]  ;;  %v4547_v1 = vld [vmem:[#allocation2 + $0xad8] sm:$0xf0] }
 0x40d   :  { %2588 = vmatpush.bf16.msrb.mxu2 %v4334_v57  ;;  %v4473_v57 = vld [vmem:[#allocation2 + $0xa40] sm:$0xf]  ;;  %v4550_v4 = vor.u32 %v5041_v62, %v4547_v1  ;;  %v5016_v62 = vld [vmem:[#allocation2 + $0xa04] sm:$0xf0]  ;;  %v4443_v1 = vld [vmem:[#allocation2 + $0xa08] sm:$0xf0] }
 0x40e   :  { %2575 = vmatpush.bf16.msrb.mxu1 %v4394_v6  ;;  %v4474_v5 = vor.u32 %v5024_v58, %v4473_v57  ;;  %v5035_v58 = vld [vmem:[#allocation2 + $0xaa4] sm:$0xf] }
 0x410   :  { %2601 = vmatpush.bf16.msrb.mxu3 %v4398_v9  ;;  %2564 = vmatpush.bf16.msrb.mxu0 %v4314_v13  ;;  %v5022_v9 = vld [vmem:[#allocation2 + $0xa34] sm:$0xf0] }
 0x411   :  { %2589 = vmatpush.bf16.msrb.mxu2 %v4326_v3  ;;  %v4546_v3 = vor.u32 %v5042_v61, %v4545_v60  ;;  %v4466_v13 = vor.u32 %v5022_v9, %v4465_v8  ;;  %v4441_v61 = vld [vmem:[#allocation2 + $0xa00] sm:$0xf] }
 0x412   :  { %v4442_v0 = vor.u32 %v5016_v62, %v4441_v61  ;;  %v4505_v9 = vld [vmem:[#allocation2 + $0xa80] sm:$0xf]  ;;  %v2393_v61 = vperm.slane %v2391_v53, 0  ;;  %v5053_v62 = vld [vmem:[#allocation2 + $0xb34] sm:$0xf] }
 0x414   :  { %2602 = vmatpush.bf16.msrb.mxu3 %v4390_v21 }
 0x415   :  { %2590 = vmatpush.bf16.msrb.mxu2 %v4318_v15 }
 0x418   :  { %2603 = vmatpush.bf16.msrb.mxu3 %v4382_v27 }
 0x470   :  { %v2054_v19 = vpop.f32.mrf.mxu0 }
 0x471   :  { %v2055_v28 = vadd.f32 %v2054_v19, %v1881_v23  ;;  %v4386_v19 = vor.u32 %v5002_v17, %v4385_v16  ;;  %v5000_v23 = vld [vmem:[#allocation2 + $0x984] sm:$0xf0] }
 0x472   :  { %v4378_v25 = vor.u32 %v5000_v23, %v4377_v22 }
 0x473   :  { %2576 = vmatpush.bf16.msrb.mxu1 %v4386_v19  ;;  %v2138_v19 = vperm.slane %v2135_v2, 1  ;;  %v4446_v2 = vor.u32 %v5015_v63, %v4443_v1  ;;  %v4595_v63 = vld [vmem:[#allocation2 + $0xb38] sm:$0xf0] }
 0x474   :  { %v4598_v1 = vor.u32 %v5053_v62, %v4595_v63  ;;  %v5063_v62 = vld [vmem:[#allocation2 + $0xb84] sm:$0xf] }
 0x476   :  { %v2067_v29 = vpop.f32.mrf.mxu1  ;;  %v2080_v30 = vpop.f32.mrf.mxu2 }
 0x477   :  { %v2068_v31 = vadd.f32 %v2067_v29, %v2055_v28  ;;  %v2081_v36 = vadd.f32 %v2080_v30, %v1882_v32  ;;  %2577 = vmatpush.bf16.msrb.mxu1 %v4378_v25  ;;  %v4497_v28 = vld [vmem:[#allocation2 + $0xa70] sm:$0xf]  ;;  %v5030_v29 = vld [vmem:[#allocation2 + $0xa74] sm:$0xf0]  ;;  %v5029_v30 = vld [vmem:[#allocation2 + $0xa74] sm:$0xf] }
 0x478   :  { %v2056_v33 = vpop.f32.mrf.mxu0  ;;  %v4499_v32 = vld [vmem:[#allocation2 + $0xa78] sm:$0xf0] }
 0x479   :  { %v2097_v34 = vmax.f32 %v2068_v31, 0.0  ;;  %v4498_v31 = vor.u32 %v5030_v29, %v4497_v28  ;;  %v4489_v33 = vld [vmem:[#allocation2 + $0xa60] sm:$0xf] }
 0x47b   :  { %v2099_v35 = vpack.c.bf16 %v2097_v34, %v2097_v34  ;;  %v5028_v34 = vld [vmem:[#allocation2 + $0xa64] sm:$0xf0] }
 0x47c   :  { %v2093_v37 = vpop.f32.mrf.mxu3 }
 0x47d   :  { %v2094_v38 = vadd.f32 %v2093_v37, %v2081_v36  ;;  %2309 = vmatmul.bf16.vlgmr.msra.gmra.mxu0 %v2099_v35  ;;  %2335 = vmatmul.bf16.vlgmr.msra.gmra.mxu2 %v2099_v35  ;;  %v4502_v35 = vor.u32 %v5029_v30, %v4499_v32  ;;  %v5027_v36 = vld [vmem:[#allocation2 + $0xa64] sm:$0xf]  ;;  %v4491_v37 = vld [vmem:[#allocation2 + $0xa68] sm:$0xf0]  ;;  %v5040_v32 = vld [vmem:[#allocation2 + $0xac4] sm:$0xf0] }
 0x47e   :  { %v2069_v39 = vpop.f32.mrf.mxu1  ;;  %v2082_v40 = vpop.f32.mrf.mxu2  ;;  %2813 = vmatpush.bf16.msra.mxu0 %v4498_v31  ;;  %v4537_v31 = vld [vmem:[#allocation2 + $0xac0] sm:$0xf] }
 0x47f   :  { %v2098_v41 = vmax.f32 %v2094_v38, 0.0  ;;  %v4561_v38 = vld [vmem:[#allocation2 + $0xaf0] sm:$0xf]  ;;  %v4490_v39 = vor.u32 %v5028_v34, %v4489_v33  ;;  %v5046_v40 = vld [vmem:[#allocation2 + $0xaf4] sm:$0xf0]  ;;  %2839 = vmatpush.bf16.msra.mxu2 %v4502_v35  ;;  %v4538_v34 = vor.u32 %v5040_v32, %v4537_v31 }
 0x480   :  { %v4562_v44 = vor.u32 %v5046_v40, %v4561_v38  ;;  %v5039_v33 = vld [vmem:[#allocation2 + $0xac4] sm:$0xf]  ;;  %v4539_v35 = vld [vmem:[#allocation2 + $0xac8] sm:$0xf0]  ;;  %v5020_v38 = vld [vmem:[#allocation2 + $0xa24] sm:$0xf0] }
 0x481   :  { %v2100_v42 = vpack.c.bf16 %v2098_v41, %v2098_v41  ;;  %v5045_v41 = vld [vmem:[#allocation2 + $0xaf4] sm:$0xf] }
 0x482   :  { %2814 = vmatpush.bf16.msra.mxu0 %v4490_v39  ;;  %v5019_v39 = vld [vmem:[#allocation2 + $0xa24] sm:$0xf] }
 0x483   :  { %2322 = vmatmul.bf16.vlgmr.msra.gmra.mxu1 %v2100_v42  ;;  %2348 = vmatmul.bf16.vlgmr.msra.gmra.mxu3 %v2100_v42  ;;  %v4563_v42 = vld [vmem:[#allocation2 + $0xaf8] sm:$0xf0] }
 0x484   :  { %v2095_v43 = vpop.f32.mrf.mxu3  ;;  %v4566_v45 = vor.u32 %v5045_v41, %v4563_v42  ;;  %2826 = vmatpush.bf16.msra.mxu1 %v4562_v44  ;;  %v4459_v41 = vld [vmem:[#allocation2 + $0xa28] sm:$0xf0]  ;;  %v4529_v42 = vld [vmem:[#allocation2 + $0xab0] sm:$0xf] }
 0x485   :  { %v4494_v43 = vor.u32 %v5027_v36, %v4491_v37  ;;  %v4542_v36 = vor.u32 %v5039_v33, %v4539_v35  ;;  %v4457_v37 = vld [vmem:[#allocation2 + $0xa20] sm:$0xf]  ;;  %v4462_v44 = vor.u32 %v5019_v39, %v4459_v41  ;;  %v4609_v33 = vld [vmem:[#allocation2 + $0xb50] sm:$0xf]  ;;  %v5057_v35 = vld [vmem:[#allocation2 + $0xb54] sm:$0xf] }
 0x486   :  { %2852 = vmatpush.bf16.msra.mxu3 %v4566_v45  ;;  %2815 = vmatpush.bf16.msra.mxu0 %v4482_v55  ;;  %v4458_v40 = vor.u32 %v5020_v38, %v4457_v37  ;;  %v4521_v55 = vld [vmem:[#allocation2 + $0xaa0] sm:$0xf]  ;;  %v5076_v38 = vld [vmem:[#allocation2 + $0xbe4] sm:$0xf0]  ;;  %v4683_v41 = vld [vmem:[#allocation2 + $0xbe8] sm:$0xf0] }
 0x487   :  { %2840 = vmatpush.bf16.msra.mxu2 %v4494_v43  ;;  %v5038_v43 = vld [vmem:[#allocation2 + $0xab4] sm:$0xf0]  ;;  %v4681_v37 = vld [vmem:[#allocation2 + $0xbe0] sm:$0xf] }
 0x488   :  { %2827 = vmatpush.bf16.msra.mxu1 %v4554_v52  ;;  %v4530_v45 = vor.u32 %v5038_v43, %v4529_v42  ;;  %v4450_v52 = vor.u32 %v5018_v50, %v4449_v49  ;;  %v4682_v39 = vor.u32 %v5076_v38, %v4681_v37  ;;  %v5073_v49 = vld [vmem:[#allocation2 + $0xbd4] sm:$0xf]  ;;  %v5055_v50 = vld [vmem:[#allocation2 + $0xb44] sm:$0xf]  ;;  %v5050_v37 = vld [vmem:[#allocation2 + $0xb14] sm:$0xf0] }
 0x489   :  { %v5049_v38 = vld [vmem:[#allocation2 + $0xb14] sm:$0xf] }
 0x48a   :  { %2853 = vmatpush.bf16.msra.mxu3 %v4558_v56  ;;  %2816 = vmatpush.bf16.msra.mxu0 %v4474_v5  ;;  %v5036_v56 = vld [vmem:[#allocation2 + $0xaa4] sm:$0xf0]  ;;  %v5033_v5 = vld [vmem:[#allocation2 + $0xa94] sm:$0xf] }
 0x48b   :  { %2841 = vmatpush.bf16.msra.mxu2 %v4486_v59  ;;  %v4522_v57 = vor.u32 %v5036_v56, %v4521_v55  ;;  %v4523_v59 = vld [vmem:[#allocation2 + $0xaa8] sm:$0xf0] }
 0x48c   :  { %2828 = vmatpush.bf16.msra.mxu1 %v4546_v3  ;;  %v4526_v60 = vor.u32 %v5035_v58, %v4523_v59  ;;  %v4513_v3 = vld [vmem:[#allocation2 + $0xa90] sm:$0xf]  ;;  %v4606_v58 = vor.u32 %v5055_v50, %v4603_v51  ;;  %v5047_v50 = vld [vmem:[#allocation2 + $0xb04] sm:$0xf] }
 0x48d   :  { %v4593_v59 = vld [vmem:[#allocation2 + $0xb30] sm:$0xf] }
 0x48e   :  { %2854 = vmatpush.bf16.msra.mxu3 %v4550_v4  ;;  %2817 = vmatpush.bf16.msra.mxu0 %v4466_v13  ;;  %v5034_v4 = vld [vmem:[#allocation2 + $0xa94] sm:$0xf0]  ;;  %v4507_v13 = vld [vmem:[#allocation2 + $0xa88] sm:$0xf0] }
 0x48f   :  { %2842 = vmatpush.bf16.msra.mxu2 %v4478_v7  ;;  %v4515_v7 = vld [vmem:[#allocation2 + $0xa98] sm:$0xf0] }
 0x490   :  { %2829 = vmatpush.bf16.msra.mxu1 %v4538_v34  ;;  %v4518_v8 = vor.u32 %v5033_v5, %v4515_v7  ;;  %v5058_v34 = vld [vmem:[#allocation2 + $0xb54] sm:$0xf0] }
 0x491   :  { %v4610_v42 = vor.u32 %v5058_v34, %v4609_v33  ;;  %v5069_v33 = vld [vmem:[#allocation2 + $0xbb4] sm:$0xf]  ;;  %v4659_v34 = vld [vmem:[#allocation2 + $0xbb8] sm:$0xf0] }
 0x492   :  { %2855 = vmatpush.bf16.msra.mxu3 %v4542_v36  ;;  %2818 = vmatpush.bf16.msra.mxu0 %v4458_v40  ;;  %v4611_v36 = vld [vmem:[#allocation2 + $0xb58] sm:$0xf0]  ;;  %v5075_v40 = vld [vmem:[#allocation2 + $0xbe4] sm:$0xf] }
 0x493   :  { %2843 = vmatpush.bf16.msra.mxu2 %v4470_v14  ;;  %v4510_v14 = vor.u32 %v5031_v11, %v4507_v13  ;;  %v4686_v43 = vor.u32 %v5075_v40, %v4683_v41  ;;  %v4614_v46 = vor.u32 %v5057_v35, %v4611_v36  ;;  %v4662_v35 = vor.u32 %v5069_v33, %v4659_v34  ;;  %v4577_v36 = vld [vmem:[#allocation2 + $0xb10] sm:$0xf]  ;;  %v4579_v40 = vld [vmem:[#allocation2 + $0xb18] sm:$0xf0] }
 0x494   :  { %2830 = vmatpush.bf16.msra.mxu1 %v4530_v45  ;;  %v5056_v45 = vld [vmem:[#allocation2 + $0xb44] sm:$0xf0]  ;;  %v4582_v41 = vor.u32 %v5049_v38, %v4579_v40 }
 0x496   :  { %2856 = vmatpush.bf16.msra.mxu3 %v4534_v48  ;;  %2819 = vmatpush.bf16.msra.mxu0 %v4450_v52  ;;  %v5074_v48 = vld [vmem:[#allocation2 + $0xbd4] sm:$0xf0]  ;;  %v4675_v52 = vld [vmem:[#allocation2 + $0xbd8] sm:$0xf0] }
 0x497   :  { %2844 = vmatpush.bf16.msra.mxu2 %v4462_v44  ;;  %v4601_v44 = vld [vmem:[#allocation2 + $0xb40] sm:$0xf]  ;;  %v4678_v55 = vor.u32 %v5073_v49, %v4675_v52  ;;  %v5048_v49 = vld [vmem:[#allocation2 + $0xb04] sm:$0xf0]  ;;  %v4571_v52 = vld [vmem:[#allocation2 + $0xb08] sm:$0xf0] }
 0x498   :  { %2831 = vmatpush.bf16.msra.mxu1 %v4522_v57  ;;  %v4602_v56 = vor.u32 %v5056_v45, %v4601_v44  ;;  %v5067_v45 = vld [vmem:[#allocation2 + $0xba4] sm:$0xf] }
 0x49a   :  { %2857 = vmatpush.bf16.msra.mxu3 %v4526_v60  ;;  %2820 = vmatpush.bf16.msra.mxu0 %v4442_v0  ;;  %v5054_v60 = vld [vmem:[#allocation2 + $0xb34] sm:$0xf0] }
 0x49b   :  { %2845 = vmatpush.bf16.msra.mxu2 %v4454_v54  ;;  %v4674_v54 = vor.u32 %v5074_v48, %v4673_v47  ;;  %v4594_v0 = vor.u32 %v5054_v60, %v4593_v59  ;;  %v4569_v48 = vld [vmem:[#allocation2 + $0xb00] sm:$0xf] }
 0x49c   :  { %v4570_v51 = vor.u32 %v5048_v49, %v4569_v48  ;;  %v4633_v60 = vld [vmem:[#allocation2 + $0xb80] sm:$0xf] }
 0x49e   :  { %2858 = vmatpush.bf16.msra.mxu3 %v4518_v8 }
 0x49f   :  { %2846 = vmatpush.bf16.msra.mxu2 %v4446_v2 }
 0x4a2   :  { %2859 = vmatpush.bf16.msra.mxu3 %v4510_v14 }
 0x4fa   :  { %v2310_v6 = vpop.f32.mrf.mxu0 }
 0x4fb   :  { %v2311_v15 = vadd.f32 %v2310_v6, %v2137_v10  ;;  %v4514_v6 = vor.u32 %v5034_v4, %v4513_v3  ;;  %v5032_v10 = vld [vmem:[#allocation2 + $0xa84] sm:$0xf0] }
 0x4fc   :  { %v4506_v12 = vor.u32 %v5032_v10, %v4505_v9 }
 0x4fd   :  { %2832 = vmatpush.bf16.msra.mxu1 %v4514_v6  ;;  %v2394_v6 = vperm.slane %v2391_v53, 1  ;;  %v4574_v53 = vor.u32 %v5047_v50, %v4571_v52 }
 0x500   :  { %v2323_v16 = vpop.f32.mrf.mxu1  ;;  %v2336_v17 = vpop.f32.mrf.mxu2 }
 0x501   :  { %v2324_v18 = vadd.f32 %v2323_v16, %v2311_v15  ;;  %v2337_v23 = vadd.f32 %v2336_v17, %v2138_v19  ;;  %2833 = vmatpush.bf16.msra.mxu1 %v4506_v12  ;;  %v4625_v15 = vld [vmem:[#allocation2 + $0xb70] sm:$0xf]  ;;  %v5062_v16 = vld [vmem:[#allocation2 + $0xb74] sm:$0xf0]  ;;  %v5061_v17 = vld [vmem:[#allocation2 + $0xb74] sm:$0xf] }
 0x502   :  { %v2312_v20 = vpop.f32.mrf.mxu0  ;;  %v4627_v19 = vld [vmem:[#allocation2 + $0xb78] sm:$0xf0] }
 0x503   :  { %v2353_v21 = vmax.f32 %v2324_v18, 0.0  ;;  %v4626_v18 = vor.u32 %v5062_v16, %v4625_v15  ;;  %v4617_v20 = vld [vmem:[#allocation2 + $0xb60] sm:$0xf] }
 0x505   :  { %v2355_v22 = vpack.c.bf16 %v2353_v21, %v2353_v21  ;;  %v5060_v21 = vld [vmem:[#allocation2 + $0xb64] sm:$0xf0] }
 0x506   :  { %v2349_v24 = vpop.f32.mrf.mxu3 }
 0x507   :  { %v2350_v25 = vadd.f32 %v2349_v24, %v2337_v23  ;;  %2565 = vmatmul.bf16.vlgmr.msrb.gmra.mxu0 %v2355_v22  ;;  %2591 = vmatmul.bf16.vlgmr.msrb.gmra.mxu2 %v2355_v22  ;;  %v4630_v22 = vor.u32 %v5061_v17, %v4627_v19  ;;  %v5059_v23 = vld [vmem:[#allocation2 + $0xb64] sm:$0xf]  ;;  %v4619_v24 = vld [vmem:[#allocation2 + $0xb68] sm:$0xf0]  ;;  %v5072_v19 = vld [vmem:[#allocation2 + $0xbc4] sm:$0xf0] }
 0x508   :  { %v2325_v26 = vpop.f32.mrf.mxu1  ;;  %v2338_v27 = vpop.f32.mrf.mxu2  ;;  %3069 = vmatpush.bf16.msrb.mxu0 %v4626_v18  ;;  %v4665_v18 = vld [vmem:[#allocation2 + $0xbc0] sm:$0xf] }
 0x509   :  { %v2354_v28 = vmax.f32 %v2350_v25, 0.0  ;;  %v4689_v25 = vld [vmem:[#allocation2 + $0xbf0] sm:$0xf]  ;;  %v4618_v26 = vor.u32 %v5060_v21, %v4617_v20  ;;  %v5078_v27 = vld [vmem:[#allocation2 + $0xbf4] sm:$0xf0]  ;;  %3095 = vmatpush.bf16.msrb.mxu2 %v4630_v22  ;;  %v4666_v21 = vor.u32 %v5072_v19, %v4665_v18 }
 0x50a   :  { %v4690_v31 = vor.u32 %v5078_v27, %v4689_v25  ;;  %v5071_v20 = vld [vmem:[#allocation2 + $0xbc4] sm:$0xf]  ;;  %v4667_v22 = vld [vmem:[#allocation2 + $0xbc8] sm:$0xf0]  ;;  %v5052_v25 = vld [vmem:[#allocation2 + $0xb24] sm:$0xf0] }
 0x50b   :  { %v2356_v29 = vpack.c.bf16 %v2354_v28, %v2354_v28  ;;  %v5077_v28 = vld [vmem:[#allocation2 + $0xbf4] sm:$0xf] }
 0x50c   :  { %3070 = vmatpush.bf16.msrb.mxu0 %v4618_v26  ;;  %v5051_v26 = vld [vmem:[#allocation2 + $0xb24] sm:$0xf] }
 0x50d   :  { %2578 = vmatmul.bf16.vlgmr.msrb.gmra.mxu1 %v2356_v29  ;;  %2604 = vmatmul.bf16.vlgmr.msrb.gmra.mxu3 %v2356_v29  ;;  %v4691_v29 = vld [vmem:[#allocation2 + $0xbf8] sm:$0xf0] }
 0x50e   :  { %v2351_v30 = vpop.f32.mrf.mxu3  ;;  %v4694_v32 = vor.u32 %v5077_v28, %v4691_v29  ;;  %3082 = vmatpush.bf16.msrb.mxu1 %v4690_v31  ;;  %v4587_v28 = vld [vmem:[#allocation2 + $0xb28] sm:$0xf0]  ;;  %v4657_v29 = vld [vmem:[#allocation2 + $0xbb0] sm:$0xf] }
 0x50f   :  { %v4622_v30 = vor.u32 %v5059_v23, %v4619_v24  ;;  %v4670_v23 = vor.u32 %v5071_v20, %v4667_v22  ;;  %v4585_v24 = vld [vmem:[#allocation2 + $0xb20] sm:$0xf]  ;;  %v4590_v31 = vor.u32 %v5051_v26, %v4587_v28 }
 0x510   :  { %3108 = vmatpush.bf16.msrb.mxu3 %v4694_v32  ;;  %3071 = vmatpush.bf16.msrb.mxu0 %v4610_v42  ;;  %v4586_v27 = vor.u32 %v5052_v25, %v4585_v24  ;;  %v4649_v42 = vld [vmem:[#allocation2 + $0xba0] sm:$0xf] }
 0x511   :  { %3096 = vmatpush.bf16.msrb.mxu2 %v4622_v30  ;;  %v5070_v30 = vld [vmem:[#allocation2 + $0xbb4] sm:$0xf0] }
 0x512   :  { %3083 = vmatpush.bf16.msrb.mxu1 %v4682_v39  ;;  %v4658_v32 = vor.u32 %v5070_v30, %v4657_v29  ;;  %v4578_v39 = vor.u32 %v5050_v37, %v4577_v36 }
 0x514   :  { %3109 = vmatpush.bf16.msrb.mxu3 %v4686_v43  ;;  %3072 = vmatpush.bf16.msrb.mxu0 %v4602_v56  ;;  %v5068_v43 = vld [vmem:[#allocation2 + $0xba4] sm:$0xf0]  ;;  %v5065_v56 = vld [vmem:[#allocation2 + $0xb94] sm:$0xf] }
 0x515   :  { %3097 = vmatpush.bf16.msrb.mxu2 %v4614_v46  ;;  %v4650_v44 = vor.u32 %v5068_v43, %v4649_v42  ;;  %v4651_v46 = vld [vmem:[#allocation2 + $0xba8] sm:$0xf0] }
 0x516   :  { %3084 = vmatpush.bf16.msrb.mxu1 %v4674_v54  ;;  %v4654_v47 = vor.u32 %v5067_v45, %v4651_v46  ;;  %v4641_v54 = vld [vmem:[#allocation2 + $0xb90] sm:$0xf] }
 0x518   :  { %3110 = vmatpush.bf16.msrb.mxu3 %v4678_v55  ;;  %3073 = vmatpush.bf16.msrb.mxu0 %v4594_v0  ;;  %v5066_v55 = vld [vmem:[#allocation2 + $0xb94] sm:$0xf0]  ;;  %v4635_v0 = vld [vmem:[#allocation2 + $0xb88] sm:$0xf0] }
 0x519   :  { %3098 = vmatpush.bf16.msrb.mxu2 %v4606_v58  ;;  %v4643_v58 = vld [vmem:[#allocation2 + $0xb98] sm:$0xf0] }
 0x51a   :  { %3085 = vmatpush.bf16.msrb.mxu1 %v4666_v21  ;;  %v4646_v59 = vor.u32 %v5065_v56, %v4643_v58  ;;  %v2903_v21 = vld [vmem:[#allocation5 + $0x13] ss:$8 sm:$0x3] }
 0x51b   :  { %v2906_v28 = vperm.slane %v2903_v21, 1 }
 0x51c   :  { %3111 = vmatpush.bf16.msrb.mxu3 %v4670_v23  ;;  %3074 = vmatpush.bf16.msrb.mxu0 %v4586_v27  ;;  %v2905_v23 = vperm.slane %v2903_v21, 0 }
 0x51d   :  { %3099 = vmatpush.bf16.msrb.mxu2 %v4598_v1  ;;  %v4638_v1 = vor.u32 %v5063_v62, %v4635_v0 }
 0x51e   :  { %3086 = vmatpush.bf16.msrb.mxu1 %v4658_v32 }
 0x520   :  { %3112 = vmatpush.bf16.msrb.mxu3 %v4662_v35  ;;  %3075 = vmatpush.bf16.msrb.mxu0 %v4578_v39 }
 0x521   :  { %3100 = vmatpush.bf16.msrb.mxu2 %v4590_v31 }
 0x522   :  { %3087 = vmatpush.bf16.msrb.mxu1 %v4650_v44 }
 0x524   :  { %3113 = vmatpush.bf16.msrb.mxu3 %v4654_v47  ;;  %3076 = vmatpush.bf16.msrb.mxu0 %v4570_v51 }
 0x525   :  { %3101 = vmatpush.bf16.msrb.mxu2 %v4582_v41 }
 0x528   :  { %3114 = vmatpush.bf16.msrb.mxu3 %v4646_v59 }
 0x529   :  { %3102 = vmatpush.bf16.msrb.mxu2 %v4574_v53 }
 0x52c   :  { %3115 = vmatpush.bf16.msrb.mxu3 %v4638_v1 }
 0x584   :  { %v2566_v57 = vpop.f32.mrf.mxu0 }
 0x585   :  { %v2567_v2 = vadd.f32 %v2566_v57, %v2393_v61  ;;  %v4642_v57 = vor.u32 %v5066_v55, %v4641_v54  ;;  %v5064_v61 = vld [vmem:[#allocation2 + $0xb84] sm:$0xf0] }
 0x586   :  { %v4634_v63 = vor.u32 %v5064_v61, %v4633_v60 }
 0x587   :  { %3088 = vmatpush.bf16.msrb.mxu1 %v4642_v57 }
 0x58a   :  { %v2579_v3 = vpop.f32.mrf.mxu1  ;;  %v2592_v4 = vpop.f32.mrf.mxu2 }
 0x58b   :  { %v2580_v5 = vadd.f32 %v2579_v3, %v2567_v2  ;;  %v2593_v10 = vadd.f32 %v2592_v4, %v2394_v6  ;;  %3089 = vmatpush.bf16.msrb.mxu1 %v4634_v63  ;;  %v2647_v2 = vld [vmem:[#allocation5 + $0x12] ss:$8 sm:$0x3] }
 0x58c   :  { %v2568_v7 = vpop.f32.mrf.mxu0  ;;  %v2649_v4 = vperm.slane %v2647_v2, 0 }
 0x58d   :  { %v2609_v8 = vmax.f32 %v2580_v5, 0.0 }
 0x58f   :  { %v2611_v9 = vpack.c.bf16 %v2609_v8, %v2609_v8 }
 0x590   :  { %v2605_v11 = vpop.f32.mrf.mxu3 }
 0x591   :  { %v2606_v12 = vadd.f32 %v2605_v11, %v2593_v10  ;;  %2821 = vmatmul.bf16.vlgmr.msra.gmra.mxu0 %v2611_v9  ;;  %2847 = vmatmul.bf16.vlgmr.msra.gmra.mxu2 %v2611_v9  ;;  %v2650_v9 = vperm.slane %v2647_v2, 1 }
 0x592   :  { %v2581_v13 = vpop.f32.mrf.mxu1  ;;  %v2594_v14 = vpop.f32.mrf.mxu2 }
 0x593   :  { %v2610_v15 = vmax.f32 %v2606_v12, 0.0 }
 0x595   :  { %v2612_v16 = vpack.c.bf16 %v2610_v15, %v2610_v15 }
 0x597   :  { %2834 = vmatmul.bf16.vlgmr.msra.gmra.mxu1 %v2612_v16  ;;  %2860 = vmatmul.bf16.vlgmr.msra.gmra.mxu3 %v2612_v16 }
 0x598   :  { %v2607_v17 = vpop.f32.mrf.mxu3 }
 0x60e   :  { %v2822_v3 = vpop.f32.mrf.mxu0 }
 0x60f   :  { %v2823_v5 = vadd.f32 %v2822_v3, %v2649_v4 }
 0x614   :  { %v2835_v6 = vpop.f32.mrf.mxu1  ;;  %v2848_v7 = vpop.f32.mrf.mxu2 }
 0x615   :  { %v2836_v8 = vadd.f32 %v2835_v6, %v2823_v5  ;;  %v2849_v13 = vadd.f32 %v2848_v7, %v2650_v9 }
 0x616   :  { %v2824_v10 = vpop.f32.mrf.mxu0 }
 0x617   :  { %v2865_v11 = vmax.f32 %v2836_v8, 0.0 }
 0x619   :  { %v2867_v12 = vpack.c.bf16 %v2865_v11, %v2865_v11 }
 0x61a   :  { %v2861_v14 = vpop.f32.mrf.mxu3 }
 0x61b   :  { %v2862_v15 = vadd.f32 %v2861_v14, %v2849_v13  ;;  %3077 = vmatmul.bf16.vlgmr.msrb.gmra.mxu0 %v2867_v12  ;;  %3103 = vmatmul.bf16.vlgmr.msrb.gmra.mxu2 %v2867_v12 }
 0x61c   :  { %v2837_v16 = vpop.f32.mrf.mxu1  ;;  %v2850_v17 = vpop.f32.mrf.mxu2 }
 0x61d   :  { %v2866_v18 = vmax.f32 %v2862_v15, 0.0 }
 0x61f   :  { %v2868_v19 = vpack.c.bf16 %v2866_v18, %v2866_v18 }
 0x621   :  { %3090 = vmatmul.bf16.vlgmr.msrb.gmra.mxu1 %v2868_v19  ;;  %3116 = vmatmul.bf16.vlgmr.msrb.gmra.mxu3 %v2868_v19 }
 0x622   :  { %v2863_v20 = vpop.f32.mrf.mxu3 }
 0x698   :  { %v3078_v22 = vpop.f32.mrf.mxu0 }
 0x699   :  { %v3079_v24 = vadd.f32 %v3078_v22, %v2905_v23 }
 0x69e   :  { %v3091_v25 = vpop.f32.mrf.mxu1  ;;  %v3104_v26 = vpop.f32.mrf.mxu2 }
 0x69f   :  { %v3092_v27 = vadd.f32 %v3091_v25, %v3079_v24  ;;  %v3105_v31 = vadd.f32 %v3104_v26, %v2906_v28 }
 0x6a0   :  { %v3080_v29 = vpop.f32.mrf.mxu0 }
 0x6a1   :  { %v3121_v30 = vmax.f32 %v3092_v27, 0.0 }
 0x6a3   :  { %3123 = vst [vmem:[#allocation7] sm:$0xff] %v3121_v30 }
 0x6a4   :  { %v3117_v32 = vpop.f32.mrf.mxu3 }
 0x6a5   :  { %v3118_v33 = vadd.f32 %v3117_v32, %v3105_v31 }
 0x6a6   :  { %v3093_v34 = vpop.f32.mrf.mxu1  ;;  %v3106_v35 = vpop.f32.mrf.mxu2 }
 0x6a7   :  { %v3122_v36 = vmax.f32 %v3118_v33, 0.0 }
 0x6a9   :  { %3124 = vst [vmem:[#allocation7 + $0x8] sm:$0xff] %v3122_v36 }
 0x6aa   :  { %3135 = dma.vmem_to_hbm [thread:$0]  %s3131_s10, 256, %s3133_s12, [#allocation4]  }
 0x6ac   :  { %v3119_v37 = vpop.f32.mrf.mxu3 }
 0x6ad   :  { %5187 = dma.done.wait [#allocation4], 256  }
 0x6ae   :  { %5188 = vsyncadd [#allocation4], 4294967040 }
 0x6af   :  { %5189 = dma.done.wait [#allocation9], 128  }
 0x6b0   :  { %5190 = vsyncadd [#allocation9], 4294967168 }
 0x6b1   :  { %3155 = vsyncpa [#allocation3], 1 }
 0x6b2   :  { %3156 = vsyncpa [#allocation6], 1 }
 0x6b3   :  { %3157 = vsyncpa [#allocation4], 1 }
 0x6b4   :  { %3158 = vsyncpa [#allocation9], 1 }

</bundles_post_ra>
